<compile_context>
chip_gen: v5e
topology: v5e:2x2
jax: 0.10.0
libtpu: 0.0.40
codegen_flags: <defaults>
</compile_context>

<pallas_src>
import numpy as np
import jax
import jax.numpy as jnp
from jax.experimental import pallas as pl
from jax.experimental.pallas import tpu as pltpu

# EEGBlock hyper-parameters (module defaults)
F1 = 8            # conv1 temporal filters
D = 2             # depth multiplier of depthwise conv
C = D * F1        # 16 channels after depthwise
F2 = 16           # conv3 pointwise output filters
KE = 32           # conv1 temporal kernel length ('same' padding)
KD = 16           # conv3 depthwise temporal kernel length (pad 8)
H_EEG = 22        # EEG electrodes (depthwise spatial kernel height)
EPS = 1e-5        # BatchNorm eps


def _elu(y):
    # Single-EUP-op ELU; exp(y)-1 cancellation near 0 is far below the
    # bf16-operand noise floor / accepted tolerance.
    return jnp.where(y > 0, y, jnp.exp(y) - 1.0)


def eeg_kernel(x_ref, wd_ref, w1c_ref, b2_ref, w3d_ref, wpw_ref, b3_ref,
               p4x2_ref, p4slab_ref, p8_ref, x2_ref, x3_ref):
    """One block of samples per grid step; batch folded into the lane axis."""
    ke = w1c_ref.shape[1]
    kd = w3d_ref.shape[1]
    ln = x_ref.shape[2]                  # block_b * (T + KE - 1)
    v1 = ln - ke + 1                     # valid conv1 width across the block
    ws = p4slab_ref.shape[1]             # block_b * (T4 + KD): conv3-padded slab
    v3 = ws - kd + 1                     # valid conv3 width across the block

    # 22 -> C spatial contraction (commutes with conv1): one MXU matmul.
    z = jnp.dot(wd_ref[...], x_ref[0],
                preferred_element_type=jnp.float32)              # (C, ln) f32

    # conv1 (1,KE) temporal depthwise (BN1*BN2 scales folded into w1c): KE-tap
    # FMA over the whole block slab — one lane shift + one (C,1) broadcast per
    # tap for all samples (halo per sample keeps boundaries clean).
    w1c = w1c_ref[...]
    acc1 = w1c[:, 0:1] * z[:, 0:v1]
    for k in range(1, ke):
        acc1 = acc1 + w1c[:, k:k + 1] * z[:, k:k + v1]
    y2 = _elu(acc1 + b2_ref[...]).astype(p4x2_ref.dtype)         # (C, v1)

    # AvgPool(1,4) as block-diagonal 0.25-selector matmuls (bf16 x bf16 MXU):
    #   p4x2   -> packed, lane-dense x2 output
    #   p4slab -> same pooled data at offset KD//2 inside per-sample zero slabs
    #             == conv3's (0,8) zero padding for free.
    x2_ref[0] = jnp.dot(y2, p4x2_ref[...],
                        preferred_element_type=jnp.float32).astype(x2_ref.dtype)
    slab = jnp.dot(y2, p4slab_ref[...],
                   preferred_element_type=jnp.float32)           # (C, ws) f32

    # conv3 depthwise (1,KD): KD-tap FMA over the whole block slab.
    w3d = w3d_ref[...]
    acc3 = w3d[:, 0:1] * slab[:, 0:v3]
    for k in range(1, kd):
        acc3 = acc3 + w3d[:, k:k + 1] * slab[:, k:k + v3]

    # Fused 1x1 pointwise conv (BN3 scale folded in) on the MXU, bias, ELU,
    # then AvgPool(1,8) as a block-diagonal 0.125-selector matmul.
    y4 = _elu(jnp.dot(wpw_ref[...], acc3.astype(wpw_ref.dtype),
                      preferred_element_type=jnp.float32) + b3_ref[...])  # (F2, v3)
    x3_ref[0] = jnp.dot(y4.astype(p8_ref.dtype), p8_ref[...],
                        preferred_element_type=jnp.float32).astype(x3_ref.dtype)


def eeg_block_forward(x, p, *, block_b=None, compute_dtype=jnp.bfloat16):
    """x: (N, 1, 22, T) float32 NCHW as in PyTorch.  Returns (x2, x3) in NCHW.

    compute_dtype is the MXU-operand dtype knob (bf16 default; pass jnp.float32
    for full-precision operands at ~3x MXU cost).
    """
    N, one, H, T = x.shape
    assert one == 1 and H == H_EEG, "expected (N, 1, 22, T) input"
    assert T % 4 == 0, "time axis must be divisible by the (1,4) avg-pool"
    T4 = T // 4
    NW3 = (T4 + 1) // 8
    assert NW3 >= 1, "T too small: AvgPool(1,8) output would be empty"
    TP = T + KE - 1            # per-sample 'same'-padded conv1 input length
    P2 = T4 + KD               # per-sample pool-4 slab width incl. conv3 (0,8) pad

    if block_b is None:
        # All samples in one grid step for small N: the grid is a serial loop on
        # single-TC v5e/v6e, so extra steps only pay ~0.35us/step overhead.  For
        # larger N use 8-sample blocks (block_b*T4 is 128-lane dense for T=128).
        # TODO(synk): on v7x (2 TensorCores) cap block_b at ceil(N/2) for N > 1
        # so the "parallel" grid axis feeds both cores.
        block_b = N if N <= 8 else 8
    G = -(-N // block_b)
    Np = G * block_b
    LN = block_b * TP          # batch folded into the lane (time) axis
    V1 = LN - KE + 1           # valid conv1 columns across the block
    WS = block_b * P2
    V3 = WS - KD + 1           # valid conv3 columns across the block

    # ---- fold the inference BatchNorms into the bias-free convs -------------
    s1 = p["gamma1"] / jnp.sqrt(p["var1"] + EPS)
    o1 = p["beta1"] - p["mean1"] * s1
    s2 = p["gamma2"] / jnp.sqrt(p["var2"] + EPS)
    o2 = p["beta2"] - p["mean2"] * s2
    s3 = p["gamma3"] / jnp.sqrt(p["var3"] + EPS)
    o3 = p["beta3"] - p["mean3"] * s3
    fc = jnp.arange(C) // D                                    # conv1 filter per channel

    wd_x = p["wd"].astype(compute_dtype)                       # (C, 22)  MXU operand
    w1c = (s2 * s1[fc])[:, None] * p["w1"][fc]                 # (C, KE)  f32 FMA weights
    bias2 = (s2 * o1[fc] * p["wd"].sum(axis=1) + o2)[:, None]  # (C, 1)
    w3d = p["w3d"].astype(jnp.float32)                         # (C, KD)  f32 FMA weights
    wpw_x = (p["wpw"] * s3[:, None]).astype(compute_dtype)     # (F2, C)  MXU operand
    bias3 = o3[:, None]                                        # (F2, 1)

    # ---- block-diagonal pool/pad selectors (0.25/0.125 exact in bf16) -------
    # Row r of the conv1-valid slab belongs to sample i = r // TP at local time
    # t = r % TP; rows with t >= T are inter-sample junk and map to no column.
    r1 = jnp.arange(V1)
    i1, t1 = r1 // TP, r1 % TP
    c_x2 = jnp.where(t1 < T, i1 * T4 + t1 // 4, -1)
    p4x2 = ((c_x2[:, None] == jnp.arange(block_b * T4)[None, :]) * 0.25
            ).astype(compute_dtype)                            # (V1, block_b*T4)
    c_sl = jnp.where(t1 < T, i1 * P2 + KD // 2 + t1 // 4, -1)
    p4slab = ((c_sl[:, None] == jnp.arange(WS)[None, :]) * 0.25
              ).astype(compute_dtype)                          # (V1, WS)
    r3 = jnp.arange(V3)
    i3, j3 = r3 // P2, r3 % P2
    c_x3 = jnp.where(j3 < 8 * NW3, i3 * NW3 + j3 // 8, -1)
    p8 = ((c_x3[:, None] == jnp.arange(block_b * NW3)[None, :]) * 0.125
          ).astype(compute_dtype)                              # (V3, block_b*NW3)

    # conv1 'same' padding for even KE: 15 left / 16 right; fold the batch into
    # the lane axis (each sample keeps its own KE-1 halo, so one FMA sweep over
    # the block never mixes neighbouring samples at valid output positions).
    xp = jnp.pad(x[:, 0], ((0, Np - N), (0, 0), (KE // 2 - 1, KE // 2)))
    xp = xp.reshape(G, block_b, H, TP).transpose(0, 2, 1, 3).reshape(G, H, LN)
    xp = xp.astype(compute_dtype)

    full = lambda a: pl.BlockSpec(a.shape, lambda g, _nd=a.ndim: (0,) * _nd)

    x2w, x3w = pl.pallas_call(
        eeg_kernel,
        out_shape=(jax.ShapeDtypeStruct((G, C, block_b * T4), jnp.float32),
                   jax.ShapeDtypeStruct((G, F2, block_b * NW3), jnp.float32)),
        grid=(G,),
        in_specs=[
            pl.BlockSpec((1, H, LN), lambda g: (g, 0, 0)),
            full(wd_x), full(w1c), full(bias2), full(w3d),
            full(wpw_x), full(bias3), full(p4x2), full(p4slab), full(p8),
        ],
        out_specs=(pl.BlockSpec((1, C, block_b * T4), lambda g: (g, 0, 0)),
                   pl.BlockSpec((1, F2, block_b * NW3), lambda g: (g, 0, 0))),
        compiler_params=pltpu.CompilerParams(dimension_semantics=("parallel",)),
    )(xp, wd_x, w1c, bias2, w3d, wpw_x, bias3, p4x2, p4slab, p8)

    # Batch-in-lanes slabs back to PyTorch NCHW (H collapsed to 1 by the (22,1)
    # depthwise conv) — pure layout plumbing on ~KB-sized outputs.
    x2 = x2w.reshape(G, C, block_b, T4).transpose(0, 2, 1, 3).reshape(Np, C, T4)[:N]
    x3 = x3w.reshape(G, F2, block_b, NW3).transpose(0, 2, 1, 3).reshape(Np, F2, NW3)[:N]
    return x2[:, :, None, :], x3[:, :, None, :]


def init_params(key):
    ks = jax.random.split(key, 16)
    n = lambda k, shape, s=0.2: s * jax.random.normal(k, shape, jnp.float32)
    return dict(
        w1=n(ks[0], (F1, KE)),                                   # Conv2d(1,F1,(1,KE))
        gamma1=1.0 + 0.1 * jax.random.normal(ks[1], (F1,), jnp.float32),
        beta1=n(ks[2], (F1,), 0.1),
        mean1=n(ks[3], (F1,), 0.1),
        var1=1.0 + 0.3 * jax.random.uniform(ks[4], (F1,), jnp.float32),
        wd=n(ks[5], (C, H_EEG)),                                 # depthwise (22,1)
        gamma2=1.0 + 0.1 * jax.random.normal(ks[6], (C,), jnp.float32),
        beta2=n(ks[7], (C,), 0.1),
        mean2=n(ks[8], (C,), 0.1),
        var2=1.0 + 0.3 * jax.random.uniform(ks[9], (C,), jnp.float32),
        w3d=n(ks[10], (C, KD)),                                  # depthwise (1,16)
        wpw=n(ks[11], (F2, C)),                                  # pointwise 1x1
        gamma3=1.0 + 0.1 * jax.random.normal(ks[12], (F2,), jnp.float32),
        beta3=n(ks[13], (F2,), 0.1),
        mean3=n(ks[14], (F2,), 0.1),
        var3=1.0 + 0.3 * jax.random.uniform(ks[15], (F2,), jnp.float32),
    )


def ref_forward_numpy(x, p):
    """Independent float64 NumPy reference of the PyTorch forward (eval mode)."""
    f64 = lambda a: np.asarray(a, np.float64)
    x = f64(x)
    N, _, H, T = x.shape
    w1, wd, w3d, wpw = f64(p["w1"]), f64(p["wd"]), f64(p["w3d"]), f64(p["wpw"])

    def bn(y, g, b, m, v, axis):
        shp = [1] * y.ndim
        shp[axis] = -1
        s = f64(g) / np.sqrt(f64(v) + EPS)
        return y * s.reshape(shp) + (f64(b) - f64(m) * s).reshape(shp)

    elu = lambda z: np.where(z > 0, z, np.expm1(z))

    # conv1 (cross-correlation, 'same' pad = 15 left / 16 right) + BN1
    xp = np.pad(x[:, 0], ((0, 0), (0, 0), (KE // 2 - 1, KE // 2)))
    y1 = np.zeros((N, F1, H, T))
    for k in range(KE):
        y1 += w1[None, :, k, None, None] * xp[:, None, :, k:k + T]
    y1 = bn(y1, p["gamma1"], p["beta1"], p["mean1"], p["var1"], 1)
    # depthwise (22,1), groups=F1, depth multiplier D
    y1g = y1[:, np.repeat(np.arange(F1), D)]                     # (N,C,22,T)
    y2 = np.einsum('ncht,ch->nct', y1g, wd)
    # conv2: BN -> ELU -> AvgPool(1,4) (Dropout = identity)
    y2 = elu(bn(y2, p["gamma2"], p["beta2"], p["mean2"], p["var2"], 1))
    x2 = y2.reshape(N, C, T // 4, 4).mean(-1)
    # conv3: depthwise (1,16) pad(0,8) -> 1x1 -> BN -> ELU -> AvgPool(1,8)
    T4 = T // 4
    W3 = T4 + 1
    xp3 = np.pad(x2, ((0, 0), (0, 0), (KD // 2, KD // 2)))
    y3 = np.zeros((N, C, W3))
    for k in range(KD):
        y3 += w3d[None, :, k, None] * xp3[:, :, k:k + W3]
    y4 = np.einsum('fc,ncw->nfw', wpw, y3)
    y4 = elu(bn(y4, p["gamma3"], p["beta3"], p["mean3"], p["var3"], 1))
    nw = W3 // 8
    x3 = y4[:, :, :nw * 8].reshape(N, F2, nw, 8).mean(-1)
    return x2[:, :, None, :], x3[:, :, None, :]


if __name__ == "__main__":
    key = jax.random.PRNGKey(0)
    kx, kp = jax.random.split(key)
    N, T = 2, 128                              # EEG input: (N, 1, 22, T)
    x = jax.random.normal(kx, (N, 1, H_EEG, T), jnp.float32)
    params = init_params(kp)

    fwd = jax.jit(eeg_block_forward)
    x2, x3 = fwd(x, params)
    jax.block_until_ready((x2, x3))

    assert x2.shape == (N, C, 1, T // 4)
    assert x3.shape == (N, F2, 1, (T // 4 + 1) // 8)

    r2, r3 = ref_forward_numpy(np.asarray(x),
                               {k: np.asarray(v) for k, v in params.items()})
    # bf16 MXU operands end-to-end -> ~3 significant digits.
    np.testing.assert_allclose(np.asarray(x2), r2, rtol=2e-2, atol=2e-2)
    np.testing.assert_allclose(np.asarray(x3), r3, rtol=2e-2, atol=2e-2)
    print("KERNEL_OK")
</pallas_src>

<mosaic_0001>
module attributes {stable_mosaic.version = 11 : i64} {
  func.func @eeg_kernel(%arg0: i32, %arg1: memref<1x22x318xbf16, #tpu.memory_space<vmem>>, %arg2: memref<16x22xbf16, #tpu.memory_space<vmem>>, %arg3: memref<16x32xf32, #tpu.memory_space<vmem>>, %arg4: memref<16x1xf32, #tpu.memory_space<vmem>>, %arg5: memref<16x16xf32, #tpu.memory_space<vmem>>, %arg6: memref<16x16xbf16, #tpu.memory_space<vmem>>, %arg7: memref<16x1xf32, #tpu.memory_space<vmem>>, %arg8: memref<287x64xbf16, #tpu.memory_space<vmem>>, %arg9: memref<287x96xbf16, #tpu.memory_space<vmem>>, %arg10: memref<81x8xbf16, #tpu.memory_space<vmem>>, %arg11: memref<1x16x64xf32, #tpu.memory_space<vmem>>, %arg12: memref<1x16x8xf32, #tpu.memory_space<vmem>>) attributes {dimension_semantics = [#tpu.dimension_semantics<parallel>], iteration_bounds = array<i64: 1>, scalar_prefetch = 0 : i64, scratch_operands = 0 : i64, tpu.core_type = #tpu.core_type<tc>, window_params = [{transform_indices = @transform_0, window_bounds = array<i64: 1, 22, 318>}, {pipeline_mode = #tpu.pipeline_mode<synchronous>, transform_indices = @transform_1, window_bounds = array<i64: 16, 22>}, {pipeline_mode = #tpu.pipeline_mode<synchronous>, transform_indices = @transform_2, window_bounds = array<i64: 16, 32>}, {pipeline_mode = #tpu.pipeline_mode<synchronous>, transform_indices = @transform_3, window_bounds = array<i64: 16, 1>}, {pipeline_mode = #tpu.pipeline_mode<synchronous>, transform_indices = @transform_4, window_bounds = array<i64: 16, 16>}, {pipeline_mode = #tpu.pipeline_mode<synchronous>, transform_indices = @transform_5, window_bounds = array<i64: 16, 16>}, {pipeline_mode = #tpu.pipeline_mode<synchronous>, transform_indices = @transform_6, window_bounds = array<i64: 16, 1>}, {pipeline_mode = #tpu.pipeline_mode<synchronous>, transform_indices = @transform_7, window_bounds = array<i64: 287, 64>}, {pipeline_mode = #tpu.pipeline_mode<synchronous>, transform_indices = @transform_8, window_bounds = array<i64: 287, 96>}, {pipeline_mode = #tpu.pipeline_mode<synchronous>, transform_indices = @transform_9, window_bounds = array<i64: 81, 8>}, {transform_indices = @transform_10, window_bounds = array<i64: 1, 16, 64>}, {transform_indices = @transform_11, window_bounds = array<i64: 1, 16, 8>}]} {
    %c0 = arith.constant 0 : index
    %c0_0 = arith.constant 0 : index
    %0 = vector.load %arg2[%c0, %c0_0] : memref<16x22xbf16, #tpu.memory_space<vmem>>, vector<16x22xbf16>
    %c0_1 = arith.constant 0 : index
    %c0_2 = arith.constant 0 : index
    %c0_3 = arith.constant 0 : index
    %1 = vector.load %arg1[%c0_1, %c0_2, %c0_3] : memref<1x22x318xbf16, #tpu.memory_space<vmem>>, vector<1x22x318xbf16>
    %2 = vector.shape_cast %1 : vector<1x22x318xbf16> to vector<22x318xbf16>
    %cst = arith.constant dense<0.000000e+00> : vector<16x318xf32>
    %3 = tpu.matmul %0, %2, %cst {dimension_numbers = #tpu.dot_dimension_numbers<[1], [0], [0], [1], [0, 0, 1, 1], [], []>} : vector<16x22xbf16>, vector<22x318xbf16>, vector<16x318xf32> -> vector<16x318xf32>
    %c0_4 = arith.constant 0 : index
    %c0_5 = arith.constant 0 : index
    %4 = vector.load %arg3[%c0_4, %c0_5] : memref<16x32xf32, #tpu.memory_space<vmem>>, vector<16x32xf32>
    %5 = vector.extract_strided_slice %4 {offsets = [0, 0], sizes = [16, 1], strides = [1, 1]} : vector<16x32xf32> to vector<16x1xf32>
    %6 = vector.extract_strided_slice %3 {offsets = [0, 0], sizes = [16, 287], strides = [1, 1]} : vector<16x318xf32> to vector<16x287xf32>
    %7 = vector.broadcast %5 : vector<16x1xf32> to vector<16x287xf32>
    %8 = arith.mulf %7, %6 : vector<16x287xf32>
    %9 = vector.extract_strided_slice %4 {offsets = [0, 1], sizes = [16, 1], strides = [1, 1]} : vector<16x32xf32> to vector<16x1xf32>
    %10 = vector.extract_strided_slice %3 {offsets = [0, 1], sizes = [16, 287], strides = [1, 1]} : vector<16x318xf32> to vector<16x287xf32>
    %11 = vector.broadcast %9 : vector<16x1xf32> to vector<16x287xf32>
    %12 = arith.mulf %11, %10 : vector<16x287xf32>
    %13 = arith.addf %8, %12 : vector<16x287xf32>
    %14 = vector.extract_strided_slice %4 {offsets = [0, 2], sizes = [16, 1], strides = [1, 1]} : vector<16x32xf32> to vector<16x1xf32>
    %15 = vector.extract_strided_slice %3 {offsets = [0, 2], sizes = [16, 287], strides = [1, 1]} : vector<16x318xf32> to vector<16x287xf32>
    %16 = vector.broadcast %14 : vector<16x1xf32> to vector<16x287xf32>
    %17 = arith.mulf %16, %15 : vector<16x287xf32>
    %18 = arith.addf %13, %17 : vector<16x287xf32>
    %19 = vector.extract_strided_slice %4 {offsets = [0, 3], sizes = [16, 1], strides = [1, 1]} : vector<16x32xf32> to vector<16x1xf32>
    %20 = vector.extract_strided_slice %3 {offsets = [0, 3], sizes = [16, 287], strides = [1, 1]} : vector<16x318xf32> to vector<16x287xf32>
    %21 = vector.broadcast %19 : vector<16x1xf32> to vector<16x287xf32>
    %22 = arith.mulf %21, %20 : vector<16x287xf32>
    %23 = arith.addf %18, %22 : vector<16x287xf32>
    %24 = vector.extract_strided_slice %4 {offsets = [0, 4], sizes = [16, 1], strides = [1, 1]} : vector<16x32xf32> to vector<16x1xf32>
    %25 = vector.extract_strided_slice %3 {offsets = [0, 4], sizes = [16, 287], strides = [1, 1]} : vector<16x318xf32> to vector<16x287xf32>
    %26 = vector.broadcast %24 : vector<16x1xf32> to vector<16x287xf32>
    %27 = arith.mulf %26, %25 : vector<16x287xf32>
    %28 = arith.addf %23, %27 : vector<16x287xf32>
    %29 = vector.extract_strided_slice %4 {offsets = [0, 5], sizes = [16, 1], strides = [1, 1]} : vector<16x32xf32> to vector<16x1xf32>
    %30 = vector.extract_strided_slice %3 {offsets = [0, 5], sizes = [16, 287], strides = [1, 1]} : vector<16x318xf32> to vector<16x287xf32>
    %31 = vector.broadcast %29 : vector<16x1xf32> to vector<16x287xf32>
    %32 = arith.mulf %31, %30 : vector<16x287xf32>
    %33 = arith.addf %28, %32 : vector<16x287xf32>
    %34 = vector.extract_strided_slice %4 {offsets = [0, 6], sizes = [16, 1], strides = [1, 1]} : vector<16x32xf32> to vector<16x1xf32>
    %35 = vector.extract_strided_slice %3 {offsets = [0, 6], sizes = [16, 287], strides = [1, 1]} : vector<16x318xf32> to vector<16x287xf32>
    %36 = vector.broadcast %34 : vector<16x1xf32> to vector<16x287xf32>
    %37 = arith.mulf %36, %35 : vector<16x287xf32>
    %38 = arith.addf %33, %37 : vector<16x287xf32>
    %39 = vector.extract_strided_slice %4 {offsets = [0, 7], sizes = [16, 1], strides = [1, 1]} : vector<16x32xf32> to vector<16x1xf32>
    %40 = vector.extract_strided_slice %3 {offsets = [0, 7], sizes = [16, 287], strides = [1, 1]} : vector<16x318xf32> to vector<16x287xf32>
    %41 = vector.broadcast %39 : vector<16x1xf32> to vector<16x287xf32>
    %42 = arith.mulf %41, %40 : vector<16x287xf32>
    %43 = arith.addf %38, %42 : vector<16x287xf32>
    %44 = vector.extract_strided_slice %4 {offsets = [0, 8], sizes = [16, 1], strides = [1, 1]} : vector<16x32xf32> to vector<16x1xf32>
    %45 = vector.extract_strided_slice %3 {offsets = [0, 8], sizes = [16, 287], strides = [1, 1]} : vector<16x318xf32> to vector<16x287xf32>
    %46 = vector.broadcast %44 : vector<16x1xf32> to vector<16x287xf32>
    %47 = arith.mulf %46, %45 : vector<16x287xf32>
    %48 = arith.addf %43, %47 : vector<16x287xf32>
    %49 = vector.extract_strided_slice %4 {offsets = [0, 9], sizes = [16, 1], strides = [1, 1]} : vector<16x32xf32> to vector<16x1xf32>
    %50 = vector.extract_strided_slice %3 {offsets = [0, 9], sizes = [16, 287], strides = [1, 1]} : vector<16x318xf32> to vector<16x287xf32>
    %51 = vector.broadcast %49 : vector<16x1xf32> to vector<16x287xf32>
    %52 = arith.mulf %51, %50 : vector<16x287xf32>
    %53 = arith.addf %48, %52 : vector<16x287xf32>
    %54 = vector.extract_strided_slice %4 {offsets = [0, 10], sizes = [16, 1], strides = [1, 1]} : vector<16x32xf32> to vector<16x1xf32>
    %55 = vector.extract_strided_slice %3 {offsets = [0, 10], sizes = [16, 287], strides = [1, 1]} : vector<16x318xf32> to vector<16x287xf32>
    %56 = vector.broadcast %54 : vector<16x1xf32> to vector<16x287xf32>
    %57 = arith.mulf %56, %55 : vector<16x287xf32>
    %58 = arith.addf %53, %57 : vector<16x287xf32>
    %59 = vector.extract_strided_slice %4 {offsets = [0, 11], sizes = [16, 1], strides = [1, 1]} : vector<16x32xf32> to vector<16x1xf32>
    %60 = vector.extract_strided_slice %3 {offsets = [0, 11], sizes = [16, 287], strides = [1, 1]} : vector<16x318xf32> to vector<16x287xf32>
    %61 = vector.broadcast %59 : vector<16x1xf32> to vector<16x287xf32>
    %62 = arith.mulf %61, %60 : vector<16x287xf32>
    %63 = arith.addf %58, %62 : vector<16x287xf32>
    %64 = vector.extract_strided_slice %4 {offsets = [0, 12], sizes = [16, 1], strides = [1, 1]} : vector<16x32xf32> to vector<16x1xf32>
    %65 = vector.extract_strided_slice %3 {offsets = [0, 12], sizes = [16, 287], strides = [1, 1]} : vector<16x318xf32> to vector<16x287xf32>
    %66 = vector.broadcast %64 : vector<16x1xf32> to vector<16x287xf32>
    %67 = arith.mulf %66, %65 : vector<16x287xf32>
    %68 = arith.addf %63, %67 : vector<16x287xf32>
    %69 = vector.extract_strided_slice %4 {offsets = [0, 13], sizes = [16, 1], strides = [1, 1]} : vector<16x32xf32> to vector<16x1xf32>
    %70 = vector.extract_strided_slice %3 {offsets = [0, 13], sizes = [16, 287], strides = [1, 1]} : vector<16x318xf32> to vector<16x287xf32>
    %71 = vector.broadcast %69 : vector<16x1xf32> to vector<16x287xf32>
    %72 = arith.mulf %71, %70 : vector<16x287xf32>
    %73 = arith.addf %68, %72 : vector<16x287xf32>
    %74 = vector.extract_strided_slice %4 {offsets = [0, 14], sizes = [16, 1], strides = [1, 1]} : vector<16x32xf32> to vector<16x1xf32>
    %75 = vector.extract_strided_slice %3 {offsets = [0, 14], sizes = [16, 287], strides = [1, 1]} : vector<16x318xf32> to vector<16x287xf32>
    %76 = vector.broadcast %74 : vector<16x1xf32> to vector<16x287xf32>
    %77 = arith.mulf %76, %75 : vector<16x287xf32>
    %78 = arith.addf %73, %77 : vector<16x287xf32>
    %79 = vector.extract_strided_slice %4 {offsets = [0, 15], sizes = [16, 1], strides = [1, 1]} : vector<16x32xf32> to vector<16x1xf32>
    %80 = vector.extract_strided_slice %3 {offsets = [0, 15], sizes = [16, 287], strides = [1, 1]} : vector<16x318xf32> to vector<16x287xf32>
    %81 = vector.broadcast %79 : vector<16x1xf32> to vector<16x287xf32>
    %82 = arith.mulf %81, %80 : vector<16x287xf32>
    %83 = arith.addf %78, %82 : vector<16x287xf32>
    %84 = vector.extract_strided_slice %4 {offsets = [0, 16], sizes = [16, 1], strides = [1, 1]} : vector<16x32xf32> to vector<16x1xf32>
    %85 = vector.extract_strided_slice %3 {offsets = [0, 16], sizes = [16, 287], strides = [1, 1]} : vector<16x318xf32> to vector<16x287xf32>
    %86 = vector.broadcast %84 : vector<16x1xf32> to vector<16x287xf32>
    %87 = arith.mulf %86, %85 : vector<16x287xf32>
    %88 = arith.addf %83, %87 : vector<16x287xf32>
    %89 = vector.extract_strided_slice %4 {offsets = [0, 17], sizes = [16, 1], strides = [1, 1]} : vector<16x32xf32> to vector<16x1xf32>
    %90 = vector.extract_strided_slice %3 {offsets = [0, 17], sizes = [16, 287], strides = [1, 1]} : vector<16x318xf32> to vector<16x287xf32>
    %91 = vector.broadcast %89 : vector<16x1xf32> to vector<16x287xf32>
    %92 = arith.mulf %91, %90 : vector<16x287xf32>
    %93 = arith.addf %88, %92 : vector<16x287xf32>
    %94 = vector.extract_strided_slice %4 {offsets = [0, 18], sizes = [16, 1], strides = [1, 1]} : vector<16x32xf32> to vector<16x1xf32>
    %95 = vector.extract_strided_slice %3 {offsets = [0, 18], sizes = [16, 287], strides = [1, 1]} : vector<16x318xf32> to vector<16x287xf32>
    %96 = vector.broadcast %94 : vector<16x1xf32> to vector<16x287xf32>
    %97 = arith.mulf %96, %95 : vector<16x287xf32>
    %98 = arith.addf %93, %97 : vector<16x287xf32>
    %99 = vector.extract_strided_slice %4 {offsets = [0, 19], sizes = [16, 1], strides = [1, 1]} : vector<16x32xf32> to vector<16x1xf32>
    %100 = vector.extract_strided_slice %3 {offsets = [0, 19], sizes = [16, 287], strides = [1, 1]} : vector<16x318xf32> to vector<16x287xf32>
    %101 = vector.broadcast %99 : vector<16x1xf32> to vector<16x287xf32>
    %102 = arith.mulf %101, %100 : vector<16x287xf32>
    %103 = arith.addf %98, %102 : vector<16x287xf32>
    %104 = vector.extract_strided_slice %4 {offsets = [0, 20], sizes = [16, 1], strides = [1, 1]} : vector<16x32xf32> to vector<16x1xf32>
    %105 = vector.extract_strided_slice %3 {offsets = [0, 20], sizes = [16, 287], strides = [1, 1]} : vector<16x318xf32> to vector<16x287xf32>
    %106 = vector.broadcast %104 : vector<16x1xf32> to vector<16x287xf32>
    %107 = arith.mulf %106, %105 : vector<16x287xf32>
    %108 = arith.addf %103, %107 : vector<16x287xf32>
    %109 = vector.extract_strided_slice %4 {offsets = [0, 21], sizes = [16, 1], strides = [1, 1]} : vector<16x32xf32> to vector<16x1xf32>
    %110 = vector.extract_strided_slice %3 {offsets = [0, 21], sizes = [16, 287], strides = [1, 1]} : vector<16x318xf32> to vector<16x287xf32>
    %111 = vector.broadcast %109 : vector<16x1xf32> to vector<16x287xf32>
    %112 = arith.mulf %111, %110 : vector<16x287xf32>
    %113 = arith.addf %108, %112 : vector<16x287xf32>
    %114 = vector.extract_strided_slice %4 {offsets = [0, 22], sizes = [16, 1], strides = [1, 1]} : vector<16x32xf32> to vector<16x1xf32>
    %115 = vector.extract_strided_slice %3 {offsets = [0, 22], sizes = [16, 287], strides = [1, 1]} : vector<16x318xf32> to vector<16x287xf32>
    %116 = vector.broadcast %114 : vector<16x1xf32> to vector<16x287xf32>
    %117 = arith.mulf %116, %115 : vector<16x287xf32>
    %118 = arith.addf %113, %117 : vector<16x287xf32>
    %119 = vector.extract_strided_slice %4 {offsets = [0, 23], sizes = [16, 1], strides = [1, 1]} : vector<16x32xf32> to vector<16x1xf32>
    %120 = vector.extract_strided_slice %3 {offsets = [0, 23], sizes = [16, 287], strides = [1, 1]} : vector<16x318xf32> to vector<16x287xf32>
    %121 = vector.broadcast %119 : vector<16x1xf32> to vector<16x287xf32>
    %122 = arith.mulf %121, %120 : vector<16x287xf32>
    %123 = arith.addf %118, %122 : vector<16x287xf32>
    %124 = vector.extract_strided_slice %4 {offsets = [0, 24], sizes = [16, 1], strides = [1, 1]} : vector<16x32xf32> to vector<16x1xf32>
    %125 = vector.extract_strided_slice %3 {offsets = [0, 24], sizes = [16, 287], strides = [1, 1]} : vector<16x318xf32> to vector<16x287xf32>
    %126 = vector.broadcast %124 : vector<16x1xf32> to vector<16x287xf32>
    %127 = arith.mulf %126, %125 : vector<16x287xf32>
    %128 = arith.addf %123, %127 : vector<16x287xf32>
    %129 = vector.extract_strided_slice %4 {offsets = [0, 25], sizes = [16, 1], strides = [1, 1]} : vector<16x32xf32> to vector<16x1xf32>
    %130 = vector.extract_strided_slice %3 {offsets = [0, 25], sizes = [16, 287], strides = [1, 1]} : vector<16x318xf32> to vector<16x287xf32>
    %131 = vector.broadcast %129 : vector<16x1xf32> to vector<16x287xf32>
    %132 = arith.mulf %131, %130 : vector<16x287xf32>
    %133 = arith.addf %128, %132 : vector<16x287xf32>
    %134 = vector.extract_strided_slice %4 {offsets = [0, 26], sizes = [16, 1], strides = [1, 1]} : vector<16x32xf32> to vector<16x1xf32>
    %135 = vector.extract_strided_slice %3 {offsets = [0, 26], sizes = [16, 287], strides = [1, 1]} : vector<16x318xf32> to vector<16x287xf32>
    %136 = vector.broadcast %134 : vector<16x1xf32> to vector<16x287xf32>
    %137 = arith.mulf %136, %135 : vector<16x287xf32>
    %138 = arith.addf %133, %137 : vector<16x287xf32>
    %139 = vector.extract_strided_slice %4 {offsets = [0, 27], sizes = [16, 1], strides = [1, 1]} : vector<16x32xf32> to vector<16x1xf32>
    %140 = vector.extract_strided_slice %3 {offsets = [0, 27], sizes = [16, 287], strides = [1, 1]} : vector<16x318xf32> to vector<16x287xf32>
    %141 = vector.broadcast %139 : vector<16x1xf32> to vector<16x287xf32>
    %142 = arith.mulf %141, %140 : vector<16x287xf32>
    %143 = arith.addf %138, %142 : vector<16x287xf32>
    %144 = vector.extract_strided_slice %4 {offsets = [0, 28], sizes = [16, 1], strides = [1, 1]} : vector<16x32xf32> to vector<16x1xf32>
    %145 = vector.extract_strided_slice %3 {offsets = [0, 28], sizes = [16, 287], strides = [1, 1]} : vector<16x318xf32> to vector<16x287xf32>
    %146 = vector.broadcast %144 : vector<16x1xf32> to vector<16x287xf32>
    %147 = arith.mulf %146, %145 : vector<16x287xf32>
    %148 = arith.addf %143, %147 : vector<16x287xf32>
    %149 = vector.extract_strided_slice %4 {offsets = [0, 29], sizes = [16, 1], strides = [1, 1]} : vector<16x32xf32> to vector<16x1xf32>
    %150 = vector.extract_strided_slice %3 {offsets = [0, 29], sizes = [16, 287], strides = [1, 1]} : vector<16x318xf32> to vector<16x287xf32>
    %151 = vector.broadcast %149 : vector<16x1xf32> to vector<16x287xf32>
    %152 = arith.mulf %151, %150 : vector<16x287xf32>
    %153 = arith.addf %148, %152 : vector<16x287xf32>
    %154 = vector.extract_strided_slice %4 {offsets = [0, 30], sizes = [16, 1], strides = [1, 1]} : vector<16x32xf32> to vector<16x1xf32>
    %155 = vector.extract_strided_slice %3 {offsets = [0, 30], sizes = [16, 287], strides = [1, 1]} : vector<16x318xf32> to vector<16x287xf32>
    %156 = vector.broadcast %154 : vector<16x1xf32> to vector<16x287xf32>
    %157 = arith.mulf %156, %155 : vector<16x287xf32>
    %158 = arith.addf %153, %157 : vector<16x287xf32>
    %159 = vector.extract_strided_slice %4 {offsets = [0, 31], sizes = [16, 1], strides = [1, 1]} : vector<16x32xf32> to vector<16x1xf32>
    %160 = vector.extract_strided_slice %3 {offsets = [0, 31], sizes = [16, 287], strides = [1, 1]} : vector<16x318xf32> to vector<16x287xf32>
    %161 = vector.broadcast %159 : vector<16x1xf32> to vector<16x287xf32>
    %162 = arith.mulf %161, %160 : vector<16x287xf32>
    %163 = arith.addf %158, %162 : vector<16x287xf32>
    %c0_6 = arith.constant 0 : index
    %c0_7 = arith.constant 0 : index
    %164 = vector.load %arg4[%c0_6, %c0_7] : memref<16x1xf32, #tpu.memory_space<vmem>>, vector<16x1xf32>
    %165 = vector.broadcast %164 : vector<16x1xf32> to vector<16x287xf32>
    %166 = arith.addf %163, %165 : vector<16x287xf32>
    %cst_8 = arith.constant 0.000000e+00 : f32
    %167 = vector.broadcast %cst_8 : f32 to vector<16x287xf32>
    %168 = arith.cmpf ogt, %166, %167 : vector<16x287xf32>
    %169 = math.exp %166 : vector<16x287xf32>
    %cst_9 = arith.constant 1.000000e+00 : f32
    %170 = vector.broadcast %cst_9 : f32 to vector<16x287xf32>
    %171 = arith.subf %169, %170 : vector<16x287xf32>
    %172 = arith.select %168, %166, %171 : vector<16x287xi1>, vector<16x287xf32>
    %173 = arith.truncf %172 : vector<16x287xf32> to vector<16x287xbf16>
    %c0_10 = arith.constant 0 : index
    %c0_11 = arith.constant 0 : index
    %174 = vector.load %arg8[%c0_10, %c0_11] : memref<287x64xbf16, #tpu.memory_space<vmem>>, vector<287x64xbf16>
    %cst_12 = arith.constant dense<0.000000e+00> : vector<16x64xf32>
    %175 = tpu.matmul %173, %174, %cst_12 {dimension_numbers = #tpu.dot_dimension_numbers<[1], [0], [0], [1], [0, 0, 1, 1], [], []>} : vector<16x287xbf16>, vector<287x64xbf16>, vector<16x64xf32> -> vector<16x64xf32>
    %c0_13 = arith.constant 0 : index
    %c0_14 = arith.constant 0 : index
    %c0_15 = arith.constant 0 : index
    %176 = vector.load %arg11[%c0_13, %c0_14, %c0_15] : memref<1x16x64xf32, #tpu.memory_space<vmem>>, vector<1x16x64xf32>
    %177 = vector.shape_cast %176 : vector<1x16x64xf32> to vector<16x64xf32>
    %178 = vector.shape_cast %175 : vector<16x64xf32> to vector<1x16x64xf32>
    tpu.vector_store %arg11[%c0_13, %c0_14, %c0_15], %178 {strides = array<i32>} : memref<1x16x64xf32, #tpu.memory_space<vmem>>, vector<1x16x64xf32>,
    %c0_16 = arith.constant 0 : index
    %c0_17 = arith.constant 0 : index
    %179 = vector.load %arg9[%c0_16, %c0_17] : memref<287x96xbf16, #tpu.memory_space<vmem>>, vector<287x96xbf16>
    %cst_18 = arith.constant dense<0.000000e+00> : vector<16x96xf32>
    %180 = tpu.matmul %173, %179, %cst_18 {dimension_numbers = #tpu.dot_dimension_numbers<[1], [0], [0], [1], [0, 0, 1, 1], [], []>} : vector<16x287xbf16>, vector<287x96xbf16>, vector<16x96xf32> -> vector<16x96xf32>
    %c0_19 = arith.constant 0 : index
    %c0_20 = arith.constant 0 : index
    %181 = vector.load %arg5[%c0_19, %c0_20] : memref<16x16xf32, #tpu.memory_space<vmem>>, vector<16x16xf32>
    %182 = vector.extract_strided_slice %181 {offsets = [0, 0], sizes = [16, 1], strides = [1, 1]} : vector<16x16xf32> to vector<16x1xf32>
    %183 = vector.extract_strided_slice %180 {offsets = [0, 0], sizes = [16, 81], strides = [1, 1]} : vector<16x96xf32> to vector<16x81xf32>
    %184 = vector.broadcast %182 : vector<16x1xf32> to vector<16x81xf32>
    %185 = arith.mulf %184, %183 : vector<16x81xf32>
    %186 = vector.extract_strided_slice %181 {offsets = [0, 1], sizes = [16, 1], strides = [1, 1]} : vector<16x16xf32> to vector<16x1xf32>
    %187 = vector.extract_strided_slice %180 {offsets = [0, 1], sizes = [16, 81], strides = [1, 1]} : vector<16x96xf32> to vector<16x81xf32>
    %188 = vector.broadcast %186 : vector<16x1xf32> to vector<16x81xf32>
    %189 = arith.mulf %188, %187 : vector<16x81xf32>
    %190 = arith.addf %185, %189 : vector<16x81xf32>
    %191 = vector.extract_strided_slice %181 {offsets = [0, 2], sizes = [16, 1], strides = [1, 1]} : vector<16x16xf32> to vector<16x1xf32>
    %192 = vector.extract_strided_slice %180 {offsets = [0, 2], sizes = [16, 81], strides = [1, 1]} : vector<16x96xf32> to vector<16x81xf32>
    %193 = vector.broadcast %191 : vector<16x1xf32> to vector<16x81xf32>
    %194 = arith.mulf %193, %192 : vector<16x81xf32>
    %195 = arith.addf %190, %194 : vector<16x81xf32>
    %196 = vector.extract_strided_slice %181 {offsets = [0, 3], sizes = [16, 1], strides = [1, 1]} : vector<16x16xf32> to vector<16x1xf32>
    %197 = vector.extract_strided_slice %180 {offsets = [0, 3], sizes = [16, 81], strides = [1, 1]} : vector<16x96xf32> to vector<16x81xf32>
    %198 = vector.broadcast %196 : vector<16x1xf32> to vector<16x81xf32>
    %199 = arith.mulf %198, %197 : vector<16x81xf32>
    %200 = arith.addf %195, %199 : vector<16x81xf32>
    %201 = vector.extract_strided_slice %181 {offsets = [0, 4], sizes = [16, 1], strides = [1, 1]} : vector<16x16xf32> to vector<16x1xf32>
    %202 = vector.extract_strided_slice %180 {offsets = [0, 4], sizes = [16, 81], strides = [1, 1]} : vector<16x96xf32> to vector<16x81xf32>
    %203 = vector.broadcast %201 : vector<16x1xf32> to vector<16x81xf32>
    %204 = arith.mulf %203, %202 : vector<16x81xf32>
    %205 = arith.addf %200, %204 : vector<16x81xf32>
    %206 = vector.extract_strided_slice %181 {offsets = [0, 5], sizes = [16, 1], strides = [1, 1]} : vector<16x16xf32> to vector<16x1xf32>
    %207 = vector.extract_strided_slice %180 {offsets = [0, 5], sizes = [16, 81], strides = [1, 1]} : vector<16x96xf32> to vector<16x81xf32>
    %208 = vector.broadcast %206 : vector<16x1xf32> to vector<16x81xf32>
    %209 = arith.mulf %208, %207 : vector<16x81xf32>
    %210 = arith.addf %205, %209 : vector<16x81xf32>
    %211 = vector.extract_strided_slice %181 {offsets = [0, 6], sizes = [16, 1], strides = [1, 1]} : vector<16x16xf32> to vector<16x1xf32>
    %212 = vector.extract_strided_slice %180 {offsets = [0, 6], sizes = [16, 81], strides = [1, 1]} : vector<16x96xf32> to vector<16x81xf32>
    %213 = vector.broadcast %211 : vector<16x1xf32> to vector<16x81xf32>
    %214 = arith.mulf %213, %212 : vector<16x81xf32>
    %215 = arith.addf %210, %214 : vector<16x81xf32>
    %216 = vector.extract_strided_slice %181 {offsets = [0, 7], sizes = [16, 1], strides = [1, 1]} : vector<16x16xf32> to vector<16x1xf32>
    %217 = vector.extract_strided_slice %180 {offsets = [0, 7], sizes = [16, 81], strides = [1, 1]} : vector<16x96xf32> to vector<16x81xf32>
    %218 = vector.broadcast %216 : vector<16x1xf32> to vector<16x81xf32>
    %219 = arith.mulf %218, %217 : vector<16x81xf32>
    %220 = arith.addf %215, %219 : vector<16x81xf32>
    %221 = vector.extract_strided_slice %181 {offsets = [0, 8], sizes = [16, 1], strides = [1, 1]} : vector<16x16xf32> to vector<16x1xf32>
    %222 = vector.extract_strided_slice %180 {offsets = [0, 8], sizes = [16, 81], strides = [1, 1]} : vector<16x96xf32> to vector<16x81xf32>
    %223 = vector.broadcast %221 : vector<16x1xf32> to vector<16x81xf32>
    %224 = arith.mulf %223, %222 : vector<16x81xf32>
    %225 = arith.addf %220, %224 : vector<16x81xf32>
    %226 = vector.extract_strided_slice %181 {offsets = [0, 9], sizes = [16, 1], strides = [1, 1]} : vector<16x16xf32> to vector<16x1xf32>
    %227 = vector.extract_strided_slice %180 {offsets = [0, 9], sizes = [16, 81], strides = [1, 1]} : vector<16x96xf32> to vector<16x81xf32>
    %228 = vector.broadcast %226 : vector<16x1xf32> to vector<16x81xf32>
    %229 = arith.mulf %228, %227 : vector<16x81xf32>
    %230 = arith.addf %225, %229 : vector<16x81xf32>
    %231 = vector.extract_strided_slice %181 {offsets = [0, 10], sizes = [16, 1], strides = [1, 1]} : vector<16x16xf32> to vector<16x1xf32>
    %232 = vector.extract_strided_slice %180 {offsets = [0, 10], sizes = [16, 81], strides = [1, 1]} : vector<16x96xf32> to vector<16x81xf32>
    %233 = vector.broadcast %231 : vector<16x1xf32> to vector<16x81xf32>
    %234 = arith.mulf %233, %232 : vector<16x81xf32>
    %235 = arith.addf %230, %234 : vector<16x81xf32>
    %236 = vector.extract_strided_slice %181 {offsets = [0, 11], sizes = [16, 1], strides = [1, 1]} : vector<16x16xf32> to vector<16x1xf32>
    %237 = vector.extract_strided_slice %180 {offsets = [0, 11], sizes = [16, 81], strides = [1, 1]} : vector<16x96xf32> to vector<16x81xf32>
    %238 = vector.broadcast %236 : vector<16x1xf32> to vector<16x81xf32>
    %239 = arith.mulf %238, %237 : vector<16x81xf32>
    %240 = arith.addf %235, %239 : vector<16x81xf32>
    %241 = vector.extract_strided_slice %181 {offsets = [0, 12], sizes = [16, 1], strides = [1, 1]} : vector<16x16xf32> to vector<16x1xf32>
    %242 = vector.extract_strided_slice %180 {offsets = [0, 12], sizes = [16, 81], strides = [1, 1]} : vector<16x96xf32> to vector<16x81xf32>
    %243 = vector.broadcast %241 : vector<16x1xf32> to vector<16x81xf32>
    %244 = arith.mulf %243, %242 : vector<16x81xf32>
    %245 = arith.addf %240, %244 : vector<16x81xf32>
    %246 = vector.extract_strided_slice %181 {offsets = [0, 13], sizes = [16, 1], strides = [1, 1]} : vector<16x16xf32> to vector<16x1xf32>
    %247 = vector.extract_strided_slice %180 {offsets = [0, 13], sizes = [16, 81], strides = [1, 1]} : vector<16x96xf32> to vector<16x81xf32>
    %248 = vector.broadcast %246 : vector<16x1xf32> to vector<16x81xf32>
    %249 = arith.mulf %248, %247 : vector<16x81xf32>
    %250 = arith.addf %245, %249 : vector<16x81xf32>
    %251 = vector.extract_strided_slice %181 {offsets = [0, 14], sizes = [16, 1], strides = [1, 1]} : vector<16x16xf32> to vector<16x1xf32>
    %252 = vector.extract_strided_slice %180 {offsets = [0, 14], sizes = [16, 81], strides = [1, 1]} : vector<16x96xf32> to vector<16x81xf32>
    %253 = vector.broadcast %251 : vector<16x1xf32> to vector<16x81xf32>
    %254 = arith.mulf %253, %252 : vector<16x81xf32>
    %255 = arith.addf %250, %254 : vector<16x81xf32>
    %256 = vector.extract_strided_slice %181 {offsets = [0, 15], sizes = [16, 1], strides = [1, 1]} : vector<16x16xf32> to vector<16x1xf32>
    %257 = vector.extract_strided_slice %180 {offsets = [0, 15], sizes = [16, 81], strides = [1, 1]} : vector<16x96xf32> to vector<16x81xf32>
    %258 = vector.broadcast %256 : vector<16x1xf32> to vector<16x81xf32>
    %259 = arith.mulf %258, %257 : vector<16x81xf32>
    %260 = arith.addf %255, %259 : vector<16x81xf32>
    %c0_21 = arith.constant 0 : index
    %c0_22 = arith.constant 0 : index
    %261 = vector.load %arg6[%c0_21, %c0_22] : memref<16x16xbf16, #tpu.memory_space<vmem>>, vector<16x16xbf16>
    %262 = arith.truncf %260 : vector<16x81xf32> to vector<16x81xbf16>
    %cst_23 = arith.constant dense<0.000000e+00> : vector<16x81xf32>
    %263 = tpu.matmul %261, %262, %cst_23 {dimension_numbers = #tpu.dot_dimension_numbers<[1], [0], [0], [1], [0, 0, 1, 1], [], []>} : vector<16x16xbf16>, vector<16x81xbf16>, vector<16x81xf32> -> vector<16x81xf32>
    %c0_24 = arith.constant 0 : index
    %c0_25 = arith.constant 0 : index
    %264 = vector.load %arg7[%c0_24, %c0_25] : memref<16x1xf32, #tpu.memory_space<vmem>>, vector<16x1xf32>
    %265 = vector.broadcast %264 : vector<16x1xf32> to vector<16x81xf32>
    %266 = arith.addf %263, %265 : vector<16x81xf32>
    %cst_26 = arith.constant 0.000000e+00 : f32
    %267 = vector.broadcast %cst_26 : f32 to vector<16x81xf32>
    %268 = arith.cmpf ogt, %266, %267 : vector<16x81xf32>
    %269 = math.exp %266 : vector<16x81xf32>
    %cst_27 = arith.constant 1.000000e+00 : f32
    %270 = vector.broadcast %cst_27 : f32 to vector<16x81xf32>
    %271 = arith.subf %269, %270 : vector<16x81xf32>
    %272 = arith.select %268, %266, %271 : vector<16x81xi1>, vector<16x81xf32>
    %273 = arith.truncf %272 : vector<16x81xf32> to vector<16x81xbf16>
    %c0_28 = arith.constant 0 : index
    %c0_29 = arith.constant 0 : index
    %274 = vector.load %arg10[%c0_28, %c0_29] : memref<81x8xbf16, #tpu.memory_space<vmem>>, vector<81x8xbf16>
    %cst_30 = arith.constant dense<0.000000e+00> : vector<16x8xf32>
    %275 = tpu.matmul %273, %274, %cst_30 {dimension_numbers = #tpu.dot_dimension_numbers<[1], [0], [0], [1], [0, 0, 1, 1], [], []>} : vector<16x81xbf16>, vector<81x8xbf16>, vector<16x8xf32> -> vector<16x8xf32>
    %c0_31 = arith.constant 0 : index
    %c0_32 = arith.constant 0 : index
    %c0_33 = arith.constant 0 : index
    %276 = vector.load %arg12[%c0_31, %c0_32, %c0_33] : memref<1x16x8xf32, #tpu.memory_space<vmem>>, vector<1x16x8xf32>
    %277 = vector.shape_cast %276 : vector<1x16x8xf32> to vector<16x8xf32>
    %278 = vector.shape_cast %275 : vector<16x8xf32> to vector<1x16x8xf32>
    tpu.vector_store %arg12[%c0_31, %c0_32, %c0_33], %278 {strides = array<i32>} : memref<1x16x8xf32, #tpu.memory_space<vmem>>, vector<1x16x8xf32>,
    return
  }
  func.func @transform_0(%arg0: i32) -> (i32, i32, i32) {
    %c0_i32 = arith.constant 0 : i32
    %c0_i32_0 = arith.constant 0 : i32
    %c0_i32_1 = arith.constant 0 : i32
    return %arg0, %c0_i32, %c0_i32_0 : i32, i32, i32
  }
  func.func @transform_1(%arg0: i32) -> (i32, i32) {
    %c0_i32 = arith.constant 0 : i32
    %c0_i32_0 = arith.constant 0 : i32
    %c0_i32_1 = arith.constant 0 : i32
    return %c0_i32, %c0_i32_0 : i32, i32
  }
  func.func @transform_2(%arg0: i32) -> (i32, i32) {
    %c0_i32 = arith.constant 0 : i32
    %c0_i32_0 = arith.constant 0 : i32
    %c0_i32_1 = arith.constant 0 : i32
    return %c0_i32, %c0_i32_0 : i32, i32
  }
  func.func @transform_3(%arg0: i32) -> (i32, i32) {
    %c0_i32 = arith.constant 0 : i32
    %c0_i32_0 = arith.constant 0 : i32
    %c0_i32_1 = arith.constant 0 : i32
    return %c0_i32, %c0_i32_0 : i32, i32
  }
  func.func @transform_4(%arg0: i32) -> (i32, i32) {
    %c0_i32 = arith.constant 0 : i32
    %c0_i32_0 = arith.constant 0 : i32
    %c0_i32_1 = arith.constant 0 : i32
    return %c0_i32, %c0_i32_0 : i32, i32
  }
  func.func @transform_5(%arg0: i32) -> (i32, i32) {
    %c0_i32 = arith.constant 0 : i32
    %c0_i32_0 = arith.constant 0 : i32
    %c0_i32_1 = arith.constant 0 : i32
    return %c0_i32, %c0_i32_0 : i32, i32
  }
  func.func @transform_6(%arg0: i32) -> (i32, i32) {
    %c0_i32 = arith.constant 0 : i32
    %c0_i32_0 = arith.constant 0 : i32
    %c0_i32_1 = arith.constant 0 : i32
    return %c0_i32, %c0_i32_0 : i32, i32
  }
  func.func @transform_7(%arg0: i32) -> (i32, i32) {
    %c0_i32 = arith.constant 0 : i32
    %c0_i32_0 = arith.constant 0 : i32
    %c0_i32_1 = arith.constant 0 : i32
    return %c0_i32, %c0_i32_0 : i32, i32
  }
  func.func @transform_8(%arg0: i32) -> (i32, i32) {
    %c0_i32 = arith.constant 0 : i32
    %c0_i32_0 = arith.constant 0 : i32
    %c0_i32_1 = arith.constant 0 : i32
    return %c0_i32, %c0_i32_0 : i32, i32
  }
  func.func @transform_9(%arg0: i32) -> (i32, i32) {
    %c0_i32 = arith.constant 0 : i32
    %c0_i32_0 = arith.constant 0 : i32
    %c0_i32_1 = arith.constant 0 : i32
    return %c0_i32, %c0_i32_0 : i32, i32
  }
  func.func @transform_10(%arg0: i32) -> (i32, i32, i32) {
    %c0_i32 = arith.constant 0 : i32
    %c0_i32_0 = arith.constant 0 : i32
    %c0_i32_1 = arith.constant 0 : i32
    return %arg0, %c0_i32, %c0_i32_0 : i32, i32, i32
  }
  func.func @transform_11(%arg0: i32) -> (i32, i32, i32) {
    %c0_i32 = arith.constant 0 : i32
    %c0_i32_0 = arith.constant 0 : i32
    %c0_i32_1 = arith.constant 0 : i32
    return %arg0, %c0_i32, %c0_i32_0 : i32, i32, i32
  }
}

</mosaic_0001>

<bundles_post_ra>
// kernel: eeg_block_forward.1
= control target key start
LH: loop header
LB: loop body
LE: loop exit
PB: predicated region body
PF: predicated region fallthrough
CT: control target
= control target key end

     0   :  { %v4742_v0 = vmov 3   ;;  %v4746_v1 = vmov 1   ;;  %vm79_vm0 = vcmask 1042432   ;;  %v4744_v9 = vmov 2   ;;  %s2979_s20 = smov 125   ;;  %s2980_s21 = smov 124   ;;  %s4706_s2 = inlined_call_operand.vmem [shape: f32[16,32], index: 2, kind: input, shape index: {}]   ;;  %s4707_s0 = inlined_call_operand.vmem [shape: bf16[1,22,318], index: 0, kind: input, shape index: {}]   ;;  %s4708_s1 = inlined_call_operand.vmem [shape: bf16[16,22], index: 1, kind: input, shape index: {}]   ;;  %s4709_s3 = inlined_call_operand.vmem [shape: f32[16,1], index: 3, kind: input, shape index: {}]   ;;  %s4710_s4 = inlined_call_operand.vmem [shape: f32[16,16], index: 4, kind: input, shape index: {}]   ;;  %s4711_s7 = inlined_call_operand.vmem [shape: bf16[287,64], index: 7, kind: input, shape index: {}]   ;;  %s4712_s8 = inlined_call_operand.vmem [shape: bf16[287,96], index: 8, kind: input, shape index: {}]   ;;  %s4713_s10 = inlined_call_operand.vmem [shape: f32[1,16,64], index: 10, kind: output, shape index: {0}]   ;;  %s4714_s6 = inlined_call_operand.vmem [shape: f32[16,1], index: 6, kind: input, shape index: {}]   ;;  %s4715_s5 = inlined_call_operand.vmem [shape: bf16[16,16], index: 5, kind: input, shape index: {}]   ;;  %s4716_s9 = inlined_call_operand.vmem [shape: bf16[81,8], index: 9, kind: input, shape index: {}]   ;;  %s4717_s11 = inlined_call_operand.vmem [shape: f32[1,16,8], index: 11, kind: output, shape index: {1}]  }
   0x1   :  { %2860 = vset.pattern.permute.xlu0 %v4742_v0  ;;  %2857 = vset.pattern.permute.xlu1 %v4746_v1  ;;  %v3099_v2 = vld [vmem:[%s4706_s2] sm:$0xff]  ;;  %v44_v3 = vld [vmem:[%s4707_s0 + $0x18] sm:$0x77]  ;;  %v3112_v8 = vld [vmem:[%s4706_s2 + $0x8] sm:$0xff]  ;;  %v4740_v25 = vmov 4   ;;  %vm75_vm1 = vcmask 179200  }
   0x2   :  { %v45_v4 = vld [vmem:[%s4707_s0 + $0x20] sm:$0x7]  ;;  %248 = vperm.xlu0 %2860, %v3099_v2   ;;  %150 = vperm.xlu1 %2857, %v3099_v2   ;;  %v63_v5 = vunpack.c.l.b16 %v44_v3  ;;  %v64_v6 = vunpack.c.h.b16 %v44_v3  ;;  %v2749_v14 = vld [vmem:[%s4707_s0 + $0x8] sm:$0xf0]  ;;  %v2748_v15 = vld [vmem:[%s4707_s0 + $0x4] sm:$0xf] }
   0x3   :  { %v65_v7 = vunpack.c.l.b16 %v45_v4  ;;  %2859 = vset.pattern.permute.xlu2 %v4744_v9  ;;  %v2554_v13 = vld [vmem:[%s4707_s0] sm:$0xf]  ;;  %v2556_v16 = vld [vmem:[%s4707_s0 + $0xc] sm:$0xf0]  ;;  %v2562_v17 = vld [vmem:[%s4707_s0 + $0x8] sm:$0xf] }
   0x4   :  { %v69_v10 = vpack.c.b16 %v63_v5, %v63_v5  ;;  %v70_v11 = vpack.c.b16 %v64_v6, %v64_v6  ;;  %203 = vperm.xlu2 %2859, %v3112_v8   ;;  %v2750_v18 = vld [vmem:[%s4707_s0 + $0x10] sm:$0xf0]  ;;  %v2555_v22 = vor.u32 %v2749_v14, %v2554_v13  ;;  %v2559_v23 = vor.u32 %v2748_v15, %v2556_v16  ;;  %v2747_v26 = vld [vmem:[%s4708_s1] sm:$0xff]  ;;  %s2977_s0 = smov 126   ;;  %s2978_s1 = smov 127  }
   0x5   :  { %v71_v12 = vpack.c.b16 %v65_v7, %v65_v7  ;;  %v2563_v24 = vor.u32 %v2750_v18, %v2562_v17  ;;  %v4738_v27 = vmov 5   ;;  %v4734_v28 = vmov 6   ;;  %s2981_s22 = smov 123   ;;  %s2982_s23 = smov 122  }
   0x6   :  { %v81_v19 = vsel %vm79_vm0, %v69_v10, 0  ;;  %v84_v20 = vsel %vm79_vm0, %v70_v11, 0  ;;  %v4736_v29 = vmov 7   ;;  %v4732_v60 = vmov 8   ;;  %s2984_s24 = smov 121   ;;  %s2985_s25 = smov 120  }
   0x7   :  { %v87_v21 = vsel %vm79_vm0, %v71_v12, 0  ;;  %95 = vmatpush.bf16.msra.mxu0 %v81_v19  ;;  %109 = vmatpush.bf16.msra.mxu1 %v84_v20  ;;  %s2988_s26 = smov 119   ;;  %s2990_s27 = smov 118   ;;  %v3003_v1 = vmov 18   ;;  %vm181_vm2 = vcmask 1039360   ;;  %vm230_vm3 = vcmask 1031168  }
   0x8   :  { %123 = vmatpush.bf16.msra.mxu3 %v87_v21  ;;  %s2992_s28 = smov 117   ;;  %s2994_s29 = smov 116   ;;  %vm279_vm4 = vcmask 1022976   ;;  %vm328_vm5 = vcmask 1014784   ;;  %vm377_vm6 = vcmask 1006592   ;;  %vm426_vm7 = vcmask 998400  }
   0x9   :  { %s2996_s30 = smov 115   ;;  %s4807_s12 = smov 114   ;;  %vm475_vm8 = vcmask 990208   ;;  %vm524_vm9 = vcmask 982016   ;;  %vm573_vm10 = vcmask 973824   ;;  %vm622_vm11 = vcmask 965632  }
   0xa   :  { %2862 = vset.pattern.permute.xlu0 %v4740_v25  ;;  %154 = vperm.xlu1 %2857, %v3112_v8   ;;  %s3000_s13 = smov 113   ;;  %s3002_s14 = smov 112   ;;  %vm671_vm12 = vcmask 957440   ;;  %vm720_vm13 = vcmask 949248   ;;  %vm769_vm14 = vcmask 941056   ;;  %vm818_vm15 = vcmask 932864  }
   0xb   :  { %297 = vperm.xlu0 %2862, %v3099_v2   ;;  %96 = vmatpush.bf16.msra.mxu0 %v2555_v22  ;;  %s3004_s15 = smov 111   ;;  %s3006_s16 = smov 110   ;;  %vm867_vm0 = vcmask 924672  }
   0xc   :  { %110 = vmatpush.bf16.msra.mxu1 %v2559_v23  ;;  %124 = vmatpush.bf16.msra.mxu3 %v2563_v24  ;;  %s3008_s17 = smov 109   ;;  %s3011_s18 = smov 108  }
   0xd   :  { %s3025_s19 = smov 104  }
   0xe   :  { %2564 = vmatmul.msk.bf16.vlgmr.msra.gmra.mxu0 %vm75_vm1, %v2747_v26 }
   0xf   :  { %2565 = vmatmul.msk.bf16.vlgmr.msra.gmra.mxu1 %vm75_vm1, %v2747_v26  ;;  %2566 = vmatmul.msk.bf16.vlgmr.msra.gmra.mxu3 %vm75_vm1, %v2747_v26  ;;  %vm916_vm1 = vcmask 916480  }
  0x12   :  { %2858 = vset.pattern.permute.xlu1 %v4744_v9 }
  0x13   :  { %2864 = vset.pattern.permute.xlu0 %v4738_v27  ;;  %199 = vperm.xlu1 %2858, %v3099_v2  }
  0x14   :  { %346 = vperm.xlu0 %2864, %v3099_v2  }
  0x1b   :  { %2861 = vset.pattern.permute.xlu1 %v4742_v0 }
  0x1c   :  { %2866 = vset.pattern.permute.xlu0 %v4734_v28  ;;  %252 = vperm.xlu1 %2861, %v3112_v8  }
  0x1d   :  { %395 = vperm.xlu0 %2866, %v3099_v2  }
  0x24   :  { %2863 = vset.pattern.permute.xlu1 %v4740_v25 }
  0x25   :  { %2868 = vset.pattern.permute.xlu0 %v4736_v29  ;;  %301 = vperm.xlu1 %2863, %v3112_v8  }
  0x26   :  { %444 = vperm.xlu0 %2868, %v3099_v2  }
  0x2d   :  { %2865 = vset.pattern.permute.xlu1 %v4738_v27 }
  0x2e   :  { %350 = vperm.xlu1 %2865, %v3112_v8   ;;  %2870 = vset.pattern.permute.xlu0 %v4732_v60 }
  0x36   :  { %2867 = vset.pattern.permute.xlu1 %v4734_v28 }
  0x37   :  { %399 = vperm.xlu1 %2867, %v3112_v8  }
  0x3f   :  { %2869 = vset.pattern.permute.xlu1 %v4736_v29 }
  0x40   :  { %448 = vperm.xlu1 %2869, %v3112_v8  }
  0x48   :  { %2871 = vset.pattern.permute.xlu1 %v4732_v60 }
  0x5e   :  { %v3190_v44 = vpop.permute.xlu2 %203 }
  0x74   :  { %v151_v30 = vpop.permute.xlu1 %150  ;;  %v3167_v34 = vpop.permute.xlu0 %248 }
  0x7c   :  { %v3161_v31 = vpop.permute.xlu1 %154 }
  0x7d   :  { %v3185_v43 = vpop.permute.xlu0 %297 }
  0x85   :  { %v3163_v32 = vpop.permute.xlu1 %199 }
  0x86   :  { %v347_v50 = vpop.permute.xlu0 %346 }
  0x8b   :  { %v3165_v33 = vpop.f32.mrf.mxu0 }
  0x8c   :  { %v3169_v35 = vpop.f32.mrf.mxu1  ;;  %v206_v36 = vmul.f32 %v3163_v32, %v3165_v33  ;;  %v157_v37 = vmul.f32 %v151_v30, %v3165_v33  ;;  %v255_v48 = vmul.f32 %v3167_v34, %v3165_v33  ;;  %v304_v53 = vmul.f32 %v3185_v43, %v3165_v33 }
  0x8d   :  { %v207_v38 = vmul.f32 %v3163_v32, %v3169_v35  ;;  %v158_v41 = vmul.f32 %v151_v30, %v3169_v35  ;;  %v256_v42 = vmul.f32 %v3167_v34, %v3169_v35  ;;  %v305_v49 = vmul.f32 %v3185_v43, %v3169_v35 }
  0x8e   :  { %218 = vrot.lane.b32.xlu0 %v206_v36, %s2977_s0  ;;  %169 = vrot.lane.b32.xlu2 %v157_v37, %s2978_s1  ;;  %v3192_v45 = vpop.permute.xlu1 %252  ;;  %v354_v54 = vmul.f32 %v347_v50, %v3169_v35  ;;  %v353_v57 = vmul.f32 %v347_v50, %v3165_v33 }
  0x8f   :  { %220 = vrot.lane.b32.xlu1 %v207_v38, %s2977_s0  ;;  %v396_v55 = vpop.permute.xlu0 %395 }
  0x90   :  { %v403_v59 = vmul.f32 %v396_v55, %v3169_v35  ;;  %v402_v62 = vmul.f32 %v396_v55, %v3165_v33 }
  0x92   :  { %v3179_v39 = vpop.f32.mrf.mxu3 }
  0x93   :  { %v159_v40 = vmul.f32 %v151_v30, %v3179_v39  ;;  %v3194_v46 = vpop.f32.mrf.mxu0  ;;  %v208_v13 = vmul.f32 %v3163_v32, %v3179_v39  ;;  %v257_v17 = vmul.f32 %v3167_v34, %v3179_v39  ;;  %v306_v19 = vmul.f32 %v3185_v43, %v3179_v39 }
  0x94   :  { %v209_v47 = vmul.f32 %v3190_v44, %v3194_v46  ;;  %v258_v51 = vmul.f32 %v3192_v45, %v3194_v46  ;;  %v160_v63 = vmul.f32 %v3161_v31, %v3194_v46  ;;  %v3234_v4 = vpop.f32.mrf.mxu1  ;;  %v355_v21 = vmul.f32 %v347_v50, %v3179_v39 }
  0x95   :  { %v210_v10 = vmul.f32 %v3190_v44, %v3234_v4  ;;  %v259_v14 = vmul.f32 %v3192_v45, %v3234_v4  ;;  %v404_v23 = vmul.f32 %v396_v55, %v3179_v39  ;;  %v161_v26 = vmul.f32 %v3161_v31, %v3234_v4 }
  0x96   :  { %173 = vrot.lane.b32.xlu0 %v159_v40, %s2978_s1  ;;  %171 = vrot.lane.b32.xlu2 %v158_v41, %s2978_s1 }
  0x97   :  { %269 = vrot.lane.b32.xlu1 %v256_v42, %s2979_s20  ;;  %v3207_v52 = vpop.permute.xlu1 %301 }
  0x98   :  { %v307_v56 = vmul.f32 %v3207_v52, %v3194_v46  ;;  %v445_v5 = vpop.permute.xlu0 %444  ;;  %v308_v18 = vmul.f32 %v3207_v52, %v3234_v4 }
  0x99   :  { %v451_v7 = vmul.f32 %v445_v5, %v3165_v33  ;;  %v452_v24 = vmul.f32 %v445_v5, %v3169_v35  ;;  %v453_v32 = vmul.f32 %v445_v5, %v3179_v39 }
  0x9a   :  { %v3251_v15 = vpop.f32.mrf.mxu3 }
  0x9b   :  { %v162_v16 = vmul.f32 %v3161_v31, %v3251_v15  ;;  %v211_v34 = vmul.f32 %v3190_v44, %v3251_v15  ;;  %v260_v37 = vmul.f32 %v3192_v45, %v3251_v15  ;;  %v309_v41 = vmul.f32 %v3207_v52, %v3251_v15 }
  0x9e   :  { %224 = vrot.lane.b32.xlu0 %v209_v47, %s2977_s0  ;;  %267 = vrot.lane.b32.xlu2 %v255_v48, %s2979_s20 }
  0x9f   :  { %318 = vrot.lane.b32.xlu1 %v305_v49, %s2980_s21 }
  0xa0   :  { %v3218_v58 = vpop.permute.xlu1 %350 }
  0xa1   :  { %v356_v61 = vmul.f32 %v3218_v58, %v3194_v46  ;;  %v357_v20 = vmul.f32 %v3218_v58, %v3234_v4  ;;  %v358_v44 = vmul.f32 %v3218_v58, %v3251_v15 }
  0xa6   :  { %273 = vrot.lane.b32.xlu0 %v258_v51, %s2979_s20  ;;  %316 = vrot.lane.b32.xlu2 %v304_v53, %s2980_s21 }
  0xa7   :  { %367 = vrot.lane.b32.xlu1 %v354_v54, %s2981_s22 }
  0xa9   :  { %v400_v3 = vpop.permute.xlu1 %399 }
  0xaa   :  { %v405_v6 = vmul.f32 %v400_v3, %v3194_v46  ;;  %v406_v22 = vmul.f32 %v400_v3, %v3234_v4  ;;  %v407_v48 = vmul.f32 %v400_v3, %v3251_v15 }
  0xae   :  { %322 = vrot.lane.b32.xlu0 %v307_v56, %s2980_s21  ;;  %365 = vrot.lane.b32.xlu2 %v353_v57, %s2981_s22 }
  0xaf   :  { %416 = vrot.lane.b32.xlu1 %v403_v59, %s2982_s23 }
  0xb2   :  { %v449_v11 = vpop.permute.xlu1 %448 }
  0xb3   :  { %v454_v12 = vmul.f32 %v449_v11, %v3194_v46  ;;  %v455_v30 = vmul.f32 %v449_v11, %v3234_v4  ;;  %v456_v51 = vmul.f32 %v449_v11, %v3251_v15 }
  0xb6   :  { %371 = vrot.lane.b32.xlu0 %v356_v61, %s2981_s22  ;;  %414 = vrot.lane.b32.xlu2 %v402_v62, %s2982_s23 }
  0xb7   :  { %175 = vrot.lane.b32.xlu1 %v160_v63, %s2978_s1 }
  0xbe   :  { %420 = vrot.lane.b32.xlu0 %v405_v6, %s2982_s23  ;;  %463 = vrot.lane.b32.xlu2 %v451_v7, %s2984_s24  ;;  %v4730_v7 = vmov 9  }
  0xbf   :  { %226 = vrot.lane.b32.xlu1 %v210_v10, %s2977_s0 }
  0xc6   :  { %469 = vrot.lane.b32.xlu0 %v454_v12, %s2984_s24  ;;  %222 = vrot.lane.b32.xlu2 %v208_v13, %s2977_s0 }
  0xc7   :  { %275 = vrot.lane.b32.xlu1 %v259_v14, %s2979_s20 }
  0xce   :  { %179 = vrot.lane.b32.xlu0 %v162_v16, %s2978_s1  ;;  %271 = vrot.lane.b32.xlu2 %v257_v17, %s2979_s20  ;;  %v4724_v17 = vmov 10  }
  0xcf   :  { %324 = vrot.lane.b32.xlu1 %v308_v18, %s2980_s21 }
  0xd6   :  { %493 = vperm.xlu0 %2870, %v3099_v2   ;;  %320 = vrot.lane.b32.xlu2 %v306_v19, %s2980_s21 }
  0xd7   :  { %373 = vrot.lane.b32.xlu1 %v357_v20, %s2981_s22 }
  0xde   :  { %369 = vrot.lane.b32.xlu2 %v355_v21, %s2981_s22  ;;  %2872 = vset.pattern.permute.xlu0 %v4730_v7 }
  0xdf   :  { %422 = vrot.lane.b32.xlu1 %v406_v22, %s2982_s23 }
  0xe6   :  { %418 = vrot.lane.b32.xlu2 %v404_v23, %s2982_s23 }
  0xe7   :  { %465 = vrot.lane.b32.xlu1 %v452_v24, %s2984_s24 }
  0xe8   :  { %v3527_v9 = vpop.permute.xlu2 %169 }
  0xee   :  { %177 = vrot.lane.b32.xlu2 %v161_v26, %s2978_s1 }
  0xef   :  { %471 = vrot.lane.b32.xlu1 %v455_v30, %s2984_s24 }
  0xf6   :  { %467 = vrot.lane.b32.xlu2 %v453_v32, %s2984_s24 }
  0xf7   :  { %497 = vperm.xlu1 %2871, %v3112_v8  }
  0xfe   :  { %228 = vrot.lane.b32.xlu2 %v211_v34, %s2977_s0 }
  0xff   :  { %2873 = vset.pattern.permute.xlu1 %v4730_v7 }
 0x100   :  { %v3288_v36 = vpop.permute.xlu0 %218 }
 0x101   :  { %v3290_v31 = vpop.permute.xlu1 %220 }
 0x106   :  { %277 = vrot.lane.b32.xlu2 %v260_v37, %s2979_s20  ;;  %v4728_v37 = vmov 11  }
 0x108   :  { %v3295_v38 = vpop.permute.xlu0 %173 }
 0x109   :  { %v3297_v40 = vpop.permute.xlu1 %269 }
 0x10e   :  { %326 = vrot.lane.b32.xlu2 %v309_v41, %s2980_s21 }
 0x110   :  { %v3302_v42 = vpop.permute.xlu0 %224 }
 0x111   :  { %v3304_v43 = vpop.permute.xlu1 %318 }
 0x116   :  { %375 = vrot.lane.b32.xlu2 %v358_v44, %s2981_s22 }
 0x118   :  { %v3309_v45 = vpop.permute.xlu0 %273 }
 0x119   :  { %v3311_v47 = vpop.permute.xlu1 %367 }
 0x11e   :  { %424 = vrot.lane.b32.xlu2 %v407_v48, %s2982_s23 }
 0x120   :  { %v3315_v49 = vpop.permute.xlu0 %322 }
 0x121   :  { %v3317_v50 = vpop.permute.xlu1 %416 }
 0x126   :  { %473 = vrot.lane.b32.xlu2 %v456_v51, %s2984_s24 }
 0x128   :  { %v3321_v52 = vpop.permute.xlu0 %371 }
 0x129   :  { %v3323_v53 = vpop.permute.xlu1 %175 }
 0x130   :  { %v3325_v54 = vpop.permute.xlu0 %420 }
 0x131   :  { %v3327_v55 = vpop.permute.xlu1 %226 }
 0x138   :  { %v3329_v56 = vpop.permute.xlu0 %469 }
 0x139   :  { %v3331_v57 = vpop.permute.xlu1 %275 }
 0x140   :  { %v3333_v58 = vpop.permute.xlu0 %179 }
 0x141   :  { %v3335_v59 = vpop.permute.xlu1 %324 }
 0x148   :  { %v494_v61 = vpop.permute.xlu0 %493 }
 0x149   :  { %v3337_v62 = vpop.permute.xlu1 %373  ;;  %v501_v63 = vmul.f32 %v494_v61, %v3169_v35  ;;  %v500_v3 = vmul.f32 %v494_v61, %v3165_v33  ;;  %v502_v6 = vmul.f32 %v494_v61, %v3179_v39 }
 0x14b   :  { %514 = vrot.lane.b32.xlu1 %v501_v63, %s2985_s25  ;;  %512 = vrot.lane.b32.xlu2 %v500_v3, %s2985_s25 }
 0x151   :  { %v3343_v5 = vpop.permute.xlu1 %422 }
 0x153   :  { %516 = vrot.lane.b32.xlu2 %v502_v6, %s2985_s25 }
 0x159   :  { %v3349_v10 = vpop.permute.xlu1 %465 }
 0x161   :  { %v3351_v11 = vpop.permute.xlu1 %471 }
 0x169   :  { %v498_v12 = vpop.permute.xlu1 %497 }
 0x16a   :  { %v504_v13 = vmul.f32 %v498_v12, %v3234_v4  ;;  %v503_v14 = vmul.f32 %v498_v12, %v3194_v46  ;;  %v505_v16 = vmul.f32 %v498_v12, %v3251_v15 }
 0x16c   :  { %520 = vrot.lane.b32.xlu1 %v504_v13, %s2985_s25  ;;  %518 = vrot.lane.b32.xlu0 %v503_v14, %s2985_s25 }
 0x16d   :  { %522 = vrot.lane.b32.xlu2 %v505_v16, %s2985_s25  ;;  %v4720_v16 = vmov 12  }
 0x174   :  { %546 = vperm.xlu1 %2873, %v3112_v8   ;;  %542 = vperm.xlu0 %2872, %v3099_v2  }
 0x17c   :  { %2874 = vset.pattern.permute.xlu0 %v4724_v17  ;;  %2875 = vset.pattern.permute.xlu1 %v4724_v17 }
 0x1bd   :  { %v3363_v18 = vpop.permute.xlu1 %514 }
 0x1de   :  { %v3365_v19 = vpop.permute.xlu0 %518  ;;  %v3367_v20 = vpop.permute.xlu1 %520 }
 0x1e6   :  { %v543_v21 = vpop.permute.xlu0 %542  ;;  %v547_v22 = vpop.permute.xlu1 %546 }
 0x1e7   :  { %v550_v23 = vmul.f32 %v543_v21, %v3169_v35  ;;  %v552_v24 = vmul.f32 %v547_v22, %v3194_v46  ;;  %v549_v26 = vmul.f32 %v543_v21, %v3165_v33  ;;  %v553_v30 = vmul.f32 %v547_v22, %v3234_v4 }
 0x1e8   :  { %v551_v32 = vmul.f32 %v543_v21, %v3179_v39  ;;  %v554_v34 = vmul.f32 %v547_v22, %v3251_v15 }
 0x1e9   :  { %563 = vrot.lane.b32.xlu1 %v550_v23, %s2988_s26  ;;  %567 = vrot.lane.b32.xlu0 %v552_v24, %s2988_s26 }
 0x1ea   :  { %561 = vrot.lane.b32.xlu2 %v549_v26, %s2988_s26 }
 0x1f1   :  { %569 = vrot.lane.b32.xlu1 %v553_v30, %s2988_s26  ;;  %591 = vperm.xlu0 %2874, %v3099_v2  }
 0x1f2   :  { %565 = vrot.lane.b32.xlu2 %v551_v32, %s2988_s26 }
 0x1f9   :  { %595 = vperm.xlu1 %2875, %v3112_v8   ;;  %2876 = vset.pattern.permute.xlu0 %v4728_v37 }
 0x1fa   :  { %571 = vrot.lane.b32.xlu2 %v554_v34, %s2988_s26 }
 0x201   :  { %2877 = vset.pattern.permute.xlu1 %v4728_v37 }
 0x25b   :  { %v3385_v41 = vpop.permute.xlu0 %567  ;;  %v3387_v44 = vpop.permute.xlu1 %563 }
 0x25c   :  { %4809 = vst [vmem:[#allocation2_spill] sm:$0xff] %v3385_v41 }
 0x25d   :  { %4810 = vst [vmem:[#allocation3_spill] sm:$0xff] %v3387_v44  ;;  %v3007_v44 = vmov 20  }
 0x263   :  { %v592_v48 = vpop.permute.xlu0 %591  ;;  %v3389_v51 = vpop.permute.xlu1 %569 }
 0x264   :  { %4811 = vst [vmem:[#allocation4_spill] sm:$0xff] %v3389_v51  ;;  %v599_v61 = vmul.f32 %v592_v48, %v3169_v35  ;;  %v598_v63 = vmul.f32 %v592_v48, %v3165_v33  ;;  %v600_v13 = vmul.f32 %v592_v48, %v3179_v39 }
 0x266   :  { %612 = vrot.lane.b32.xlu1 %v599_v61, %s2990_s27  ;;  %610 = vrot.lane.b32.xlu2 %v598_v63, %s2990_s27 }
 0x26b   :  { %v596_v3 = vpop.permute.xlu1 %595 }
 0x26c   :  { %v602_v6 = vmul.f32 %v596_v3, %v3234_v4  ;;  %v601_v12 = vmul.f32 %v596_v3, %v3194_v46  ;;  %v603_v14 = vmul.f32 %v596_v3, %v3251_v15  ;;  %v4718_v3 = vmov 13  }
 0x26e   :  { %618 = vrot.lane.b32.xlu1 %v602_v6, %s2990_s27  ;;  %616 = vrot.lane.b32.xlu0 %v601_v12, %s2990_s27 }
 0x26f   :  { %614 = vrot.lane.b32.xlu2 %v600_v13, %s2990_s27 }
 0x276   :  { %644 = vperm.xlu1 %2877, %v3112_v8   ;;  %640 = vperm.xlu0 %2876, %v3099_v2  }
 0x277   :  { %620 = vrot.lane.b32.xlu2 %v603_v14, %s2990_s27 }
 0x27e   :  { %2878 = vset.pattern.permute.xlu0 %v4720_v16  ;;  %2879 = vset.pattern.permute.xlu1 %v4720_v16 }
 0x2d8   :  { %v3407_v21 = vpop.permute.xlu1 %612 }
 0x2d9   :  { %4812 = vst [vmem:[#allocation5_spill] sm:$0xff] %v3407_v21 }
 0x2e0   :  { %v3409_v22 = vpop.permute.xlu0 %616  ;;  %v3411_v23 = vpop.permute.xlu1 %618 }
 0x2e1   :  { %4813 = vst [vmem:[#allocation6_spill] sm:$0xff] %v3409_v22 }
 0x2e2   :  { %4814 = vst [vmem:[#allocation7_spill] sm:$0xff] %v3411_v23 }
 0x2e8   :  { %v641_v24 = vpop.permute.xlu0 %640  ;;  %v645_v26 = vpop.permute.xlu1 %644 }
 0x2e9   :  { %v648_v30 = vmul.f32 %v641_v24, %v3169_v35  ;;  %v650_v32 = vmul.f32 %v645_v26, %v3194_v46  ;;  %v647_v34 = vmul.f32 %v641_v24, %v3165_v33  ;;  %v651_v48 = vmul.f32 %v645_v26, %v3234_v4 }
 0x2ea   :  { %v649_v61 = vmul.f32 %v641_v24, %v3179_v39  ;;  %v652_v63 = vmul.f32 %v645_v26, %v3251_v15 }
 0x2eb   :  { %661 = vrot.lane.b32.xlu1 %v648_v30, %s2992_s28  ;;  %665 = vrot.lane.b32.xlu0 %v650_v32, %s2992_s28 }
 0x2ec   :  { %659 = vrot.lane.b32.xlu2 %v647_v34, %s2992_s28 }
 0x2f3   :  { %667 = vrot.lane.b32.xlu1 %v651_v48, %s2992_s28  ;;  %689 = vperm.xlu0 %2878, %v3099_v2  }
 0x2f4   :  { %663 = vrot.lane.b32.xlu2 %v649_v61, %s2992_s28 }
 0x2fb   :  { %693 = vperm.xlu1 %2879, %v3112_v8   ;;  %2880 = vset.pattern.permute.xlu0 %v4718_v3 }
 0x2fc   :  { %669 = vrot.lane.b32.xlu2 %v652_v63, %s2992_s28  ;;  %v4722_v63 = vmov 14  }
 0x303   :  { %2881 = vset.pattern.permute.xlu1 %v4718_v3 }
 0x35d   :  { %v3429_v6 = vpop.permute.xlu0 %665  ;;  %v3431_v12 = vpop.permute.xlu1 %661 }
 0x35e   :  { %4815 = vst [vmem:[#allocation8_spill] sm:$0xff] %v3429_v6 }
 0x35f   :  { %4816 = vst [vmem:[#allocation9_spill] sm:$0xff] %v3431_v12  ;;  %v3005_v12 = vmov 19  }
 0x365   :  { %v690_v13 = vpop.permute.xlu0 %689  ;;  %v3433_v14 = vpop.permute.xlu1 %667 }
 0x366   :  { %4817 = vst [vmem:[#allocation10_spill] sm:$0xff] %v3433_v14  ;;  %v697_v24 = vmul.f32 %v690_v13, %v3169_v35  ;;  %v696_v26 = vmul.f32 %v690_v13, %v3165_v33  ;;  %v698_v48 = vmul.f32 %v690_v13, %v3179_v39 }
 0x368   :  { %710 = vrot.lane.b32.xlu1 %v697_v24, %s2994_s29  ;;  %708 = vrot.lane.b32.xlu2 %v696_v26, %s2994_s29 }
 0x36d   :  { %v694_v30 = vpop.permute.xlu1 %693 }
 0x36e   :  { %v700_v32 = vmul.f32 %v694_v30, %v3234_v4  ;;  %v699_v34 = vmul.f32 %v694_v30, %v3194_v46  ;;  %v701_v61 = vmul.f32 %v694_v30, %v3251_v15 }
 0x370   :  { %716 = vrot.lane.b32.xlu1 %v700_v32, %s2994_s29  ;;  %714 = vrot.lane.b32.xlu0 %v699_v34, %s2994_s29 }
 0x371   :  { %712 = vrot.lane.b32.xlu2 %v698_v48, %s2994_s29 }
 0x378   :  { %742 = vperm.xlu1 %2881, %v3112_v8   ;;  %738 = vperm.xlu0 %2880, %v3099_v2  }
 0x379   :  { %718 = vrot.lane.b32.xlu2 %v701_v61, %s2994_s29 }
 0x380   :  { %2882 = vset.pattern.permute.xlu0 %v4722_v63  ;;  %2883 = vset.pattern.permute.xlu1 %v4722_v63 }
 0x3da   :  { %v3451_v13 = vpop.permute.xlu1 %710 }
 0x3db   :  { %4818 = vst [vmem:[#allocation11_spill] sm:$0xff] %v3451_v13 }
 0x3e2   :  { %v3453_v24 = vpop.permute.xlu0 %714  ;;  %v3455_v26 = vpop.permute.xlu1 %716 }
 0x3e3   :  { %4819 = vst [vmem:[#allocation12_spill] sm:$0xff] %v3453_v24 }
 0x3e4   :  { %4820 = vst [vmem:[#allocation13_spill] sm:$0xff] %v3455_v26 }
 0x3ea   :  { %v739_v32 = vpop.permute.xlu0 %738  ;;  %v743_v34 = vpop.permute.xlu1 %742 }
 0x3eb   :  { %v746_v30 = vmul.f32 %v739_v32, %v3169_v35  ;;  %v748_v48 = vmul.f32 %v743_v34, %v3194_v46  ;;  %v745_v3 = vmul.f32 %v739_v32, %v3165_v33  ;;  %v749_v61 = vmul.f32 %v743_v34, %v3234_v4 }
 0x3ec   :  { %v747_v16 = vmul.f32 %v739_v32, %v3179_v39  ;;  %v750_v63 = vmul.f32 %v743_v34, %v3251_v15 }
 0x3ed   :  { %759 = vrot.lane.b32.xlu1 %v746_v30, %s2996_s30  ;;  %763 = vrot.lane.b32.xlu0 %v748_v48, %s2996_s30  ;;  %v4726_v30 = vmov 15  }
 0x3ee   :  { %757 = vrot.lane.b32.xlu2 %v745_v3, %s2996_s30 }
 0x3f5   :  { %765 = vrot.lane.b32.xlu1 %v749_v61, %s2996_s30  ;;  %787 = vperm.xlu0 %2882, %v3099_v2  }
 0x3f6   :  { %761 = vrot.lane.b32.xlu2 %v747_v16, %s2996_s30 }
 0x3fd   :  { %791 = vperm.xlu1 %2883, %v3112_v8   ;;  %2884 = vset.pattern.permute.xlu0 %v4726_v30 }
 0x3fe   :  { %767 = vrot.lane.b32.xlu2 %v750_v63, %s2996_s30 }
 0x405   :  { %2885 = vset.pattern.permute.xlu1 %v4726_v30 }
 0x45f   :  { %v3473_v3 = vpop.permute.xlu0 %763  ;;  %v3475_v32 = vpop.permute.xlu1 %759 }
 0x460   :  { %4821 = vst [vmem:[#allocation14_spill] sm:$0xff] %v3473_v3 }
 0x461   :  { %4822 = vst [vmem:[#allocation15_spill] sm:$0xff] %v3475_v32 }
 0x467   :  { %v788_v48 = vpop.permute.xlu0 %787  ;;  %v3477_v61 = vpop.permute.xlu1 %765 }
 0x468   :  { %4823 = vst [vmem:[#allocation16_spill] sm:$0xff] %v3477_v61  ;;  %v795_v16 = vmul.f32 %v788_v48, %v3169_v35  ;;  %v794_v34 = vmul.f32 %v788_v48, %v3165_v33  ;;  %v796_v37 = vmul.f32 %v788_v48, %v3179_v39 }
 0x46a   :  { %808 = vrot.lane.b32.xlu1 %v795_v16, %s4807_s12  ;;  %806 = vrot.lane.b32.xlu2 %v794_v34, %s4807_s12  ;;  %v2999_v16 = vmov 16  }
 0x46f   :  { %v792_v63 = vpop.permute.xlu1 %791 }
 0x470   :  { %v798_v17 = vmul.f32 %v792_v63, %v3234_v4  ;;  %v797_v30 = vmul.f32 %v792_v63, %v3194_v46  ;;  %v799_v7 = vmul.f32 %v792_v63, %v3251_v15 }
 0x472   :  { %814 = vrot.lane.b32.xlu1 %v798_v17, %s4807_s12  ;;  %812 = vrot.lane.b32.xlu0 %v797_v30, %s4807_s12 }
 0x473   :  { %810 = vrot.lane.b32.xlu2 %v796_v37, %s4807_s12 }
 0x47a   :  { %840 = vperm.xlu1 %2885, %v3112_v8   ;;  %836 = vperm.xlu0 %2884, %v3099_v2  }
 0x47b   :  { %816 = vrot.lane.b32.xlu2 %v799_v7, %s4807_s12 }
 0x482   :  { %2886 = vset.pattern.permute.xlu0 %v2999_v16  ;;  %2887 = vset.pattern.permute.xlu1 %v2999_v16 }
 0x4dc   :  { %v3493_v34 = vpop.permute.xlu1 %808 }
 0x4dd   :  { %4824 = vst [vmem:[#allocation17_spill] sm:$0xff] %v3493_v34 }
 0x4e4   :  { %v3495_v48 = vpop.permute.xlu0 %812  ;;  %v3497_v17 = vpop.permute.xlu1 %814 }
 0x4e5   :  { %4825 = vst [vmem:[#allocation18_spill] sm:$0xff] %v3495_v48 }
 0x4e6   :  { %4826 = vst [vmem:[#allocation19_spill] sm:$0xff] %v3497_v17 }
 0x4ec   :  { %v837_v30 = vpop.permute.xlu0 %836  ;;  %v841_v60 = vpop.permute.xlu1 %840 }
 0x4ed   :  { %v844_v37 = vmul.f32 %v837_v30, %v3169_v35  ;;  %v846_v63 = vmul.f32 %v841_v60, %v3194_v46  ;;  %v843_v28 = vmul.f32 %v837_v30, %v3165_v33  ;;  %v847_v7 = vmul.f32 %v841_v60, %v3234_v4 }
 0x4ee   :  { %v845_v16 = vmul.f32 %v837_v30, %v3179_v39  ;;  %v848_v29 = vmul.f32 %v841_v60, %v3251_v15 }
 0x4ef   :  { %857 = vrot.lane.b32.xlu1 %v844_v37, %s3000_s13  ;;  %861 = vrot.lane.b32.xlu0 %v846_v63, %s3000_s13  ;;  %v3001_v37 = vmov 17  }
 0x4f0   :  { %855 = vrot.lane.b32.xlu2 %v843_v28, %s3000_s13 }
 0x4f7   :  { %863 = vrot.lane.b32.xlu1 %v847_v7, %s3000_s13  ;;  %885 = vperm.xlu0 %2886, %v3099_v2  }
 0x4f8   :  { %859 = vrot.lane.b32.xlu2 %v845_v16, %s3000_s13 }
 0x4ff   :  { %889 = vperm.xlu1 %2887, %v3112_v8   ;;  %2888 = vset.pattern.permute.xlu0 %v3001_v37 }
 0x500   :  { %865 = vrot.lane.b32.xlu2 %v848_v29, %s3000_s13 }
 0x507   :  { %2889 = vset.pattern.permute.xlu1 %v3001_v37 }
 0x561   :  { %v3513_v28 = vpop.permute.xlu0 %861  ;;  %v3515_v63 = vpop.permute.xlu1 %857 }
 0x562   :  { %4827 = vst [vmem:[#allocation20_spill] sm:$0xff] %v3513_v28 }
 0x563   :  { %4828 = vst [vmem:[#allocation21_spill] sm:$0xff] %v3515_v63 }
 0x569   :  { %v886_v30 = vpop.permute.xlu0 %885  ;;  %v3517_v27 = vpop.permute.xlu1 %863 }
 0x56a   :  { %4829 = vst [vmem:[#allocation22_spill] sm:$0xff] %v3517_v27  ;;  %v893_v7 = vmul.f32 %v886_v30, %v3169_v35  ;;  %v892_v16 = vmul.f32 %v886_v30, %v3165_v33  ;;  %v894_v37 = vmul.f32 %v886_v30, %v3179_v39 }
 0x56c   :  { %906 = vrot.lane.b32.xlu1 %v893_v7, %s3002_s14  ;;  %904 = vrot.lane.b32.xlu2 %v892_v16, %s3002_s14  ;;  %v3529_v7 = vpop.permute.xlu2 %171 }
 0x571   :  { %v890_v60 = vpop.permute.xlu1 %889 }
 0x572   :  { %v896_v29 = vmul.f32 %v890_v60, %v3234_v4  ;;  %v895_v25 = vmul.f32 %v890_v60, %v3194_v46  ;;  %v897_v0 = vmul.f32 %v890_v60, %v3251_v15 }
 0x574   :  { %912 = vrot.lane.b32.xlu1 %v896_v29, %s3002_s14  ;;  %910 = vrot.lane.b32.xlu0 %v895_v25, %s3002_s14  ;;  %v3531_v16 = vpop.permute.xlu2 %267 }
 0x575   :  { %908 = vrot.lane.b32.xlu2 %v894_v37, %s3002_s14 }
 0x57c   :  { %938 = vperm.xlu1 %2889, %v3112_v8   ;;  %934 = vperm.xlu0 %2888, %v3099_v2   ;;  %v3533_v30 = vpop.permute.xlu2 %316 }
 0x57d   :  { %914 = vrot.lane.b32.xlu2 %v897_v0, %s3002_s14  ;;  %s3026_s14 = smov 103  }
 0x584   :  { %2890 = vset.pattern.permute.xlu0 %v3003_v1  ;;  %2891 = vset.pattern.permute.xlu1 %v3003_v1  ;;  %v3537_v29 = vpop.permute.xlu2 %365 }
 0x58c   :  { %v3543_v0 = vpop.permute.xlu2 %414 }
 0x5de   :  { %v3535_v25 = vpop.permute.xlu1 %906 }
 0x5df   :  { %4830 = vst [vmem:[#allocation23_spill] sm:$0xff] %v3535_v25  ;;  %v3548_v25 = vpop.permute.xlu2 %463 }
 0x5e6   :  { %v3539_v60 = vpop.permute.xlu0 %910  ;;  %v3541_v37 = vpop.permute.xlu1 %912 }
 0x5e7   :  { %4831 = vst [vmem:[#allocation24_spill] sm:$0xff] %v3539_v60  ;;  %v3553_v28 = vpop.permute.xlu2 %222 }
 0x5e8   :  { %4832 = vst [vmem:[#allocation25_spill] sm:$0xff] %v3541_v37 }
 0x5ee   :  { %v935_v63 = vpop.permute.xlu0 %934  ;;  %v939_v34 = vpop.permute.xlu1 %938 }
 0x5ef   :  { %v942_v32 = vmul.f32 %v935_v63, %v3169_v35  ;;  %v944_v13 = vmul.f32 %v939_v34, %v3194_v46  ;;  %v941_v1 = vmul.f32 %v935_v63, %v3165_v33  ;;  %v945_v60 = vmul.f32 %v939_v34, %v3234_v4 }
 0x5f0   :  { %v943_v37 = vmul.f32 %v935_v63, %v3179_v39  ;;  %v946_v27 = vmul.f32 %v939_v34, %v3251_v15 }
 0x5f1   :  { %955 = vrot.lane.b32.xlu1 %v942_v32, %s3004_s15  ;;  %959 = vrot.lane.b32.xlu0 %v944_v13, %s3004_s15  ;;  %v3557_v32 = vpop.permute.xlu2 %271 }
 0x5f2   :  { %953 = vrot.lane.b32.xlu2 %v941_v1, %s3004_s15 }
 0x5f9   :  { %961 = vrot.lane.b32.xlu1 %v945_v60, %s3004_s15  ;;  %983 = vperm.xlu0 %2890, %v3099_v2   ;;  %v3559_v13 = vpop.permute.xlu2 %320 }
 0x5fa   :  { %957 = vrot.lane.b32.xlu2 %v943_v37, %s3004_s15 }
 0x601   :  { %987 = vperm.xlu1 %2891, %v3112_v8   ;;  %v3561_v1 = vpop.permute.xlu2 %369  ;;  %2892 = vset.pattern.permute.xlu0 %v3005_v12 }
 0x602   :  { %963 = vrot.lane.b32.xlu2 %v946_v27, %s3004_s15  ;;  %s3027_s15 = smov 102  }
 0x609   :  { %v3563_v48 = vpop.permute.xlu2 %418  ;;  %2893 = vset.pattern.permute.xlu1 %v3005_v12 }
 0x611   :  { %v3565_v63 = vpop.permute.xlu2 %177 }
 0x619   :  { %v3567_v60 = vpop.permute.xlu2 %467 }
 0x61a   :  { %4833 = vst [vmem:[#allocation26_spill] sm:$0xff] %v3567_v60 }
 0x621   :  { %v3569_v37 = vpop.permute.xlu2 %228 }
 0x629   :  { %v3571_v17 = vpop.permute.xlu2 %277 }
 0x631   :  { %v3573_v34 = vpop.permute.xlu2 %326 }
 0x632   :  { %4834 = vst [vmem:[#allocation27_spill] sm:$0xff] %v3573_v34 }
 0x639   :  { %v3575_v27 = vpop.permute.xlu2 %375 }
 0x63a   :  { %4835 = vst [vmem:[#allocation28_spill] sm:$0xff] %v3575_v27 }
 0x641   :  { %v3581_v24 = vpop.permute.xlu2 %424 }
 0x642   :  { %4838 = vst [vmem:[#allocation31_spill] sm:$0xff] %v3581_v24 }
 0x663   :  { %v3577_v3 = vpop.permute.xlu1 %955  ;;  %v3579_v61 = vpop.permute.xlu0 %959 }
 0x664   :  { %4836 = vst [vmem:[#allocation29_spill] sm:$0xff] %v3577_v3  ;;  %v3589_v3 = vpop.permute.xlu2 %473 }
 0x665   :  { %4837 = vst [vmem:[#allocation30_spill] sm:$0xff] %v3579_v61 }
 0x666   :  { %4840 = vst [vmem:[#allocation33_spill] sm:$0xff] %v3589_v3 }
 0x66b   :  { %v3583_v26 = vpop.permute.xlu1 %961  ;;  %v984_v21 = vpop.permute.xlu0 %983 }
 0x66c   :  { %4839 = vst [vmem:[#allocation32_spill] sm:$0xff] %v3583_v26  ;;  %v990_v6 = vmul.f32 %v984_v21, %v3165_v33  ;;  %v991_v14 = vmul.f32 %v984_v21, %v3169_v35  ;;  %v992_v61 = vmul.f32 %v984_v21, %v3179_v39  ;;  %v3592_v26 = vpop.permute.xlu2 %512 }
 0x66e   :  { %1004 = vrot.lane.b32.xlu1 %v991_v14, %s3006_s16  ;;  %1002 = vrot.lane.b32.xlu2 %v990_v6, %s3006_s16 }
 0x673   :  { %v988_v22 = vpop.permute.xlu1 %987 }
 0x674   :  { %v994_v12 = vmul.f32 %v988_v22, %v3234_v4  ;;  %v993_v27 = vmul.f32 %v988_v22, %v3194_v46  ;;  %v995_v24 = vmul.f32 %v988_v22, %v3251_v15  ;;  %v3597_v6 = vpop.permute.xlu2 %516 }
 0x675   :  { %4841 = vst [vmem:[#allocation34_spill] sm:$0xff] %v3597_v6 }
 0x676   :  { %1008 = vrot.lane.b32.xlu0 %v993_v27, %s3006_s16  ;;  %1010 = vrot.lane.b32.xlu1 %v994_v12, %s3006_s16 }
 0x677   :  { %1006 = vrot.lane.b32.xlu2 %v992_v61, %s3006_s16 }
 0x67c   :  { %v3599_v14 = vpop.permute.xlu2 %522 }
 0x67d   :  { %4842 = vst [vmem:[#allocation35_spill] sm:$0xff] %v3599_v14 }
 0x67e   :  { %1032 = vperm.xlu0 %2892, %v3099_v2   ;;  %1036 = vperm.xlu1 %2893, %v3112_v8  }
 0x67f   :  { %1012 = vrot.lane.b32.xlu2 %v995_v24, %s3006_s16  ;;  %s3028_s16 = smov 101  }
 0x684   :  { %v3601_v23 = vpop.permute.xlu2 %561 }
 0x685   :  { %4843 = vst [vmem:[#allocation36_spill] sm:$0xff] %v3601_v23 }
 0x686   :  { %2894 = vset.pattern.permute.xlu0 %v3007_v44  ;;  %2895 = vset.pattern.permute.xlu1 %v3007_v44 }
 0x68c   :  { %v3603_v3 = vpop.permute.xlu2 %565 }
 0x68d   :  { %4844 = vst [vmem:[#allocation37_spill] sm:$0xff] %v3603_v3 }
 0x694   :  { %v3605_v21 = vpop.permute.xlu2 %571 }
 0x695   :  { %4845 = vst [vmem:[#allocation38_spill] sm:$0xff] %v3605_v21 }
 0x69c   :  { %v3607_v61 = vpop.permute.xlu2 %610 }
 0x69d   :  { %4846 = vst [vmem:[#allocation39_spill] sm:$0xff] %v3607_v61 }
 0x6a4   :  { %v3609_v27 = vpop.permute.xlu2 %614 }
 0x6a5   :  { %4847 = vst [vmem:[#allocation40_spill] sm:$0xff] %v3609_v27 }
 0x6ac   :  { %v3611_v22 = vpop.permute.xlu2 %620 }
 0x6ad   :  { %4848 = vst [vmem:[#allocation41_spill] sm:$0xff] %v3611_v22 }
 0x6b4   :  { %v3613_v12 = vpop.permute.xlu2 %659 }
 0x6b5   :  { %4849 = vst [vmem:[#allocation42_spill] sm:$0xff] %v3613_v12 }
 0x6bc   :  { %v3615_v24 = vpop.permute.xlu2 %663 }
 0x6bd   :  { %4850 = vst [vmem:[#allocation43_spill] sm:$0xff] %v3615_v24 }
 0x6c4   :  { %v3619_v6 = vpop.permute.xlu2 %669 }
 0x6c5   :  { %4852 = vst [vmem:[#allocation45_spill] sm:$0xff] %v3619_v6 }
 0x6cc   :  { %v3625_v61 = vpop.permute.xlu2 %708 }
 0x6cd   :  { %4855 = vst [vmem:[#allocation48_spill] sm:$0xff] %v3625_v61 }
 0x6e0   :  { %v3617_v14 = vpop.permute.xlu1 %1004 }
 0x6e1   :  { %4851 = vst [vmem:[#allocation44_spill] sm:$0xff] %v3617_v14  ;;  %v3630_v14 = vpop.permute.xlu2 %712 }
 0x6e2   :  { %4856 = vst [vmem:[#allocation49_spill] sm:$0xff] %v3630_v14 }
 0x6e8   :  { %v3621_v3 = vpop.permute.xlu0 %1008  ;;  %v3623_v21 = vpop.permute.xlu1 %1010 }
 0x6e9   :  { %4853 = vst [vmem:[#allocation46_spill] sm:$0xff] %v3621_v3 }
 0x6ea   :  { %4854 = vst [vmem:[#allocation47_spill] sm:$0xff] %v3623_v21  ;;  %v3635_v21 = vpop.permute.xlu2 %718 }
 0x6eb   :  { %4857 = vst [vmem:[#allocation50_spill] sm:$0xff] %v3635_v21 }
 0x6f0   :  { %v1033_v27 = vpop.permute.xlu0 %1032  ;;  %v1037_v23 = vpop.permute.xlu1 %1036 }
 0x6f1   :  { %v1039_v22 = vmul.f32 %v1033_v27, %v3165_v33  ;;  %v1040_v12 = vmul.f32 %v1033_v27, %v3169_v35  ;;  %v1042_v44 = vmul.f32 %v1037_v23, %v3194_v46  ;;  %v1041_v6 = vmul.f32 %v1033_v27, %v3179_v39 }
 0x6f2   :  { %v1043_v3 = vmul.f32 %v1037_v23, %v3234_v4  ;;  %v1044_v24 = vmul.f32 %v1037_v23, %v3251_v15 }
 0x6f3   :  { %1053 = vrot.lane.b32.xlu1 %v1040_v12, %s3008_s17  ;;  %1051 = vrot.lane.b32.xlu2 %v1039_v22, %s3008_s17  ;;  %v3639_v12 = vpop.permute.xlu2 %757 }
 0x6f4   :  { %1057 = vrot.lane.b32.xlu0 %v1042_v44, %s3008_s17  ;;  %4858 = vst [vmem:[#allocation51_spill] sm:$0xff] %v3639_v12 }
 0x6fb   :  { %1059 = vrot.lane.b32.xlu1 %v1043_v3, %s3008_s17  ;;  %1055 = vrot.lane.b32.xlu2 %v1041_v6, %s3008_s17  ;;  %v3641_v22 = vpop.permute.xlu2 %761 }
 0x6fc   :  { %1081 = vperm.xlu0 %2894, %v3099_v2   ;;  %4859 = vst [vmem:[#allocation52_spill] sm:$0xff] %v3641_v22 }
 0x703   :  { %1085 = vperm.xlu1 %2895, %v3112_v8   ;;  %1061 = vrot.lane.b32.xlu2 %v1044_v24, %s3008_s17  ;;  %v3643_v44 = vpop.permute.xlu2 %767  ;;  %v3009_v8 = vmov 21   ;;  %v3010_v24 = vmov 22   ;;  %s3023_s17 = smov 106  }
 0x704   :  { %4860 = vst [vmem:[#allocation53_spill] sm:$0xff] %v3643_v44  ;;  %2897 = vset.pattern.permute.xlu2 %v3009_v8  ;;  %2898 = vset.pattern.permute.xlu0 %v3010_v24 }
 0x70b   :  { %v3645_v27 = vpop.permute.xlu2 %806  ;;  %2896 = vset.pattern.permute.xlu1 %v3009_v8 }
 0x70c   :  { %4861 = vst [vmem:[#allocation54_spill] sm:$0xff] %v3645_v27 }
 0x713   :  { %v3647_v14 = vpop.permute.xlu2 %810 }
 0x714   :  { %4862 = vst [vmem:[#allocation55_spill] sm:$0xff] %v3647_v14 }
 0x71b   :  { %v3649_v3 = vpop.permute.xlu2 %816 }
 0x71c   :  { %4863 = vst [vmem:[#allocation56_spill] sm:$0xff] %v3649_v3 }
 0x723   :  { %v3651_v2 = vpop.permute.xlu2 %855 }
 0x724   :  { %4864 = vst [vmem:[#allocation57_spill] sm:$0xff] %v3651_v2 }
 0x72b   :  { %v3653_v6 = vpop.permute.xlu2 %859 }
 0x72c   :  { %4865 = vst [vmem:[#allocation58_spill] sm:$0xff] %v3653_v6 }
 0x733   :  { %v3655_v23 = vpop.permute.xlu2 %865 }
 0x734   :  { %4866 = vst [vmem:[#allocation59_spill] sm:$0xff] %v3655_v23 }
 0x73b   :  { %v3657_v21 = vpop.permute.xlu2 %904 }
 0x73c   :  { %4867 = vst [vmem:[#allocation60_spill] sm:$0xff] %v3657_v21 }
 0x743   :  { %v3659_v44 = vpop.permute.xlu2 %908 }
 0x744   :  { %4868 = vst [vmem:[#allocation61_spill] sm:$0xff] %v3659_v44 }
 0x74b   :  { %v3667_v27 = vpop.permute.xlu2 %914 }
 0x74c   :  { %4872 = vst [vmem:[#allocation65_spill] sm:$0xff] %v3667_v27  ;;  %v2968_v27 = vld [vmem:[%s4706_s2] sm:$0xff] }
 0x753   :  { %v3677_v44 = vpop.permute.xlu2 %953 }
 0x754   :  { %4873 = vst [vmem:[#allocation66_spill] sm:$0xff] %v3677_v44 }
 0x765   :  { %v3661_v22 = vpop.permute.xlu1 %1053 }
 0x766   :  { %4869 = vst [vmem:[#allocation62_spill] sm:$0xff] %v3661_v22  ;;  %v3663_v14 = vpop.permute.xlu0 %1057 }
 0x767   :  { %4870 = vst [vmem:[#allocation63_spill] sm:$0xff] %v3663_v14  ;;  %v3016_v14 = vmov 29  }
 0x76d   :  { %v3665_v3 = vpop.permute.xlu1 %1059 }
 0x76e   :  { %4871 = vst [vmem:[#allocation64_spill] sm:$0xff] %v3665_v3  ;;  %v1082_v2 = vpop.permute.xlu0 %1081  ;;  %v3017_v3 = vmov 26  }
 0x76f   :  { %v1088_v23 = vmul.f32 %v1082_v2, %v3165_v33  ;;  %v1089_v6 = vmul.f32 %v1082_v2, %v3169_v35  ;;  %v1090_v21 = vmul.f32 %v1082_v2, %v3179_v39  ;;  %v3012_v2 = vmov 24  }
 0x771   :  { %1102 = vrot.lane.b32.xlu1 %v1089_v6, %s3011_s18  ;;  %1100 = vrot.lane.b32.xlu2 %v1088_v23, %s3011_s18  ;;  %v3685_v6 = vpop.permute.xlu2 %957  ;;  %v2969_v23 = vld [vmem:[%s4706_s2 + $0x8] sm:$0xff]  ;;  %s3022_s2 = smov 107  }
 0x772   :  { %4874 = vst [vmem:[#allocation67_spill] sm:$0xff] %v3685_v6  ;;  %v3015_v6 = vmov 25  }
 0x775   :  { %v3673_v8 = vpop.permute.xlu1 %1085 }
 0x776   :  { %v1091_v22 = vmul.f32 %v3673_v8, %v3194_v46 }
 0x778   :  { %1106 = vrot.lane.b32.xlu0 %v1091_v22, %s3011_s18  ;;  %v3013_v22 = vmov 23  }
 0x779   :  { %1130 = vperm.xlu1 %2896, %v2968_v27   ;;  %1104 = vrot.lane.b32.xlu2 %v1090_v21, %s3011_s18  ;;  %v3690_v44 = vpop.permute.xlu2 %963  ;;  %v3014_v21 = vmov 27  }
 0x77a   :  { %4875 = vst [vmem:[#allocation68_spill] sm:$0xff] %v3690_v44  ;;  %v4793_v44 = vmov 0  }
 0x780   :  { %1179 = vperm.xlu0 %2898, %v2968_v27  }
 0x781   :  { %2899 = vset.pattern.permute.xlu1 %v3010_v24  ;;  %1134 = vperm.xlu2 %2897, %v2969_v23   ;;  %v3692_v24 = vpop.permute.xlu2 %1002 }
 0x782   :  { %1183 = vperm.xlu1 %2899, %v2969_v23   ;;  %4876 = vst [vmem:[#allocation69_spill] sm:$0xff] %v3692_v24  ;;  %v3019_v24 = vmov 28  }
 0x788   :  { %2903 = vset.pattern.permute.xlu0 %v3012_v2 }
 0x789   :  { %2900 = vset.pattern.permute.xlu2 %v3013_v22  ;;  %1281 = vperm.xlu0 %2903, %v2969_v23  }
 0x78a   :  { %2901 = vset.pattern.permute.xlu1 %v3013_v22  ;;  %1228 = vperm.xlu2 %2900, %v2968_v27   ;;  %v3694_v22 = vpop.permute.xlu2 %1006 }
 0x78b   :  { %1232 = vperm.xlu1 %2901, %v2969_v23   ;;  %4877 = vst [vmem:[#allocation70_spill] sm:$0xff] %v3694_v22  ;;  %v1092_v22 = vmul.f32 %v3673_v8, %v3234_v4 }
 0x791   :  { %2908 = vset.pattern.permute.xlu0 %v3014_v21 }
 0x792   :  { %2902 = vset.pattern.permute.xlu2 %v3012_v2  ;;  %1424 = vperm.xlu0 %2908, %v2968_v27   ;;  %v3697_v2 = vpop.permute.xlu2 %1012 }
 0x793   :  { %2904 = vset.pattern.permute.xlu1 %v3015_v6  ;;  %1277 = vperm.xlu2 %2902, %v2968_v27   ;;  %4878 = vst [vmem:[#allocation71_spill] sm:$0xff] %v3697_v2  ;;  %v4882_v2 = vmov 0  }
 0x794   :  { %1326 = vperm.xlu1 %2904, %v2968_v27  }
 0x79a   :  { %2913 = vset.pattern.permute.xlu0 %v3016_v14 }
 0x79b   :  { %2905 = vset.pattern.permute.xlu2 %v3015_v6  ;;  %1526 = vperm.xlu0 %2913, %v2969_v23   ;;  %v3699_v6 = vpop.permute.xlu2 %1051 }
 0x79c   :  { %2906 = vset.pattern.permute.xlu1 %v3017_v3  ;;  %1330 = vperm.xlu2 %2905, %v2969_v23   ;;  %4879 = vst [vmem:[#allocation72_spill] sm:$0xff] %v3699_v6 }
 0x79d   :  { %1375 = vperm.xlu1 %2906, %v2968_v27  }
 0x7a3   :  { %2914 = vset.pattern.permute.xlu0 %v4793_v44  ;;  %v3021_v44 = vmov 31  }
 0x7a4   :  { %2907 = vset.pattern.permute.xlu2 %v3017_v3  ;;  %135 = vperm.xlu0 %2914, %v2968_v27   ;;  %v3020_v3 = vmov 30  }
 0x7a5   :  { %2909 = vset.pattern.permute.xlu1 %v3014_v21  ;;  %1379 = vperm.xlu2 %2907, %v2969_v23   ;;  %v3704_v21 = vpop.permute.xlu2 %1055 }
 0x7a6   :  { %1428 = vperm.xlu1 %2909, %v2969_v23   ;;  %4880 = vst [vmem:[#allocation73_spill] sm:$0xff] %v3704_v21 }
 0x7ac   :  { %140 = vperm.xlu0 %2914, %v2969_v23  }
 0x7ad   :  { %2910 = vset.pattern.permute.xlu2 %v3019_v24 }
 0x7ae   :  { %2911 = vset.pattern.permute.xlu1 %v3019_v24  ;;  %1473 = vperm.xlu2 %2910, %v2968_v27   ;;  %v3706_v24 = vpop.permute.xlu2 %1061 }
 0x7af   :  { %1477 = vperm.xlu1 %2911, %v2969_v23   ;;  %4881 = vst [vmem:[#allocation74_spill] sm:$0xff] %v3706_v24 }
 0x7b4   :  { %1108 = vrot.lane.b32.xlu0 %v1092_v22, %s3011_s18 }
 0x7b6   :  { %2912 = vset.pattern.permute.xlu2 %v3016_v14  ;;  %v4884_v14 = vmov 1  }
 0x7b7   :  { %2915 = vset.pattern.permute.xlu1 %v3020_v3  ;;  %1522 = vperm.xlu2 %2912, %v2968_v27  }
 0x7b8   :  { %1571 = vperm.xlu1 %2915, %v2968_v27  }
 0x7bf   :  { %2916 = vset.pattern.permute.xlu2 %v3020_v3 }
 0x7c0   :  { %2917 = vset.pattern.permute.xlu1 %v3021_v44  ;;  %1575 = vperm.xlu2 %2916, %v2969_v23  }
 0x7c1   :  { %1620 = vperm.xlu1 %2917, %v2968_v27  }
 0x7c8   :  { %2918 = vset.pattern.permute.xlu2 %v3021_v44 }
 0x7c9   :  { %1624 = vperm.xlu2 %2918, %v2969_v23   ;;  %2919 = vset.pattern.permute.xlu1 %v4882_v2 }
 0x7cb   :  { %v3709_v6 = vpop.permute.xlu2 %1100 }
 0x7cc   :  { %4883 = vst [vmem:[#allocation75_spill] sm:$0xff] %v3709_v6 }
 0x7d1   :  { %2920 = vset.pattern.permute.xlu2 %v4884_v14 }
 0x7d3   :  { %v3712_v22 = vpop.permute.xlu2 %1104 }
 0x7d4   :  { %4885 = vst [vmem:[#allocation76_spill] sm:$0xff] %v3712_v22 }
 0x7db   :  { %v1135_v12 = vpop.permute.xlu2 %1134 }
 0x7dc   :  { %v1140_v21 = vmul.f32 %v1135_v12, %v3194_v46 }
 0x7de   :  { %1155 = vrot.lane.b32.xlu0 %v1140_v21, %s3022_s2  ;;  %v1141_v21 = vmul.f32 %v1135_v12, %v3234_v4 }
 0x7e3   :  { %v3716_v3 = vpop.permute.xlu1 %1102 }
 0x7e4   :  { %4886 = vst [vmem:[#allocation77_spill] sm:$0xff] %v3716_v3  ;;  %v3730_v3 = vpop.permute.xlu2 %1228 }
 0x7ea   :  { %v3718_v27 = vpop.permute.xlu0 %1106 }
 0x7eb   :  { %4887 = vst [vmem:[#allocation78_spill] sm:$0xff] %v3718_v27  ;;  %v1131_v44 = vpop.permute.xlu1 %1130 }
 0x7ec   :  { %v1137_v23 = vmul.f32 %v1131_v44, %v3165_v33  ;;  %v1138_v2 = vmul.f32 %v1131_v44, %v3169_v35 }
 0x7ed   :  { %v3749_v34 = vpop.permute.xlu2 %1277 }
 0x7ee   :  { %1149 = vrot.lane.b32.xlu1 %v1137_v23, %s3022_s2  ;;  %1151 = vrot.lane.b32.xlu2 %v1138_v2, %s3022_s2  ;;  %v1093_v2 = vmul.f32 %v3673_v8, %v3251_v15  ;;  %v1235_v8 = vmul.f32 %v3730_v3, %v3165_v33  ;;  %4888 = vst [vmem:[#allocation79_spill] sm:$0xff] %v3749_v34 }
 0x7f2   :  { %v1180_v14 = vpop.permute.xlu0 %1179 }
 0x7f3   :  { %v1186_v24 = vmul.f32 %v1180_v14, %v3165_v33  ;;  %v1187_v22 = vmul.f32 %v1180_v14, %v3169_v35 }
 0x7f4   :  { %v1184_v6 = vpop.permute.xlu1 %1183 }
 0x7f5   :  { %1200 = vrot.lane.b32.xlu0 %v1187_v22, %s3023_s17  ;;  %v1189_v27 = vmul.f32 %v1184_v6, %v3194_v46  ;;  %v1190_v61 = vmul.f32 %v1184_v6, %v3234_v4 }
 0x7f6   :  { %1198 = vrot.lane.b32.xlu2 %v1186_v24, %s3023_s17  ;;  %1157 = vrot.lane.b32.xlu1 %v1141_v21, %s3022_s2  ;;  %v1236_v21 = vmul.f32 %v3730_v3, %v3169_v35  ;;  %v3763_v51 = vpop.permute.xlu2 %1330 }
 0x7fb   :  { %v3734_v23 = vpop.permute.xlu0 %1281 }
 0x7fd   :  { %1110 = vrot.lane.b32.xlu0 %v1093_v2, %s3011_s18  ;;  %v3741_v24 = vpop.permute.xlu1 %1232  ;;  %s3024_s18 = smov 105  }
 0x7fe   :  { %1206 = vrot.lane.b32.xlu2 %v1190_v61, %s3023_s17  ;;  %1204 = vrot.lane.b32.xlu1 %v1189_v27, %s3023_s17  ;;  %v1238_v22 = vmul.f32 %v3741_v24, %v3194_v46  ;;  %v1142_v61 = vmul.f32 %v1135_v12, %v3251_v15  ;;  %v1139_v27 = vmul.f32 %v1131_v44, %v3179_v39 }
 0x7ff   :  { %v1239_v2 = vmul.f32 %v3741_v24, %v3234_v4  ;;  %v1284_v12 = vmul.f32 %v3749_v34, %v3165_v33  ;;  %v1285_v44 = vmul.f32 %v3749_v34, %v3169_v35 }
 0x804   :  { %v3751_v60 = vpop.permute.xlu0 %1424 }
 0x805   :  { %4889 = vst [vmem:[#allocation80_spill] sm:$0xff] %v3751_v60  ;;  %1253 = vrot.lane.b32.xlu0 %v1238_v22, %s3024_s18  ;;  %v1287_v22 = vmul.f32 %v3734_v23, %v3194_v46  ;;  %v1191_v60 = vmul.f32 %v1184_v6, %v3251_v15 }
 0x806   :  { %1249 = vrot.lane.b32.xlu2 %v1236_v21, %s3024_s18  ;;  %1247 = vrot.lane.b32.xlu1 %v1235_v8, %s3024_s18 }
 0x80d   :  { %v3760_v41 = vpop.permute.xlu0 %1526  ;;  %1159 = vrot.lane.b32.xlu0 %v1142_v61, %s3022_s2 }
 0x80e   :  { %4890 = vst [vmem:[#allocation81_spill] sm:$0xff] %v3760_v41  ;;  %1153 = vrot.lane.b32.xlu2 %v1139_v27, %s3022_s2  ;;  %1255 = vrot.lane.b32.xlu1 %v1239_v2, %s3024_s18  ;;  %v182_v27 = vsel %vm181_vm2, %v3527_v9, %v3529_v7  ;;  %v3781_v2 = vpop.permute.xlu2 %1379  ;;  %s3029_s2 = smov 100  }
 0x80f   :  { %4891 = vst [vmem:[#allocation82_spill] sm:$0xff] %v3781_v2 }
 0x815   :  { %1302 = vrot.lane.b32.xlu0 %v1287_v22, %s3025_s19 }
 0x816   :  { %1298 = vrot.lane.b32.xlu2 %v1285_v44, %s3025_s19  ;;  %1296 = vrot.lane.b32.xlu1 %v1284_v12, %s3025_s19  ;;  %v136_v8 = vpop.permute.xlu0 %135  ;;  %v231_v12 = vsel %vm230_vm3, %v3288_v36, %v3290_v31  ;;  %v183_v44 = vsel %vm181_vm2, %v3529_v7, %v3295_v38  ;;  %v329_v7 = vsel %vm328_vm5, %v3533_v30, %v3304_v43 }
 0x817   :  { %v143_v21 = vmul.f32 %v136_v8, %v3165_v33  ;;  %v145_v61 = vmul.f32 %v136_v8, %v3179_v39  ;;  %v144_v41 = vmul.f32 %v136_v8, %v3169_v35  ;;  %v280_v8 = vsel %vm279_vm4, %v3531_v16, %v3297_v40 }
 0x818   :  { %v232_v16 = vsel %vm230_vm3, %v3290_v31, %v3553_v28  ;;  %v378_v30 = vsel %vm377_vm6, %v3537_v29, %v3311_v47  ;;  %v281_v31 = vsel %vm279_vm4, %v3297_v40, %v3557_v32  ;;  %v282_v40 = vsel %vm279_vm4, %v3309_v45, %v3331_v57 }
 0x819   :  { %v192_v22 = vadd.f32 %v182_v27, %v143_v21  ;;  %v194_v34 = vadd.f32 %v3295_v38, %v145_v61  ;;  %v1188_v21 = vmul.f32 %v1180_v14, %v3179_v39  ;;  %v1288_v27 = vmul.f32 %v3734_v23, %v3234_v4 }
 0x81a   :  { %v193_v36 = vadd.f32 %v183_v44, %v144_v41  ;;  %v330_v45 = vsel %vm328_vm5, %v3304_v43, %v3559_v13  ;;  %v380_v43 = vsel %vm377_vm6, %v3321_v52, %v3337_v62 }
 0x81b   :  { %v241_v9 = vadd.f32 %v231_v12, %v192_v22  ;;  %v243_v6 = vadd.f32 %v3553_v28, %v194_v34  ;;  %v3812_v22 = vpop.permute.xlu1 %1326  ;;  %v233_v28 = vsel %vm230_vm3, %v3302_v42, %v3327_v55  ;;  %v3823_v34 = vpop.permute.xlu2 %1473 }
 0x81c   :  { %v242_v14 = vadd.f32 %v232_v16, %v193_v36  ;;  %v1333_v36 = vmul.f32 %v3812_v22, %v3165_v33 }
 0x81d   :  { %v290_v2 = vadd.f32 %v280_v8, %v241_v9  ;;  %1208 = vrot.lane.b32.xlu0 %v1191_v60, %s3023_s17  ;;  %v184_v60 = vsel %vm181_vm2, %v3323_v53, %v3565_v63  ;;  %v292_v44 = vadd.f32 %v3557_v32, %v243_v6  ;;  %v1334_v8 = vmul.f32 %v3812_v22, %v3169_v35 }
 0x81e   :  { %1202 = vrot.lane.b32.xlu2 %v1188_v21, %s3023_s17  ;;  %1304 = vrot.lane.b32.xlu1 %v1288_v27, %s3025_s19  ;;  %v141_v38 = vpop.permute.xlu0 %140  ;;  %v291_v42 = vadd.f32 %v281_v31, %v242_v14  ;;  %v427_v27 = vsel %vm426_vm7, %v3543_v0, %v3317_v50  ;;  %s3030_s17 = smov 99  }
 0x81f   :  { %v146_v41 = vmul.f32 %v141_v38, %v3194_v46  ;;  %v339_v61 = vadd.f32 %v329_v7, %v290_v2  ;;  %v148_v53 = vmul.f32 %v141_v38, %v3251_v15  ;;  %v1336_v2 = vmul.f32 %v3763_v51, %v3194_v46 }
 0x820   :  { %v147_v9 = vmul.f32 %v141_v38, %v3234_v4  ;;  %v331_v38 = vsel %vm328_vm5, %v3315_v49, %v3335_v59  ;;  %v185_v7 = vsel %vm181_vm2, %v3565_v63, %v3333_v58  ;;  %v341_v16 = vadd.f32 %v3559_v13, %v292_v44 }
 0x821   :  { %v195_v12 = vadd.f32 %v184_v60, %v146_v41  ;;  %v388_v21 = vadd.f32 %v378_v30, %v339_v61  ;;  %v197_v0 = vadd.f32 %v3333_v58, %v148_v53  ;;  %v340_v49 = vadd.f32 %v330_v45, %v291_v42  ;;  %v4897_v45 = vld [vmem:[#allocation36_spill] sm:$0xff] }
 0x822   :  { %v196_v6 = vadd.f32 %v185_v7, %v147_v9  ;;  %v379_v63 = vsel %vm377_vm6, %v3311_v47, %v3561_v1  ;;  %v429_v58 = vsel %vm426_vm7, %v3325_v54, %v3343_v5  ;;  %v476_v13 = vsel %vm475_vm8, %v3548_v25, %v3349_v10  ;;  %v4898_v7 = vld [vmem:[#allocation7_spill] sm:$0xff] }
 0x823   :  { %v244_v29 = vadd.f32 %v233_v28, %v195_v12  ;;  %v437_v60 = vadd.f32 %v427_v27, %v388_v21  ;;  %v234_v61 = vsel %vm230_vm3, %v3327_v55, %v3569_v37  ;;  %v246_v52 = vadd.f32 %v3569_v37, %v197_v0  ;;  %v3878_v28 = vpop.permute.xlu2 %1522  ;;  %v4895_v27 = vld [vmem:[#allocation27_spill] sm:$0xff]  ;;  %v4899_v0 = vld [vmem:[#allocation6_spill] sm:$0xff] }
 0x824   :  { %v1240_v12 = vmul.f32 %v3741_v24, %v3251_v15  ;;  %v390_v47 = vadd.f32 %v3561_v1, %v341_v16  ;;  %v245_v30 = vadd.f32 %v234_v61, %v196_v6  ;;  %v478_v54 = vsel %vm475_vm8, %v3329_v56, %v3351_v11 }
 0x825   :  { %v293_v32 = vadd.f32 %v282_v40, %v244_v29  ;;  %1351 = vrot.lane.b32.xlu0 %v1336_v2, %s3026_s14  ;;  %v1237_v25 = vmul.f32 %v3730_v3, %v3179_v39  ;;  %v389_v55 = vadd.f32 %v379_v63, %v340_v49  ;;  %v486_v53 = vadd.f32 %v476_v13, %v437_v60  ;;  %v4893_v40 = vld [vmem:[#allocation2_spill] sm:$0xff]  ;;  %v4902_v63 = vld [vmem:[#allocation8_spill] sm:$0xff] }
 0x826   :  { %1347 = vrot.lane.b32.xlu2 %v1334_v8, %s3026_s14  ;;  %1345 = vrot.lane.b32.xlu1 %v1333_v36, %s3026_s14  ;;  %v428_v37 = vsel %vm426_vm7, %v3317_v50, %v3563_v48  ;;  %v1337_v1 = vmul.f32 %v3763_v51, %v3234_v4  ;;  %v283_v56 = vsel %vm279_vm4, %v3331_v57, %v3571_v17  ;;  %v4892_v57 = vld [vmem:[#allocation4_spill] sm:$0xff]  ;;  %v4901_v60 = vld [vmem:[#allocation10_spill] sm:$0xff]  ;;  %vm965_vm2 = vcmask 908288  }
 0x827   :  { %v342_v41 = vadd.f32 %v331_v38, %v293_v32  ;;  %v525_v3 = vsel %vm524_vm9, %v3592_v26, %v3363_v18  ;;  %v527_v2 = vsel %vm524_vm9, %v3365_v19, %v3367_v20  ;;  %v295_v50 = vadd.f32 %v3571_v17, %v246_v52  ;;  %v3902_v26 = vpop.permute.xlu1 %1375  ;;  %v4894_v19 = vld [vmem:[#allocation26_spill] sm:$0xff]  ;;  %v4896_v32 = vld [vmem:[#allocation3_spill] sm:$0xff]  ;;  %v4903_v52 = vld [vmem:[#allocation28_spill] sm:$0xff] }
 0x828   :  { %v439_v44 = vadd.f32 %v3563_v48, %v390_v47  ;;  %v294_v9 = vadd.f32 %v283_v56, %v245_v30  ;;  %v576_v8 = vsel %vm573_vm10, %v4893_v40, %v4892_v57  ;;  %v438_v42 = vadd.f32 %v428_v37, %v389_v55  ;;  %v4906_v55 = vld [vmem:[#allocation39_spill] sm:$0xff]  ;;  %v4907_v37 = vld [vmem:[#allocation13_spill] sm:$0xff] }
 0x829   :  { %v391_v14 = vadd.f32 %v380_v43, %v342_v41  ;;  %v535_v21 = vadd.f32 %v525_v3, %v486_v53  ;;  %v477_v17 = vsel %vm475_vm8, %v3349_v10, %v4894_v19  ;;  %v332_v48 = vsel %vm328_vm5, %v3335_v59, %v4895_v27  ;;  %v4900_v41 = vld [vmem:[#allocation82_spill] sm:$0xff] }
 0x82a   :  { %v574_v38 = vsel %vm573_vm10, %v4897_v45, %v4896_v32  ;;  %v625_v16 = vsel %vm622_vm11, %v4899_v0, %v4898_v7  ;;  %v344_v6 = vadd.f32 %v4895_v27, %v295_v50  ;;  %v1385_v10 = vmul.f32 %v4900_v41, %v3194_v46  ;;  %v4913_v27 = vld [vmem:[#allocation9_spill] sm:$0xff]  ;;  %v4915_v45 = vld [vmem:[#allocation19_spill] sm:$0xff] }
 0x82b   :  { %v440_v31 = vadd.f32 %v429_v58, %v391_v14  ;;  %v488_v43 = vadd.f32 %v4894_v19, %v439_v44  ;;  %v343_v49 = vadd.f32 %v332_v48, %v294_v9  ;;  %v674_v58 = vsel %vm671_vm12, %v4902_v63, %v4901_v60  ;;  %v4910_v44 = vld [vmem:[#allocation14_spill] sm:$0xff] }
 0x82c   :  { %v1383_v14 = vmul.f32 %v3902_v26, %v3169_v35  ;;  %v487_v13 = vadd.f32 %v477_v17, %v438_v42  ;;  %v584_v61 = vadd.f32 %v574_v38, %v535_v21  ;;  %v1382_v47 = vmul.f32 %v3902_v26, %v3165_v33  ;;  %v4912_v21 = vld [vmem:[#allocation37_spill] sm:$0xff]  ;;  %v4914_v48 = vld [vmem:[#allocation42_spill] sm:$0xff] }
 0x82d   :  { %v489_v24 = vadd.f32 %v478_v54, %v440_v31  ;;  %1257 = vrot.lane.b32.xlu0 %v1240_v12, %s3024_s18  ;;  %v381_v12 = vsel %vm377_vm6, %v3337_v62, %v4903_v52  ;;  %v4904_v31 = vld [vmem:[#allocation34_spill] sm:$0xff]  ;;  %v393_v56 = vadd.f32 %v4903_v52, %v344_v6  ;;  %v575_v19 = vsel %vm573_vm10, %v4896_v32, %v4912_v21  ;;  %v4920_v52 = vld [vmem:[#allocation33_spill] sm:$0xff] }
 0x82e   :  { %1251 = vrot.lane.b32.xlu2 %v1237_v25, %s3024_s18  ;;  %1353 = vrot.lane.b32.xlu1 %v1337_v1, %s3026_s14  ;;  %v526_v54 = vsel %vm524_vm9, %v3363_v18, %v4904_v31  ;;  %v4905_v25 = vld [vmem:[#allocation5_spill] sm:$0xff]  ;;  %v4908_v1 = vld [vmem:[#allocation12_spill] sm:$0xff]  ;;  %v537_v3 = vadd.f32 %v4904_v31, %v488_v43  ;;  %v4916_v38 = vld [vmem:[#allocation18_spill] sm:$0xff]  ;;  %vm1014_vm3 = vcmask 900096   ;;  %vm1063_vm4 = vcmask 891904   ;;  %s3031_s18 = smov 98  }
 0x82f   :  { %v538_v29 = vadd.f32 %v527_v2, %v489_v24  ;;  %v623_v53 = vsel %vm622_vm11, %v4906_v55, %v4905_v25  ;;  %v723_v62 = vsel %vm720_vm13, %v4908_v1, %v4907_v37  ;;  %v3940_v24 = vpop.permute.xlu2 %1575  ;;  %v392_v2 = vadd.f32 %v381_v12, %v343_v49  ;;  %v4909_v18 = vld [vmem:[#allocation16_spill] sm:$0xff]  ;;  %v4917_v49 = vld [vmem:[#allocation22_spill] sm:$0xff]  ;;  %v4924_v1 = vld [vmem:[#allocation25_spill] sm:$0xff] }
 0x830   :  { %v772_v9 = vsel %vm769_vm14, %v4910_v44, %v4909_v18  ;;  %v633_v40 = vadd.f32 %v623_v53, %v584_v61  ;;  %v821_v0 = vsel %vm818_vm15, %v4916_v38, %v4915_v45  ;;  %v586_v32 = vadd.f32 %v4912_v21, %v537_v3  ;;  %v4923_v55 = vld [vmem:[#allocation48_spill] sm:$0xff]  ;;  %v4927_v44 = vld [vmem:[#allocation30_spill] sm:$0xff]  ;;  %v4931_v38 = vld [vmem:[#allocation51_spill] sm:$0xff] }
 0x831   :  { %v587_v36 = vadd.f32 %v576_v8, %v538_v29  ;;  %v536_v29 = vadd.f32 %v526_v54, %v487_v13  ;;  %v4911_v8 = vld [vmem:[#allocation31_spill] sm:$0xff]  ;;  %v479_v12 = vsel %vm475_vm8, %v3351_v11, %v4920_v52  ;;  %vm1112_vm5 = vcmask 883712  }
 0x832   :  { %v430_v42 = vsel %vm426_vm7, %v3343_v5, %v4911_v8  ;;  %v442_v6 = vadd.f32 %v4911_v8, %v393_v56  ;;  %v1289_v5 = vmul.f32 %v3734_v23, %v3251_v15  ;;  %v1386_v23 = vmul.f32 %v4900_v41, %v3234_v4  ;;  %v4922_v54 = vld [vmem:[#allocation11_spill] sm:$0xff] }
 0x833   :  { %v636_v59 = vadd.f32 %v625_v16, %v587_v36  ;;  %v672_v36 = vsel %vm671_vm12, %v4914_v48, %v4913_v27  ;;  %v3961_v16 = vpop.permute.xlu1 %1428  ;;  %v585_v13 = vadd.f32 %v575_v19, %v536_v29  ;;  %v721_v53 = vsel %vm720_vm13, %v4923_v55, %v4922_v54  ;;  %v4929_v19 = vld [vmem:[#allocation43_spill] sm:$0xff]  ;;  %v4937_v55 = vld [vmem:[#allocation38_spill] sm:$0xff] }
 0x834   :  { %v682_v61 = vadd.f32 %v672_v36, %v633_v40  ;;  %v491_v11 = vadd.f32 %v4920_v52, %v442_v6  ;;  %v4930_v36 = vld [vmem:[#allocation15_spill] sm:$0xff]  ;;  %vm1161_vm6 = vcmask 875520   ;;  %vm1210_vm7 = vcmask 867328  }
 0x835   :  { %v685_v30 = vadd.f32 %v674_v58, %v636_v59  ;;  %1400 = vrot.lane.b32.xlu0 %v1385_v10, %s3027_s15  ;;  %v441_v10 = vadd.f32 %v430_v42, %v392_v2  ;;  %v4918_v59 = vld [vmem:[#allocation20_spill] sm:$0xff]  ;;  %v4919_v58 = vld [vmem:[#allocation79_spill] sm:$0xff]  ;;  %vm1259_vm8 = vcmask 859136  }
 0x836   :  { %1396 = vrot.lane.b32.xlu2 %v1383_v14, %s3027_s15  ;;  %1394 = vrot.lane.b32.xlu1 %v1382_v47, %s3027_s15  ;;  %v870_v63 = vsel %vm867_vm0, %v4918_v59, %v4917_v49  ;;  %v1286_v14 = vmul.f32 %v4919_v58, %v3179_v39  ;;  %v731_v8 = vadd.f32 %v721_v53, %v682_v61  ;;  %v4928_v42 = vld [vmem:[#allocation35_spill] sm:$0xff]  ;;  %v4011_v59 = vpop.permute.xlu0 %1108  ;;  %v4934_v58 = vld [vmem:[#allocation64_spill] sm:$0xff] }
 0x837   :  { %v734_v50 = vadd.f32 %v723_v62, %v685_v30  ;;  %v4921_v30 = vld [vmem:[#allocation40_spill] sm:$0xff]  ;;  %v490_v2 = vadd.f32 %v479_v12, %v441_v10  ;;  %v3994_v40 = vpop.permute.xlu2 %1624  ;;  %v528_v21 = vsel %vm524_vm9, %v3367_v20, %v4928_v42  ;;  %v4932_v6 = vld [vmem:[#allocation47_spill] sm:$0xff]  ;;  %v540_v10 = vadd.f32 %v4928_v42, %v491_v11 }
 0x838   :  { %v624_v31 = vsel %vm622_vm11, %v4905_v25, %v4921_v30  ;;  %v4925_v62 = vld [vmem:[#allocation24_spill] sm:$0xff]  ;;  %v635_v3 = vadd.f32 %v4921_v30, %v586_v32  ;;  %v1434_v20 = vmul.f32 %v3961_v16, %v3194_v46  ;;  %v577_v53 = vsel %vm573_vm10, %v4892_v57, %v4937_v55 }
 0x839   :  { %v783_v17 = vadd.f32 %v772_v9, %v734_v50  ;;  %v919_v56 = vsel %vm916_vm1, %v4925_v62, %v4924_v1  ;;  %v4926_v25 = vld [vmem:[#allocation32_spill] sm:$0xff]  ;;  %v634_v29 = vadd.f32 %v624_v31, %v585_v13  ;;  %v4938_v62 = vld [vmem:[#allocation49_spill] sm:$0xff]  ;;  %v589_v11 = vadd.f32 %v4937_v55, %v540_v10 }
 0x83a   :  { %v968_v9 = vsel %vm965_vm2, %v4927_v44, %v4926_v25  ;;  %v4936_v61 = vld [vmem:[#allocation80_spill] sm:$0xff]  ;;  %v4941_v44 = vld [vmem:[#allocation54_spill] sm:$0xff]  ;;  %vm1308_vm9 = vcmask 850944   ;;  %vm1357_vm10 = vcmask 842752  }
 0x83b   :  { %v832_v43 = vadd.f32 %v821_v0, %v783_v17  ;;  %v673_v17 = vsel %vm671_vm12, %v4913_v27, %v4929_v19  ;;  %v770_v0 = vsel %vm769_vm14, %v4931_v38, %v4930_v36  ;;  %v1432_v52 = vmul.f32 %v4936_v61, %v3169_v35  ;;  %v4019_v12 = vpop.permute.xlu1 %1477 }
 0x83c   :  { %v1431_v30 = vmul.f32 %v4936_v61, %v3165_v33 }
 0x83d   :  { %v881_v47 = vadd.f32 %v870_v63, %v832_v43  ;;  %1306 = vrot.lane.b32.xlu0 %v1289_v5, %s3025_s19  ;;  %v4933_v5 = vld [vmem:[#allocation46_spill] sm:$0xff]  ;;  %v539_v43 = vadd.f32 %v528_v21, %v490_v2  ;;  %v684_v63 = vadd.f32 %v4929_v19, %v635_v3  ;;  %v4942_v19 = vld [vmem:[#allocation41_spill] sm:$0xff] }
 0x83e   :  { %1300 = vrot.lane.b32.xlu2 %v1286_v14, %s3025_s19  ;;  %1402 = vrot.lane.b32.xlu1 %v1386_v23, %s3027_s15  ;;  %v1017_v32 = vsel %vm1014_vm3, %v4933_v5, %v4932_v6  ;;  %v4935_v14 = vld [vmem:[#allocation63_spill] sm:$0xff]  ;;  %v780_v23 = vadd.f32 %v770_v0, %v731_v8  ;;  %v4939_v3 = vld [vmem:[#allocation78_spill] sm:$0xff]  ;;  %v638_v0 = vadd.f32 %v4942_v19, %v589_v11  ;;  %v4944_v5 = vld [vmem:[#allocation21_spill] sm:$0xff]  ;;  %s3032_s19 = smov 97  }
 0x83f   :  { %v930_v50 = vadd.f32 %v919_v56, %v881_v47  ;;  %v1066_v13 = vsel %vm1063_vm4, %v4935_v14, %v4934_v58  ;;  %v683_v47 = vadd.f32 %v673_v17, %v634_v29  ;;  %v722_v56 = vsel %vm720_vm13, %v4922_v54, %v4938_v62 }
 0x840   :  { %v1115_v2 = vsel %vm1112_vm5, %v4939_v3, %v4011_v59  ;;  %v588_v29 = vadd.f32 %v577_v53, %v539_v43  ;;  %v733_v57 = vadd.f32 %v4938_v62, %v684_v63  ;;  %v626_v17 = vsel %vm622_vm11, %v4898_v7, %v4942_v19  ;;  %v4950_v3 = vld [vmem:[#allocation50_spill] sm:$0xff] }
 0x841   :  { %v979_v48 = vadd.f32 %v968_v9, %v930_v50  ;;  %v4940_v50 = vld [vmem:[#allocation17_spill] sm:$0xff]  ;;  %v732_v21 = vadd.f32 %v722_v56, %v683_v47  ;;  %v1335_v63 = vmul.f32 %v3812_v22, %v3179_v39  ;;  %v4947_v47 = vld [vmem:[#allocation55_spill] sm:$0xff]  ;;  %vm1406_vm11 = vcmask 834560  }
 0x842   :  { %v819_v9 = vsel %vm818_vm15, %v4941_v44, %v4940_v50  ;;  %v820_v22 = vsel %vm818_vm15, %v4940_v50, %v4947_v47  ;;  %v4951_v44 = vld [vmem:[#allocation58_spill] sm:$0xff] }
 0x843   :  { %v1028_v27 = vadd.f32 %v1017_v32, %v979_v48  ;;  %v829_v42 = vadd.f32 %v819_v9, %v780_v23  ;;  %v4943_v48 = vld [vmem:[#allocation52_spill] sm:$0xff]  ;;  %v4945_v32 = vld [vmem:[#allocation57_spill] sm:$0xff]  ;;  %v4065_v23 = vpop.permute.xlu1 %1571  ;;  %v869_v50 = vsel %vm867_vm0, %v4944_v5, %v4951_v44 }
 0x844   :  { %v771_v38 = vsel %vm769_vm14, %v4930_v36, %v4943_v48  ;;  %v868_v10 = vsel %vm867_vm0, %v4945_v32, %v4944_v5  ;;  %v782_v43 = vadd.f32 %v4943_v48, %v733_v57  ;;  %v1435_v36 = vmul.f32 %v3961_v16, %v3234_v4  ;;  %v4953_v57 = vld [vmem:[#allocation66_spill] sm:$0xff]  ;;  %v4954_v5 = vld [vmem:[#allocation53_spill] sm:$0xff] }
 0x845   :  { %v1077_v31 = vadd.f32 %v1066_v13, %v1028_v27  ;;  %1449 = vrot.lane.b32.xlu0 %v1434_v20, %s3028_s16  ;;  %v1338_v20 = vmul.f32 %v3763_v51, %v3251_v15  ;;  %v637_v27 = vadd.f32 %v626_v17, %v588_v29  ;;  %v878_v7 = vadd.f32 %v868_v10, %v829_v42  ;;  %v4946_v13 = vld [vmem:[#allocation45_spill] sm:$0xff] }
 0x846   :  { %1445 = vrot.lane.b32.xlu2 %v1432_v52, %s3028_s16  ;;  %1443 = vrot.lane.b32.xlu1 %v1431_v30, %s3028_s16  ;;  %v781_v14 = vadd.f32 %v771_v38, %v732_v21  ;;  %v675_v52 = vsel %vm671_vm12, %v4901_v60, %v4946_v13  ;;  %v687_v51 = vadd.f32 %v4946_v13, %v638_v0  ;;  %v4948_v30 = vld [vmem:[#allocation23_spill] sm:$0xff]  ;;  %v4952_v29 = vld [vmem:[#allocation29_spill] sm:$0xff]  ;;  %vm1455_vm12 = vcmask 826368  }
 0x847   :  { %v4038_v8 = vadd.f32 %v1115_v2, %v1077_v31  ;;  %v4949_v31 = vld [vmem:[#allocation60_spill] sm:$0xff]  ;;  %v831_v53 = vadd.f32 %v4947_v47, %v782_v43  ;;  %v686_v62 = vadd.f32 %v675_v52, %v637_v27  ;;  %v724_v2 = vsel %vm720_vm13, %v4907_v37, %v4950_v3 }
 0x848   :  { %v4042_v54 = vpop.permute.xlu2 %1151  ;;  %v917_v55 = vsel %vm916_vm1, %v4949_v31, %v4948_v30  ;;  %v830_v11 = vadd.f32 %v820_v22, %v781_v14  ;;  %v736_v9 = vadd.f32 %v4950_v3, %v687_v51  ;;  %v966_v42 = vsel %vm965_vm2, %v4953_v57, %v4952_v29  ;;  %v4956_v27 = vld [vmem:[#allocation44_spill] sm:$0xff] }
 0x849   :  { %v927_v56 = vadd.f32 %v917_v55, %v878_v7  ;;  %v1483_v21 = vmul.f32 %v4019_v12, %v3194_v46  ;;  %v880_v19 = vadd.f32 %v4951_v44, %v831_v53  ;;  %v735_v17 = vadd.f32 %v724_v2, %v686_v62  ;;  %v4958_v47 = vld [vmem:[#allocation56_spill] sm:$0xff]  ;;  %v4960_v53 = vld [vmem:[#allocation62_spill] sm:$0xff] }
 0x84a   :  { %v1481_v48 = vmul.f32 %v3823_v34, %v3169_v35  ;;  %v879_v38 = vadd.f32 %v869_v50, %v830_v11  ;;  %v1480_v0 = vmul.f32 %v3823_v34, %v3165_v33  ;;  %v773_v32 = vsel %vm769_vm14, %v4909_v18, %v4954_v5  ;;  %v4961_v62 = vld [vmem:[#allocation72_spill] sm:$0xff] }
 0x84b   :  { %v976_v37 = vadd.f32 %v966_v42, %v927_v56  ;;  %v785_v10 = vadd.f32 %v4954_v5, %v736_v9  ;;  %v4110_v13 = vpop.permute.xlu1 %1620  ;;  %v822_v22 = vsel %vm818_vm15, %v4915_v45, %v4958_v47  ;;  %v1064_v56 = vsel %vm1063_vm4, %v4961_v62, %v4960_v53  ;;  %v4963_v42 = vld [vmem:[#allocation70_spill] sm:$0xff]  ;;  %v4970_v62 = vld [vmem:[#allocation76_spill] sm:$0xff] }
 0x84c   :  { %v1387_v11 = vmul.f32 %v4900_v41, %v3251_v15  ;;  %v1384_v44 = vmul.f32 %v3902_v26, %v3179_v39  ;;  %v1484_v9 = vmul.f32 %v4019_v12, %v3234_v4  ;;  %v1016_v26 = vsel %vm1014_vm3, %v4956_v27, %v4963_v42 }
 0x84d   :  { %1355 = vrot.lane.b32.xlu0 %v1338_v20, %s3026_s14  ;;  %v4955_v20 = vld [vmem:[#allocation61_spill] sm:$0xff]  ;;  %v834_v55 = vadd.f32 %v4958_v47, %v785_v10  ;;  %vm1504_vm13 = vcmask 818176   ;;  %vm1866_vm14 = vcmask 1046528   ;;  %vm1867_vm15 = vcmask 1047552  }
 0x84e   :  { %1349 = vrot.lane.b32.xlu2 %v1335_v63, %s3026_s14  ;;  %1451 = vrot.lane.b32.xlu1 %v1435_v36, %s3028_s16  ;;  %v918_v43 = vsel %vm916_vm1, %v4948_v30, %v4955_v20  ;;  %v4957_v63 = vld [vmem:[#allocation69_spill] sm:$0xff]  ;;  %v929_v14 = vadd.f32 %v4955_v20, %v880_v19  ;;  %v784_v36 = vadd.f32 %v773_v32, %v735_v17  ;;  %v4959_v30 = vld [vmem:[#allocation67_spill] sm:$0xff] }
 0x84f   :  { %v1015_v7 = vsel %vm1014_vm3, %v4957_v63, %v4956_v27  ;;  %v928_v51 = vadd.f32 %v918_v43, %v879_v38  ;;  %v967_v31 = vsel %vm965_vm2, %v4952_v29, %v4959_v30  ;;  %v4962_v29 = vld [vmem:[#allocation59_spill] sm:$0xff]  ;;  %v4966_v20 = vld [vmem:[#allocation65_spill] sm:$0xff] }
 0x850   :  { %v4077_v60 = vpop.permute.xlu2 %1198  ;;  %v1025_v52 = vadd.f32 %v1015_v7, %v976_v37  ;;  %v978_v3 = vadd.f32 %v4959_v30, %v929_v14  ;;  %v833_v2 = vadd.f32 %v822_v22, %v784_v36  ;;  %v871_v57 = vsel %vm867_vm0, %v4917_v49, %v4962_v29  ;;  %v4965_v19 = vld [vmem:[#allocation75_spill] sm:$0xff]  ;;  %v4967_v7 = vld [vmem:[#allocation73_spill] sm:$0xff] }
 0x851   :  { %v977_v50 = vadd.f32 %v967_v31, %v928_v51  ;;  %v883_v41 = vadd.f32 %v4962_v29, %v834_v55  ;;  %v920_v43 = vsel %vm916_vm1, %v4924_v1, %v4966_v20  ;;  %v1065_v14 = vsel %vm1063_vm4, %v4960_v53, %v4967_v7  ;;  %v4968_v36 = vld [vmem:[#allocation81_spill] sm:$0xff]  ;;  %v4969_v31 = vld [vmem:[#allocation68_spill] sm:$0xff] }
 0x852   :  { %v1074_v45 = vadd.f32 %v1064_v56, %v1025_v52  ;;  %v1027_v37 = vadd.f32 %v4963_v42, %v978_v3  ;;  %v882_v38 = vadd.f32 %v871_v57, %v833_v2  ;;  %v1532_v52 = vmul.f32 %v4968_v36, %v3194_v46  ;;  %v4971_v42 = vld [vmem:[#allocation71_spill] sm:$0xff] }
 0x853   :  { %v1026_v32 = vadd.f32 %v1016_v26, %v977_v50  ;;  %v932_v63 = vadd.f32 %v4966_v20, %v883_v41  ;;  %v1530_v22 = vmul.f32 %v3878_v28, %v3169_v35  ;;  %v1529_v1 = vmul.f32 %v3878_v28, %v3165_v33 }
 0x854   :  { %v1076_v51 = vadd.f32 %v4967_v7, %v1027_v37  ;;  %v931_v47 = vadd.f32 %v920_v43, %v882_v38  ;;  %v969_v55 = vsel %vm965_vm2, %v4926_v25, %v4969_v31  ;;  %v1018_v26 = vsel %vm1014_vm3, %v4932_v6, %v4971_v42  ;;  %v4972_v38 = vld [vmem:[#allocation74_spill] sm:$0xff] }
 0x855   :  { %1498 = vrot.lane.b32.xlu0 %v1483_v21, %s3029_s2  ;;  %v4964_v21 = vld [vmem:[#allocation77_spill] sm:$0xff]  ;;  %v1075_v30 = vadd.f32 %v1065_v14, %v1026_v32  ;;  %v981_v53 = vadd.f32 %v4969_v31, %v932_v63  ;;  %v1067_v6 = vsel %vm1063_vm4, %v4934_v58, %v4972_v38  ;;  %v1579_v63 = vmul.f32 %v4065_v23, %v3169_v35 }
 0x856   :  { %1494 = vrot.lane.b32.xlu2 %v1481_v48, %s3029_s2  ;;  %1492 = vrot.lane.b32.xlu1 %v1480_v0, %s3029_s2  ;;  %v1113_v17 = vsel %vm1112_vm5, %v4965_v19, %v4964_v21  ;;  %v1156_v48 = vpop.permute.xlu0 %1155  ;;  %v1114_v56 = vsel %vm1112_vm5, %v4964_v21, %v4970_v62  ;;  %v1125_v3 = vadd.f32 %v4970_v62, %v1076_v51  ;;  %vm1553_vm0 = vcmask 809984  }
 0x857   :  { %v1123_v0 = vadd.f32 %v1113_v17, %v1074_v45  ;;  %v980_v2 = vadd.f32 %v969_v55, %v931_v47  ;;  %v1124_v50 = vadd.f32 %v1114_v56, %v1075_v30  ;;  %v1030_v17 = vadd.f32 %v4971_v42, %v981_v53 }
 0x858   :  { %v4112_v18 = vpop.permute.xlu2 %1206  ;;  %v1578_v7 = vmul.f32 %v4065_v23, %v3165_v33  ;;  %v1485_v31 = vmul.f32 %v4019_v12, %v3251_v15  ;;  %v1482_v55 = vmul.f32 %v3823_v34, %v3179_v39  ;;  %v1582_v53 = vmul.f32 %v3940_v24, %v3234_v4 }
 0x859   :  { %v1029_v37 = vadd.f32 %v1018_v26, %v980_v2  ;;  %v1534_v26 = vmul.f32 %v4968_v36, %v3251_v15  ;;  %vm1602_vm1 = vcmask 801792   ;;  %vm1651_vm2 = vcmask 793600  }
 0x85d   :  { %1404 = vrot.lane.b32.xlu0 %v1387_v11, %s3027_s15 }
 0x85e   :  { %1398 = vrot.lane.b32.xlu2 %v1384_v44, %s3027_s15  ;;  %1500 = vrot.lane.b32.xlu1 %v1484_v9, %s3029_s2 }
 0x860   :  { %v1150_v49 = vpop.permute.xlu1 %1149  ;;  %v4145_v5 = vpop.permute.xlu2 %1249 }
 0x861   :  { %v1162_v10 = vsel %vm1161_vm6, %v1150_v49, %v4042_v54 }
 0x862   :  { %v1172_v27 = vadd.f32 %v1162_v10, %v1123_v0 }
 0x865   :  { %1547 = vrot.lane.b32.xlu0 %v1532_v52, %s3030_s17 }
 0x866   :  { %1543 = vrot.lane.b32.xlu2 %v1530_v22, %s3030_s17  ;;  %1541 = vrot.lane.b32.xlu1 %v1529_v1, %s3030_s17 }
 0x867   :  { %v1201_v11 = vpop.permute.xlu0 %1200 }
 0x868   :  { %v1158_v44 = vpop.permute.xlu1 %1157  ;;  %v1211_v45 = vsel %vm1210_vm7, %v4077_v60, %v1201_v11  ;;  %v1154_v25 = vpop.permute.xlu2 %1153  ;;  %v1436_v60 = vmul.f32 %v3961_v16, %v3251_v15  ;;  %v1078_v16 = vadd.f32 %v1067_v6, %v1029_v37  ;;  %v1580_v6 = vmul.f32 %v4065_v23, %v3179_v39 }
 0x869   :  { %v1164_v9 = vsel %vm1161_vm6, %v1156_v48, %v1158_v44  ;;  %v1221_v29 = vadd.f32 %v1211_v45, %v1172_v27  ;;  %v1163_v57 = vsel %vm1161_vm6, %v4042_v54, %v1154_v25  ;;  %v1174_v41 = vadd.f32 %v1154_v25, %v1125_v3 }
 0x86a   :  { %v1175_v21 = vadd.f32 %v1164_v9, %v4038_v8  ;;  %v1173_v19 = vadd.f32 %v1163_v57, %v1124_v50  ;;  %v1433_v48 = vmul.f32 %v4936_v61, %v3179_v39  ;;  %v1533_v54 = vmul.f32 %v4968_v36, %v3234_v4 }
 0x86b   :  { %v1079_v8 = vadd.f32 %v4972_v38, %v1030_v17  ;;  %v1581_v27 = vmul.f32 %v3940_v24, %v3194_v46  ;;  %v1630_v50 = vmul.f32 %v3994_v40, %v3194_v46  ;;  %v1628_v25 = vmul.f32 %v4110_v13, %v3169_v35 }
 0x86c   :  { %v1627_v9 = vmul.f32 %v4110_v13, %v3165_v33  ;;  %v1583_v38 = vmul.f32 %v3940_v24, %v3251_v15  ;;  %v1629_v23 = vmul.f32 %v4110_v13, %v3179_v39 }
 0x86d   :  { %1453 = vrot.lane.b32.xlu0 %v1436_v60, %s3028_s16 }
 0x86e   :  { %1447 = vrot.lane.b32.xlu2 %v1433_v48, %s3028_s16  ;;  %1549 = vrot.lane.b32.xlu1 %v1533_v54, %s3030_s17 }
 0x86f   :  { %v1111_v49 = vpop.permute.xlu0 %1110 }
 0x870   :  { %v1205_v0 = vpop.permute.xlu1 %1204  ;;  %v1116_v61 = vsel %vm1112_vm5, %v4011_v59, %v1111_v49  ;;  %v1128_v32 = vadd.f32 %v1111_v49, %v1079_v8  ;;  %v4199_v10 = vpop.permute.xlu2 %1298 }
 0x871   :  { %v1213_v20 = vsel %vm1210_vm7, %v1205_v0, %v4112_v18  ;;  %v1127_v43 = vadd.f32 %v1116_v61, %v1078_v16 }
 0x872   :  { %v1224_v58 = vadd.f32 %v1213_v20, %v1175_v21  ;;  %v1531_v21 = vmul.f32 %v3878_v28, %v3179_v39  ;;  %v1669_v20 = vld [vmem:[%s4709_s3 + $0x8] sm:$0xff]  ;;  %v1632_v39 = vmul.f32 %v3994_v40, %v3251_v15 }
 0x875   :  { %1596 = vrot.lane.b32.xlu0 %v1581_v27, %s3031_s18 }
 0x876   :  { %1592 = vrot.lane.b32.xlu2 %v1579_v63, %s3031_s18  ;;  %1590 = vrot.lane.b32.xlu1 %v1578_v7, %s3031_s18 }
 0x877   :  { %v1254_v59 = vpop.permute.xlu0 %1253 }
 0x878   :  { %v1248_v14 = vpop.permute.xlu1 %1247  ;;  %v1203_v52 = vpop.permute.xlu2 %1202 }
 0x879   :  { %v1260_v51 = vsel %vm1259_vm8, %v1248_v14, %v4145_v5  ;;  %v1212_v47 = vsel %vm1210_vm7, %v1201_v11, %v1203_v52  ;;  %v1223_v22 = vadd.f32 %v1203_v52, %v1174_v41 }
 0x87a   :  { %v1270_v30 = vadd.f32 %v1260_v51, %v1221_v29  ;;  %v1222_v1 = vadd.f32 %v1212_v47, %v1173_v19  ;;  %v1631_v19 = vmul.f32 %v3994_v40, %v3234_v4  ;;  %v1668_v4 = vld [vmem:[%s4709_s3] sm:$0xff]  ;;  %v4974_v47 = vmov 2  }
 0x87d   :  { %1502 = vrot.lane.b32.xlu0 %v1485_v31, %s3029_s2 }
 0x87e   :  { %1496 = vrot.lane.b32.xlu2 %v1482_v55, %s3029_s2  ;;  %1598 = vrot.lane.b32.xlu1 %v1582_v53, %s3031_s18 }
 0x87f   :  { %v1160_v62 = vpop.permute.xlu0 %1159 }
 0x880   :  { %v1165_v56 = vsel %vm1161_vm6, %v1158_v44, %v1160_v62  ;;  %v1177_v11 = vadd.f32 %v1160_v62, %v1128_v32  ;;  %v1256_v3 = vpop.permute.xlu1 %1255  ;;  %v4225_v2 = vpop.permute.xlu2 %1347 }
 0x881   :  { %v1176_v12 = vadd.f32 %v1165_v56, %v1127_v43  ;;  %v1262_v45 = vsel %vm1259_vm8, %v1254_v59, %v1256_v3  ;;  %v4973_v43 = vmov 1  }
 0x882   :  { %v1273_v34 = vadd.f32 %v1262_v45, %v1224_v58 }
 0x885   :  { %1645 = vrot.lane.b32.xlu0 %v1630_v50, %s3032_s19 }
 0x886   :  { %1641 = vrot.lane.b32.xlu2 %v1628_v25, %s3032_s19  ;;  %1639 = vrot.lane.b32.xlu1 %v1627_v9, %s3032_s19 }
 0x887   :  { %v1303_v44 = vpop.permute.xlu0 %1302 }
 0x888   :  { %v1297_v29 = vpop.permute.xlu1 %1296  ;;  %v1252_v57 = vpop.permute.xlu2 %1251 }
 0x889   :  { %v1309_v46 = vsel %vm1308_vm9, %v1297_v29, %v4199_v10  ;;  %v1261_v35 = vsel %vm1259_vm8, %v4145_v5, %v1252_v57  ;;  %v1272_v41 = vadd.f32 %v1252_v57, %v1223_v22 }
 0x88a   :  { %v1319_v42 = vadd.f32 %v1309_v46, %v1270_v30  ;;  %v1271_v33 = vadd.f32 %v1261_v35, %v1222_v1 }
 0x88d   :  { %1551 = vrot.lane.b32.xlu0 %v1534_v26, %s3030_s17 }
 0x88e   :  { %1545 = vrot.lane.b32.xlu2 %v1531_v21, %s3030_s17  ;;  %1647 = vrot.lane.b32.xlu1 %v1631_v19, %s3032_s19 }
 0x88f   :  { %v1209_v17 = vpop.permute.xlu0 %1208 }
 0x890   :  { %v1214_v5 = vsel %vm1210_vm7, %v4112_v18, %v1209_v17  ;;  %v1226_v60 = vadd.f32 %v1209_v17, %v1177_v11  ;;  %v1305_v37 = vpop.permute.xlu1 %1304  ;;  %v1397_v48 = vpop.permute.xlu2 %1396  ;;  %vm1862_vm7 = vcmask 252928  }
 0x891   :  { %v1225_v36 = vadd.f32 %v1214_v5, %v1176_v12  ;;  %v1311_v54 = vsel %vm1308_vm9, %v1303_v44, %v1305_v37 }
 0x892   :  { %v1322_v28 = vadd.f32 %v1311_v54, %v1273_v34 }
 0x895   :  { %1672 = vperm.xlu0 %2914, %v1668_v4  }
 0x896   :  { %1600 = vrot.lane.b32.xlu2 %v1583_v38, %s3031_s18  ;;  %1594 = vrot.lane.b32.xlu1 %v1580_v6, %s3031_s18  ;;  %v4975_v6 = vmov 3  }
 0x897   :  { %v1352_v18 = vpop.permute.xlu0 %1351 }
 0x898   :  { %v1301_v8 = vpop.permute.xlu2 %1300  ;;  %v1346_v16 = vpop.permute.xlu1 %1345 }
 0x899   :  { %v1310_v49 = vsel %vm1308_vm9, %v4199_v10, %v1301_v8  ;;  %v1321_v0 = vadd.f32 %v1301_v8, %v1272_v41  ;;  %v1358_v61 = vsel %vm1357_vm10, %v1346_v16, %v4225_v2 }
 0x89a   :  { %v1320_v24 = vadd.f32 %v1310_v49, %v1271_v33  ;;  %v1368_v32 = vadd.f32 %v1358_v61, %v1319_v42  ;;  %v4343_v61 = vld [vmem:[%s4710_s4 + $0x8] sm:$0xff] }
 0x89d   :  { %2921 = vset.pattern.permute.xlu0 %v4973_v43 }
 0x89e   :  { %1643 = vrot.lane.b32.xlu2 %v1629_v23, %s3032_s19  ;;  %1677 = vperm.xlu1 %2919, %v1669_v20  }
 0x89f   :  { %v1258_v58 = vpop.permute.xlu0 %1257  ;;  %2125 = vperm.xlu0 %2921, %v4343_v61  }
 0x8a0   :  { %v1263_v10 = vsel %vm1259_vm8, %v1256_v3, %v1258_v58  ;;  %v1275_v27 = vadd.f32 %v1258_v58, %v1226_v60  ;;  %v1446_v63 = vpop.permute.xlu2 %1445  ;;  %v1354_v7 = vpop.permute.xlu1 %1353  ;;  %v2758_v58 = vld [vmem:[%s4711_s7 + $0x38] sm:$0xff] }
 0x8a1   :  { %v1274_v59 = vadd.f32 %v1263_v10, %v1225_v36  ;;  %v1360_v14 = vsel %vm1357_vm10, %v1352_v18, %v1354_v7  ;;  %v2776_v10 = vld [vmem:[%s4712_s8 + $0x38] sm:$0xff]  ;;  %1873 = vmatpush.bf16.msrb.mxu3 %v2758_v58  ;;  %v2751_v58 = vld [vmem:[%s4711_s7] sm:$0xff] }
 0x8a2   :  { %v1371_v52 = vadd.f32 %v1360_v14, %v1322_v28  ;;  %2064 = vmatpush.bf16.msra.mxu2 %v2776_v10  ;;  %v2769_v10 = vld [vmem:[%s4712_s8] sm:$0xff] }
 0x8a6   :  { %1649 = vrot.lane.b32.xlu1 %v1632_v39, %s3032_s19  ;;  %v2774_v39 = vld [vmem:[%s4712_s8 + $0x28] sm:$0xff] }
 0x8a7   :  { %v1401_v13 = vpop.permute.xlu0 %1400  ;;  %2922 = vset.pattern.permute.xlu1 %v4974_v47 }
 0x8a8   :  { %v1350_v51 = vpop.permute.xlu2 %1349  ;;  %v1395_v22 = vpop.permute.xlu1 %1394 }
 0x8a9   :  { %v1359_v30 = vsel %vm1357_vm10, %v4225_v2, %v1350_v51  ;;  %v4281_v1 = vadd.f32 %v1350_v51, %v1321_v0  ;;  %v1407_v31 = vsel %vm1406_vm11, %v1395_v22, %v1397_v48  ;;  %v2755_v51 = vld [vmem:[%s4711_s7 + $0x20] sm:$0xff] }
 0x8aa   :  { %v1369_v55 = vadd.f32 %v1359_v30, %v1320_v24  ;;  %v1417_v53 = vadd.f32 %v1407_v31, %v1368_v32  ;;  %v4976_v24 = vmov 4  }
 0x8ab   :  { %2926 = vset.pattern.permute.xlu0 %v4976_v24 }
 0x8af   :  { %v1307_v62 = vpop.permute.xlu0 %1306 }
 0x8b0   :  { %v1312_v15 = vsel %vm1308_vm9, %v1305_v37, %v1307_v62  ;;  %v1324_v40 = vadd.f32 %v1307_v62, %v1275_v27  ;;  %v4285_v56 = vpop.permute.xlu2 %1494  ;;  %v1403_v11 = vpop.permute.xlu1 %1402  ;;  %v2757_v27 = vld [vmem:[%s4711_s7 + $0x30] sm:$0xff] }
 0x8b1   :  { %v1323_v3 = vadd.f32 %v1312_v15, %v1274_v59  ;;  %v1409_v12 = vsel %vm1406_vm11, %v1401_v13, %v1403_v11  ;;  %1874 = vmatpush.bf16.msrb.mxu3 %v2757_v27  ;;  %v2766_v13 = vld [vmem:[%s4711_s7 + $0x78] sm:$0xff]  ;;  %v2765_v62 = vld [vmem:[%s4711_s7 + $0x70] sm:$0xff]  ;;  %v4978_v15 = vmov 7  }
 0x8b2   :  { %v1420_v45 = vadd.f32 %v1409_v12, %v1371_v52  ;;  %v2756_v52 = vld [vmem:[%s4711_s7 + $0x28] sm:$0xff]  ;;  %1887 = vmatpush.bf16.msrb.mxu0 %v2766_v13 }
 0x8b3   :  { %v2764_v12 = vld [vmem:[%s4711_s7 + $0x68] sm:$0xff] }
 0x8b5   :  { %1875 = vmatpush.bf16.msrb.mxu3 %v2756_v52 }
 0x8b6   :  { %1888 = vmatpush.bf16.msrb.mxu0 %v2765_v62  ;;  %v4982_v62 = vmov 11  }
 0x8b7   :  { %v1450_v34 = vpop.permute.xlu0 %1449 }
 0x8b8   :  { %v4288_v2 = vpop.permute.xlu2 %1398  ;;  %v1444_v50 = vpop.permute.xlu1 %1443 }
 0x8b9   :  { %v1408_v25 = vsel %vm1406_vm11, %v1397_v48, %v4288_v2  ;;  %v1456_v9 = vsel %vm1455_vm12, %v1444_v50, %v1446_v63  ;;  %v4314_v48 = vld [vmem:[%s4710_s4] sm:$0xff]  ;;  %1876 = vmatpush.bf16.msrb.mxu3 %v2755_v51  ;;  %v1419_v51 = vadd.f32 %v4288_v2, %v4281_v1 }
 0x8ba   :  { %v1418_v44 = vadd.f32 %v1408_v25, %v1369_v55  ;;  %v4293_v29 = vadd.f32 %v1456_v9, %v1417_v53  ;;  %2141 = vperm.xlu1 %2922, %v4314_v48   ;;  %2121 = vperm.xlu2 %2920, %v4314_v48   ;;  %v2753_v25 = vld [vmem:[%s4711_s7 + $0x10] sm:$0xff] }
 0x8bb   :  { %2181 = vperm.xlu0 %2926, %v4314_v48   ;;  %v2771_v9 = vld [vmem:[%s4712_s8 + $0x10] sm:$0xff]  ;;  %1889 = vmatpush.bf16.msrb.mxu0 %v2764_v12 }
 0x8bf   :  { %v1356_v57 = vpop.permute.xlu0 %1355 }
 0x8c0   :  { %v1361_v46 = vsel %vm1357_vm10, %v1354_v7, %v1356_v57  ;;  %v4296_v35 = vadd.f32 %v1356_v57, %v1324_v40  ;;  %v4298_v41 = vpop.permute.xlu2 %1543  ;;  %v1452_v42 = vpop.permute.xlu1 %1451  ;;  %v4977_v7 = vmov 5   ;;  %v4979_v40 = vmov 6  }
 0x8c1   :  { %v1372_v33 = vadd.f32 %v1361_v46, %v1323_v3  ;;  %v1458_v26 = vsel %vm1455_vm12, %v1450_v34, %v1452_v42  ;;  %v2772_v3 = vld [vmem:[%s4712_s8 + $0x18] sm:$0xff]  ;;  %v3033_v34 = vmov 65535   ;;  %vm1915_vm10 = vcmask 523264  }
 0x8c2   :  { %v4301_v21 = vadd.f32 %v1458_v26, %v1420_v45  ;;  %2924 = vset.pattern.permute.xlu1 %v4975_v6  ;;  %2923 = vset.pattern.permute.xlu2 %v4974_v47  ;;  %v2773_v47 = vld [vmem:[%s4712_s8 + $0x20] sm:$0xff]  ;;  %v2768_v45 = vld [vmem:[%s4711_s7 + $0x88] sm:$0xff]  ;;  %v1868_v50 = vsel %vm1866_vm14, 4294967295, %v3033_v34 }
 0x8c3   :  { %2161 = vperm.xlu1 %2924, %v4314_v48   ;;  %2145 = vperm.xlu2 %2923, %v4343_v61   ;;  %v2763_v26 = vld [vmem:[%s4711_s7 + $0x60] sm:$0xff] }
 0x8c4   :  { %2931 = vset.pattern.permute.xlu0 %v4979_v40  ;;  %1890 = vmatpush.bf16.msrb.mxu0 %v2763_v26 }
 0x8c5   :  { %2225 = vperm.xlu0 %2931, %v4343_v61  }
 0x8c7   :  { %v4303_v19 = vpop.permute.xlu0 %1498 }
 0x8c8   :  { %v4305_v17 = vpop.permute.xlu2 %1447  ;;  %v4307_v5 = vpop.permute.xlu1 %1492 }
 0x8c9   :  { %v1457_v60 = vsel %vm1455_vm12, %v1446_v63, %v4305_v17  ;;  %v2775_v63 = vld [vmem:[%s4712_s8 + $0x30] sm:$0xff]  ;;  %v1505_v27 = vsel %vm1504_vm13, %v4307_v5, %v4285_v56 }
 0x8ca   :  { %v1467_v37 = vadd.f32 %v1457_v60, %v1418_v44  ;;  %2065 = vmatpush.bf16.msra.mxu2 %v2775_v63  ;;  %v1869_v44 = vsel %vm1867_vm15, %v1868_v50, 0  ;;  %v2752_v60 = vld [vmem:[%s4711_s7 + $0x8] sm:$0xff]  ;;  %v1515_v5 = vadd.f32 %v1505_v27, %v4293_v29  ;;  %vm2513_vm15 = vcmask 662528  }
 0x8cb   :  { %2927 = vset.pattern.permute.xlu1 %v4976_v24  ;;  %2925 = vset.pattern.permute.xlu2 %v4975_v6  ;;  %v1871_v46 = vand.u32 %v2768_v45, %v1869_v44  ;;  %v2786_v6 = vld [vmem:[%s4712_s8 + $0x88] sm:$0xff]  ;;  %v2784_v24 = vld [vmem:[%s4712_s8 + $0x78] sm:$0xff] }
 0x8cc   :  { %2185 = vperm.xlu1 %2927, %v4343_v61   ;;  %2165 = vperm.xlu2 %2925, %v4343_v61   ;;  %v2782_v29 = vld [vmem:[%s4712_s8 + $0x68] sm:$0xff] }
 0x8cd   :  { %1907 = vmatpush.bf16.msrb.mxu1 %v1871_v46 }
 0x8ce   :  { %2066 = vmatpush.bf16.msra.mxu2 %v2774_v39 }
 0x8cf   :  { %v4318_v36 = vpop.permute.xlu0 %1404 }
 0x8d0   :  { %v1410_v54 = vsel %vm1406_vm11, %v1403_v11, %v4318_v36  ;;  %v4322_v28 = vpop.permute.xlu2 %1592  ;;  %v4324_v38 = vpop.permute.xlu1 %1500  ;;  %v2754_v11 = vld [vmem:[%s4711_s7 + $0x18] sm:$0xff]  ;;  %vm2440_vm11 = vcmask 130048  }
 0x8d1   :  { %v1421_v4 = vadd.f32 %v1410_v54, %v1372_v33  ;;  %1877 = vmatpush.bf16.msrb.mxu3 %v2754_v11  ;;  %v4980_v54 = vmov 8   ;;  %v1507_v1 = vsel %vm1504_vm13, %v4303_v19, %v4324_v38 }
 0x8d2   :  { %2067 = vmatpush.bf16.msra.mxu2 %v2773_v47  ;;  %v1518_v45 = vadd.f32 %v1507_v1, %v4301_v21 }
 0x8d4   :  { %2929 = vset.pattern.permute.xlu1 %v4977_v7  ;;  %2928 = vset.pattern.permute.xlu2 %v4977_v7  ;;  %v2783_v7 = vld [vmem:[%s4712_s8 + $0x70] sm:$0xff] }
 0x8d5   :  { %2205 = vperm.xlu1 %2929, %v4343_v61   ;;  %2201 = vperm.xlu2 %2928, %v4314_v48  }
 0x8d6   :  { %2068 = vmatpush.bf16.msra.mxu2 %v2772_v3  ;;  %1878 = vmatpush.bf16.msrb.mxu3 %v2753_v25 }
 0x8d7   :  { %v4329_v18 = vpop.permute.xlu0 %1547 }
 0x8d8   :  { %v4331_v8 = vpop.permute.xlu2 %1496  ;;  %v4333_v16 = vpop.permute.xlu1 %1541 }
 0x8d9   :  { %v1506_v49 = vsel %vm1504_vm13, %v4285_v56, %v4331_v8  ;;  %v1554_v52 = vsel %vm1553_vm0, %v4333_v16, %v4298_v41  ;;  %v2761_v56 = vld [vmem:[%s4711_s7 + $0x50] sm:$0xff] }
 0x8da   :  { %v4338_v0 = vadd.f32 %v1506_v49, %v1467_v37  ;;  %2069 = vmatpush.bf16.msra.mxu2 %v2771_v9  ;;  %v2770_v37 = vld [vmem:[%s4712_s8 + $0x8] sm:$0xff]  ;;  %v2767_v49 = vld [vmem:[%s4711_s7 + $0x80] sm:$0xff]  ;;  %1879 = vmatpush.bf16.msrb.mxu3 %v2752_v60  ;;  %v1564_v47 = vadd.f32 %v1554_v52, %v1515_v5  ;;  %v4986_v52 = vmov 0  }
 0x8db   :  { %1908 = vmatpush.bf16.msrb.mxu1 %v2767_v49 }
 0x8dd   :  { %2932 = vset.pattern.permute.xlu1 %v4978_v15  ;;  %2930 = vset.pattern.permute.xlu2 %v4979_v40 }
 0x8de   :  { %2241 = vperm.xlu1 %2932, %v4314_v48   ;;  %2221 = vperm.xlu2 %2930, %v4314_v48  }
 0x8df   :  { %v4349_v32 = vpop.permute.xlu0 %1453  ;;  %2070 = vmatpush.bf16.msra.mxu2 %v2770_v37  ;;  %2078 = vmatpush.bf16.msra.mxu1 %v2784_v24  ;;  %v2779_v37 = vld [vmem:[%s4712_s8 + $0x50] sm:$0xff] }
 0x8e0   :  { %v1459_v23 = vsel %vm1455_vm12, %v1452_v42, %v4349_v32  ;;  %v4353_v43 = vpop.permute.xlu1 %1549  ;;  %v4393_v22 = vpop.permute.xlu2 %1641  ;;  %1880 = vmatpush.bf16.msrb.mxu3 %v2751_v58  ;;  %vm2517_vm12 = vcmask 1040384  }
 0x8e1   :  { %v1470_v20 = vadd.f32 %v1459_v23, %v1421_v4  ;;  %v4981_v4 = vmov 9   ;;  %v2062_v23 = vand.u32 %v2786_v6, %v1869_v44  ;;  %v1556_v19 = vsel %vm1553_vm0, %v4329_v18, %v4353_v43 }
 0x8e2   :  { %2936 = vset.pattern.permute.xlu0 %v4981_v4  ;;  %v1567_v25 = vadd.f32 %v1556_v19, %v1518_v45  ;;  %v4983_v44 = vmov 10  }
 0x8e3   :  { %2281 = vperm.xlu0 %2936, %v4314_v48   ;;  %2071 = vmatpush.bf16.msra.mxu2 %v2769_v10 }
 0x8e4   :  { %2098 = vmatpush.bf16.msra.mxu3 %v2062_v23  ;;  %2079 = vmatpush.bf16.msra.mxu1 %v2783_v7  ;;  %v4985_v7 = vmov 12  }
 0x8e6   :  { %2934 = vset.pattern.permute.xlu1 %v4980_v54  ;;  %2933 = vset.pattern.permute.xlu2 %v4978_v15  ;;  %v1468_v15 = vadd.f32 %v4305_v17, %v1419_v51  ;;  %v2781_v17 = vld [vmem:[%s4712_s8 + $0x60] sm:$0xff] }
 0x8e7   :  { %v4371_v59 = vpop.permute.xlu0 %1596  ;;  %2261 = vperm.xlu1 %2934, %v4314_v48   ;;  %2245 = vperm.xlu2 %2933, %v4343_v61  }
 0x8e8   :  { %v4375_v14 = vpop.permute.xlu1 %1590  ;;  %v4433_v42 = vpop.permute.xlu2 %1545  ;;  %2080 = vmatpush.bf16.msra.mxu1 %v2782_v29  ;;  %v1517_v11 = vadd.f32 %v4331_v8, %v1468_v15  ;;  %v2759_v8 = vld [vmem:[%s4711_s7 + $0x40] sm:$0xff] }
 0x8e9   :  { %v1603_v13 = vsel %vm1602_vm1, %v4375_v14, %v4322_v28  ;;  %v2760_v14 = vld [vmem:[%s4711_s7 + $0x48] sm:$0xff]  ;;  %v1555_v3 = vsel %vm1553_vm0, %v4298_v41, %v4433_v42 }
 0x8ea   :  { %v1613_v2 = vadd.f32 %v1603_v13, %v1564_v47  ;;  %v1566_v34 = vadd.f32 %v4433_v42, %v1517_v11  ;;  %v1565_v21 = vadd.f32 %v1555_v3, %v4338_v0  ;;  %v4987_v11 = vmov 13  }
 0x8eb   :  { %2941 = vset.pattern.permute.xlu0 %v4982_v62 }
 0x8ec   :  { %2325 = vperm.xlu0 %2941, %v4343_v61   ;;  %2081 = vmatpush.bf16.msra.mxu1 %v2781_v17 }
 0x8ef   :  { %v4395_v30 = vpop.permute.xlu0 %1502  ;;  %2937 = vset.pattern.permute.xlu1 %v4981_v4  ;;  %2935 = vset.pattern.permute.xlu2 %v4980_v54  ;;  %v4984_v54 = vmov 14  }
 0x8f0   :  { %v1508_v31 = vsel %vm1504_vm13, %v4324_v38, %v4395_v30  ;;  %v4401_v55 = vpop.permute.xlu1 %1598  ;;  %v4489_v16 = vpop.permute.xlu2 %1600  ;;  %2285 = vperm.xlu1 %2937, %v4343_v61   ;;  %2265 = vperm.xlu2 %2935, %v4343_v61  }
 0x8f1   :  { %v4403_v53 = vadd.f32 %v1508_v31, %v1470_v20  ;;  %v2762_v20 = vld [vmem:[%s4711_s7 + $0x58] sm:$0xff]  ;;  %v1605_v18 = vsel %vm1602_vm1, %v4371_v59, %v4401_v55  ;;  %v2785_v59 = vld [vmem:[%s4712_s8 + $0x80] sm:$0xff] }
 0x8f2   :  { %1891 = vmatpush.bf16.msrb.mxu0 %v2762_v20  ;;  %v1616_v26 = vadd.f32 %v1605_v18, %v1567_v25  ;;  %2099 = vmatpush.bf16.msra.mxu3 %v2785_v59 }
 0x8f4   :  { %2946 = vset.pattern.permute.xlu0 %v4984_v54 }
 0x8f5   :  { %2381 = vperm.xlu0 %2946, %v4314_v48  }
 0x8f6   :  { %1892 = vmatpush.bf16.msrb.mxu0 %v2761_v56  ;;  %v1606_v56 = vsel %vm1602_vm1, %v4401_v55, %v4489_v16 }
 0x8f7   :  { %v4430_v57 = vpop.permute.xlu0 %1645 }
 0x8f8   :  { %v1640_v33 = vpop.permute.xlu1 %1639  ;;  %2939 = vset.pattern.permute.xlu1 %v4983_v44  ;;  %v1644_v46 = vpop.permute.xlu2 %1643  ;;  %2938 = vset.pattern.permute.xlu2 %v4983_v44 }
 0x8f9   :  { %v1652_v31 = vsel %vm1651_vm2, %v1640_v33, %v4393_v22  ;;  %2305 = vperm.xlu1 %2939, %v4343_v61   ;;  %v1422_v33 = vadd.f32 %v4318_v36, %v4296_v35  ;;  %v1653_v4 = vsel %vm1651_vm2, %v4393_v22, %v1644_v46  ;;  %2301 = vperm.xlu2 %2938, %v4314_v48  }
 0x8fa   :  { %1893 = vmatpush.bf16.msrb.mxu0 %v2760_v14  ;;  %v1662_v12 = vadd.f32 %v1652_v31, %v1613_v2 }
 0x8fd   :  { %2951 = vset.pattern.permute.xlu0 %v4986_v52 }
 0x8fe   :  { %1894 = vmatpush.bf16.msrb.mxu0 %v2759_v8  ;;  %2115 = vperm.xlu0 %2951, %v4343_v61  }
 0x8ff   :  { %v4470_v63 = vpop.permute.xlu0 %1551 }
 0x900   :  { %v4478_v39 = vpop.permute.xlu1 %1647  ;;  %v1557_v23 = vsel %vm1553_vm0, %v4353_v43, %v4470_v63  ;;  %v2777_v43 = vld [vmem:[%s4712_s8 + $0x40] sm:$0xff]  ;;  %vm2537_vm0 = vcmask 64512  }
 0x901   :  { %v1654_v0 = vsel %vm1651_vm2, %v4430_v57, %v4478_v39  ;;  %v1471_v57 = vadd.f32 %v4349_v32, %v1422_v33  ;;  %v2778_v32 = vld [vmem:[%s4712_s8 + $0x48] sm:$0xff]  ;;  %2942 = vset.pattern.permute.xlu1 %v4985_v7  ;;  %2940 = vset.pattern.permute.xlu2 %v4982_v62 }
 0x902   :  { %v1665_v6 = vadd.f32 %v1654_v0, %v1616_v26  ;;  %2341 = vperm.xlu1 %2942, %v4314_v48   ;;  %2321 = vperm.xlu2 %2940, %v4314_v48  }
 0x903   :  { %v1520_v24 = vadd.f32 %v4395_v30, %v1471_v57  ;;  %v1568_v30 = vadd.f32 %v1557_v23, %v4403_v53 }
 0x905   :  { %v1569_v22 = vadd.f32 %v4470_v63, %v1520_v24  ;;  %v1617_v47 = vadd.f32 %v1606_v56, %v1568_v30 }
 0x907   :  { %v1673_v40 = vpop.permute.xlu0 %1672  ;;  %v1618_v53 = vadd.f32 %v4489_v16, %v1569_v22 }
 0x908   :  { %v1595_v38 = vpop.permute.xlu1 %1594  ;;  %v4526_v50 = vadd.f32 %v1673_v40, %v1662_v12 }
 0x909   :  { %v1604_v41 = vsel %vm1602_vm1, %v4322_v28, %v1595_v38  ;;  %v1615_v9 = vadd.f32 %v1595_v38, %v1566_v34  ;;  %v2780_v28 = vld [vmem:[%s4712_s8 + $0x58] sm:$0xff] }
 0x90a   :  { %v1614_v42 = vadd.f32 %v1604_v41, %v1565_v21  ;;  %v1692_v60 = vmul.f32 1.442695, %v4526_v50  ;;  %2082 = vmatpush.bf16.msra.mxu1 %v2780_v28  ;;  %vm1686_vm3 = vcmp.gt.f32.partialorder %v4526_v50, 0.0  ;;  %2944 = vset.pattern.permute.xlu1 %v4987_v11 }
 0x90b   :  { %v1664_v35 = vadd.f32 %v1644_v46, %v1615_v9  ;;  %2361 = vperm.xlu1 %2944, %v4314_v48   ;;  %2943 = vset.pattern.permute.xlu2 %v4985_v7  ;;  %v4988_v46 = vmov 15  }
 0x90c   :  { %v1663_v36 = vadd.f32 %v1653_v4, %v1614_v42  ;;  %2952 = vpow2.f32 %v1692_v60  ;;  %2345 = vperm.xlu2 %2943, %v4343_v61  }
 0x90d   :  { %v1682_v58 = vadd.f32 %v1673_v40, %v1664_v35 }
 0x90e   :  { %2083 = vmatpush.bf16.msra.mxu1 %v2779_v37  ;;  %v1681_v27 = vadd.f32 %v1673_v40, %v1663_v36 }
 0x90f   :  { %v1696_v5 = vmul.f32 1.442695, %v1682_v58  ;;  %vm1688_vm5 = vcmp.gt.f32.partialorder %v1682_v58, 0.0 }
 0x910   :  { %v1678_v49 = vpop.permute.xlu1 %1677  ;;  %v1694_v13 = vmul.f32 1.442695, %v1681_v27  ;;  %vm1687_vm8 = vcmp.gt.f32.partialorder %v1681_v27, 0.0 }
 0x911   :  { %v1683_v20 = vadd.f32 %v1678_v49, %v1665_v6 }
 0x912   :  { %2084 = vmatpush.bf16.msra.mxu1 %v2778_v32  ;;  %v2953_v63 = vpop.eup %2952 }
 0x913   :  { %v1698_v10 = vmul.f32 1.442695, %v1683_v20  ;;  %v2567_v15 = vadd.f32 -1.0, %v2953_v63  ;;  %vm1689_vm4 = vcmp.gt.f32.partialorder %v1683_v20, 0.0  ;;  %2947 = vset.pattern.permute.xlu1 %v4984_v54 }
 0x914   :  { %2385 = vperm.xlu1 %2947, %v4343_v61   ;;  %2945 = vset.pattern.permute.xlu2 %v4987_v11  ;;  %v2122_v0 = vpop.permute.xlu2 %2121 }
 0x915   :  { %2954 = vpow2.f32 %v1698_v10  ;;  %v1710_v3 = vsel %vm1686_vm3, %v4526_v50, %v2567_v15  ;;  %2365 = vperm.xlu2 %2945, %v4343_v61  }
 0x916   :  { %2085 = vmatpush.bf16.msra.mxu1 %v2777_v43  ;;  %2956 = vpow2.f32 %v1696_v5  ;;  %v2126_v43 = vpop.permute.xlu0 %2125 }
 0x917   :  { %2958 = vpow2.f32 %v1694_v13 }
 0x918   :  { %v1650_v51 = vpop.permute.xlu1 %1649 }
 0x919   :  { %v1655_v29 = vsel %vm1651_vm2, %v4478_v39, %v1650_v51  ;;  %v1667_v31 = vadd.f32 %v1650_v51, %v1618_v53 }
 0x91a   :  { %v1666_v14 = vadd.f32 %v1655_v29, %v1617_v47 }
 0x91b   :  { %v2955_v1 = vpop.eup %2954  ;;  %v1685_v2 = vadd.f32 %v1678_v49, %v1667_v31 }
 0x91c   :  { %v1684_v55 = vadd.f32 %v1678_v49, %v1666_v14  ;;  %v2570_v16 = vadd.f32 -1.0, %v2955_v1  ;;  %v2957_v62 = vpop.eup %2956  ;;  %2949 = vset.pattern.permute.xlu1 %v4988_v46 }
 0x91d   :  { %v1702_v40 = vmul.f32 1.442695, %v1685_v2  ;;  %v2959_v45 = vpop.eup %2958  ;;  %v2569_v19 = vadd.f32 -1.0, %v2957_v62  ;;  %vm1691_vm6 = vcmp.gt.f32.partialorder %v1685_v2, 0.0  ;;  %2405 = vperm.xlu1 %2949, %v4343_v61   ;;  %2948 = vset.pattern.permute.xlu2 %v4988_v46  ;;  %v2146_v42 = vpop.permute.xlu2 %2145 }
 0x91e   :  { %v1700_v39 = vmul.f32 1.442695, %v1684_v55  ;;  %v1713_v12 = vsel %vm1689_vm4, %v1683_v20, %v2570_v16  ;;  %v2568_v8 = vadd.f32 -1.0, %v2959_v45  ;;  %vm1690_vm9 = vcmp.gt.f32.partialorder %v1684_v55, 0.0  ;;  %2401 = vperm.xlu2 %2948, %v4314_v48  }
 0x91f   :  { %2960 = vpow2.f32 %v1702_v40  ;;  %v1716_v17 = vpack.c.bf16 %v1713_v12, %v1710_v3  ;;  %v1712_v21 = vsel %vm1688_vm5, %v1682_v58, %v2569_v19 }
 0x920   :  { %2962 = vpow2.f32 %v1700_v39  ;;  %v1711_v9 = vsel %vm1687_vm8, %v1681_v27, %v2568_v8 }
 0x921   :  { %1881 = vmatmul.bf16.vlgmr.msrb.gmra.mxu3 %v1716_v17  ;;  %2072 = vmatmul.bf16.vlgmr.msra.gmra.mxu2 %v1716_v17 }
 0x925   :  { %v2961_v38 = vpop.eup %2960 }
 0x926   :  { %v2963_v34 = vpop.eup %2962  ;;  %v2572_v41 = vadd.f32 -1.0, %v2961_v38  ;;  %2950 = vset.pattern.permute.xlu2 %v4986_v52  ;;  %v2166_v33 = vpop.permute.xlu2 %2165 }
 0x927   :  { %v2571_v50 = vadd.f32 -1.0, %v2963_v34  ;;  %2110 = vperm.xlu2 %2950, %v4314_v48  }
 0x928   :  { %v1715_v18 = vsel %vm1691_vm6, %v1685_v2, %v2572_v41 }
 0x929   :  { %v1718_v25 = vpack.c.bf16 %v1715_v18, %v1712_v21  ;;  %v1714_v28 = vsel %vm1690_vm9, %v1684_v55, %v2571_v50 }
 0x92a   :  { %v1717_v44 = vpack.c.bf16 %v1714_v28, %v1711_v9 }
 0x92b   :  { %2645 = vmatmul.msk.bf16.vlgmr.msrb.gmra.mxu1 %vm1862_vm7, %v1718_v25 }
 0x92c   :  { %1895 = vmatmul.bf16.vlgmr.msrb.gmra.mxu0 %v1717_v44  ;;  %v2142_v59 = vpop.permute.xlu1 %2141 }
 0x92d   :  { %v2182_v15 = vpop.permute.xlu0 %2181 }
 0x92f   :  { %v2202_v57 = vpop.permute.xlu2 %2201 }
 0x931   :  { %2718 = vmatmul.msk.bf16.vlgmr.msra.gmra.mxu3 %vm1862_vm7, %v1718_v25 }
 0x935   :  { %v2162_v60 = vpop.permute.xlu1 %2161 }
 0x937   :  { %v2226_v11 = vpop.permute.xlu0 %2225 }
 0x938   :  { %v2222_v23 = vpop.permute.xlu2 %2221 }
 0x93b   :  { %2086 = vmatmul.bf16.vlgmr.msra.gmra.mxu1 %v1717_v44 }
 0x93e   :  { %v2186_v35 = vpop.permute.xlu1 %2185 }
 0x941   :  { %v2246_v63 = vpop.permute.xlu2 %2245 }
 0x947   :  { %v2206_v10 = vpop.permute.xlu1 %2205 }
 0x94a   :  { %v2266_v1 = vpop.permute.xlu2 %2265 }
 0x950   :  { %v2242_v47 = vpop.permute.xlu1 %2241 }
 0x953   :  { %v2302_v39 = vpop.permute.xlu2 %2301 }
 0x955   :  { %v2282_v45 = vpop.permute.xlu0 %2281 }
 0x959   :  { %v2262_v16 = vpop.permute.xlu1 %2261 }
 0x95c   :  { %v2322_v8 = vpop.permute.xlu2 %2321 }
 0x962   :  { %v2286_v62 = vpop.permute.xlu1 %2285 }
 0x966   :  { %v2346_v25 = vpop.permute.xlu2 %2345 }
 0x96b   :  { %v2306_v41 = vpop.permute.xlu1 %2305 }
 0x974   :  { %v2342_v9 = vpop.permute.xlu1 %2341 }
 0x9a4   :  { %v1882_v26 = vpop.f32.mrf.mxu3  ;;  %v2073_v20 = vpop.f32.mrf.mxu2 }
 0x9a8   :  { %v1910_v37 = vpop.f32.mrf.mxu1 }
 0x9a9   :  { %v1896_v54 = vpop.f32.mrf.mxu0 }
 0x9aa   :  { %v1897_v61 = vadd.f32 %v1896_v54, %v1882_v26  ;;  %v2362_v26 = vpop.permute.xlu1 %2361 }
 0x9ac   :  { %v1911_v4 = vadd.f32 %v1910_v37, %v1897_v61  ;;  %v1884_v6 = vpop.f32.mrf.mxu3  ;;  %v2075_v56 = vpop.f32.mrf.mxu2 }
 0x9ae   :  { %1916 = vst.msk [vmem:[%s4713_s10] sm:$0xff] %vm1915_vm10, %v1911_v4 }
 0x9b0   :  { %v1912_v36 = vpop.f32.mrf.mxu1 }
 0x9b1   :  { %v1898_v48 = vpop.f32.mrf.mxu0 }
 0x9b2   :  { %v1899_v49 = vadd.f32 %v1898_v48, %v1884_v6  ;;  %v2386_v4 = vpop.permute.xlu1 %2385 }
 0x9b4   :  { %v1913_v24 = vadd.f32 %v1912_v36, %v1899_v49  ;;  %v2101_v32 = vpop.f32.mrf.mxu3 }
 0x9b6   :  { %1917 = vst.msk [vmem:[%s4713_s10 + $0x8] sm:$0xff] %vm1915_vm10, %v1913_v24 }
 0x9b8   :  { %v2087_v22 = vpop.f32.mrf.mxu1 }
 0x9b9   :  { %v2088_v58 = vadd.f32 %v2087_v22, %v2073_v20  ;;  %v2423_v20 = vld [vmem:[%s4714_s6] sm:$0xff] }
 0x9ba   :  { %v2406_v49 = vpop.permute.xlu1 %2405 }
 0x9bb   :  { %v4606_v30 = vadd.f32 %v2101_v32, %v2088_v58 }
 0x9bc   :  { %v2103_v13 = vpop.f32.mrf.mxu3 }
 0x9bd   :  { %v2168_v27 = vmul.f32 %v2162_v60, %v4606_v30  ;;  %v2128_v7 = vmul.f32 %v2122_v0, %v4606_v30  ;;  %v2148_v14 = vmul.f32 %v2142_v59, %v4606_v30  ;;  %v2228_v55 = vmul.f32 %v2222_v23, %v4606_v30  ;;  %v2366_v0 = vpop.permute.xlu2 %2365  ;;  %v2326_v60 = vpop.permute.xlu0 %2325 }
 0x9be   :  { %v2188_v3 = vmul.f32 %v2182_v15, %v4606_v30  ;;  %v2208_v17 = vmul.f32 %v2202_v57, %v4606_v30  ;;  %v2288_v38 = vmul.f32 %v2282_v45, %v4606_v30  ;;  %v2248_v50 = vmul.f32 %v2242_v47, %v4606_v30 }
 0x9bf   :  { %2172 = vrot.lane.b32.xlu0 %v2168_v27, %s2979_s20  ;;  %2132 = vrot.lane.b32.xlu1 %v2128_v7, %s2978_s1  ;;  %v2268_v18 = vmul.f32 %v2262_v16, %v4606_v30  ;;  %v2348_v28 = vmul.f32 %v2342_v9, %v4606_v30  ;;  %v2368_v36 = vmul.f32 %v2362_v26, %v4606_v30 }
 0x9c0   :  { %v2089_v5 = vpop.f32.mrf.mxu1 }
 0x9c1   :  { %v2090_v53 = vadd.f32 %v2089_v5, %v2075_v56 }
 0x9c3   :  { %v4612_v51 = vadd.f32 %v2103_v13, %v2090_v53 }
 0x9c5   :  { %v2129_v29 = vmul.f32 %v2126_v43, %v4612_v51  ;;  %v2189_v31 = vmul.f32 %v2186_v35, %v4612_v51  ;;  %v2149_v2 = vmul.f32 %v2146_v42, %v4612_v51  ;;  %v2169_v40 = vmul.f32 %v2166_v33, %v4612_v51  ;;  %v2402_v37 = vpop.permute.xlu2 %2401  ;;  %v2382_v6 = vpop.permute.xlu0 %2381  ;;  %v2424_v35 = vld [vmem:[%s4714_s6 + $0x8] sm:$0xff] }
 0x9c6   :  { %v2249_v12 = vmul.f32 %v2246_v63, %v4612_v51  ;;  %v2209_v19 = vmul.f32 %v2206_v10, %v4612_v51  ;;  %v2229_v34 = vmul.f32 %v2226_v11, %v4612_v51  ;;  %v2309_v21 = vmul.f32 %v2306_v41, %v4612_v51 }
 0x9c7   :  { %2134 = vrot.lane.b32.xlu2 %v2129_v29, %s2978_s1  ;;  %2194 = vrot.lane.b32.xlu0 %v2189_v31, %s2980_s21  ;;  %v2269_v44 = vmul.f32 %v2266_v1, %v4612_v51  ;;  %v2289_v46 = vmul.f32 %v2286_v62, %v4612_v51  ;;  %v2308_v42 = vmul.f32 %v2302_v39, %v4606_v30  ;;  %s4989_s1 = smov 114  }
 0x9c8   :  { %2152 = vrot.lane.b32.xlu1 %v2148_v14, %s2977_s0  ;;  %v2369_v59 = vmul.f32 %v2366_v0, %v4612_v51  ;;  %v2328_v33 = vmul.f32 %v2322_v8, %v4606_v30  ;;  %v2329_v54 = vmul.f32 %v2326_v60, %v4612_v51  ;;  %v2408_v61 = vmul.f32 %v2402_v37, %v4606_v30 }
 0x9c9   :  { %v2349_v57 = vmul.f32 %v2346_v25, %v4612_v51  ;;  %v2388_v48 = vmul.f32 %v2382_v6, %v4606_v30  ;;  %v2389_v24 = vmul.f32 %v2386_v4, %v4612_v51  ;;  %v2409_v23 = vmul.f32 %v2406_v49, %v4612_v51 }
 0x9cd   :  { %v2111_v32 = vpop.permute.xlu2 %2110  ;;  %v2116_v58 = vpop.permute.xlu0 %2115 }
 0x9ce   :  { %v2118_v15 = vmul.f32 %v2111_v32, %v4606_v30  ;;  %v2119_v1 = vmul.f32 %v2116_v58, %v4612_v51  ;;  %v2787_v58 = vld [vmem:[%s4715_s5] sm:$0xff] }
 0x9cf   :  { %2154 = vrot.lane.b32.xlu2 %v2149_v2, %s2977_s0  ;;  %2232 = vrot.lane.b32.xlu0 %v2228_v55, %s2982_s23 }
 0x9d0   :  { %2174 = vrot.lane.b32.xlu1 %v2169_v40, %s2979_s20 }
 0x9d7   :  { %2192 = vrot.lane.b32.xlu2 %v2188_v3, %s2980_s21  ;;  %2254 = vrot.lane.b32.xlu0 %v2249_v12, %s2984_s24 }
 0x9d8   :  { %2212 = vrot.lane.b32.xlu1 %v2208_v17, %s2981_s22 }
 0x9df   :  { %2214 = vrot.lane.b32.xlu2 %v2209_v19, %s2981_s22  ;;  %2292 = vrot.lane.b32.xlu0 %v2288_v38, %s2988_s26 }
 0x9e0   :  { %2234 = vrot.lane.b32.xlu1 %v2229_v34, %s2982_s23 }
 0x9e7   :  { %2252 = vrot.lane.b32.xlu2 %v2248_v50, %s2984_s24  ;;  %2314 = vrot.lane.b32.xlu0 %v2309_v21, %s2990_s27 }
 0x9e8   :  { %2272 = vrot.lane.b32.xlu1 %v2268_v18, %s2985_s25 }
 0x9ef   :  { %2352 = vrot.lane.b32.xlu0 %v2348_v28, %s2994_s29  ;;  %2274 = vrot.lane.b32.xlu2 %v2269_v44, %s2985_s25 }
 0x9f0   :  { %2294 = vrot.lane.b32.xlu1 %v2289_v46, %s2988_s26 }
 0x9f7   :  { %2312 = vrot.lane.b32.xlu2 %v2308_v42, %s2990_s27  ;;  %2374 = vrot.lane.b32.xlu0 %v2369_v59, %s2996_s30 }
 0x9f8   :  { %2332 = vrot.lane.b32.xlu1 %v2328_v33, %s2992_s28 }
 0x9ff   :  { %2334 = vrot.lane.b32.xlu2 %v2329_v54, %s2992_s28  ;;  %2412 = vrot.lane.b32.xlu0 %v2408_v61, %s3000_s13 }
 0xa00   :  { %2354 = vrot.lane.b32.xlu1 %v2349_v57, %s2994_s29 }
 0xa07   :  { %2372 = vrot.lane.b32.xlu2 %v2368_v36, %s2996_s30  ;;  %2432 = vperm.xlu0 %2951, %v2424_v35  }
 0xa08   :  { %2392 = vrot.lane.b32.xlu1 %v2388_v48, %s4989_s1 }
 0xa0f   :  { %2394 = vrot.lane.b32.xlu2 %v2389_v24, %s4989_s1 }
 0xa10   :  { %2414 = vrot.lane.b32.xlu1 %v2409_v23, %s3000_s13 }
 0xa17   :  { %2427 = vperm.xlu2 %2950, %v2423_v20  }
 0xa21   :  { %v2135_v22 = vpop.permute.xlu2 %2134 }
 0xa22   :  { %v2139_v55 = vadd.f32 %v2135_v22, %v2119_v1 }
 0xa29   :  { %v2155_v10 = vpop.permute.xlu2 %2154 }
 0xa2a   :  { %v2159_v11 = vadd.f32 %v2155_v10, %v2139_v55  ;;  %v2479_v10 = vld [vmem:[%s4716_s9 + $0x28] sm:$0x1] }
 0xa31   :  { %v2133_v27 = vpop.permute.xlu1 %2132  ;;  %v2173_v7 = vpop.permute.xlu0 %2172 }
 0xa32   :  { %v2193_v43 = vpop.permute.xlu2 %2192  ;;  %v2138_v2 = vadd.f32 %v2133_v27, %v2118_v15  ;;  %v2501_v27 = vunpack.c.l.b16 %v2479_v10 }
 0xa39   :  { %v2195_v56 = vpop.permute.xlu0 %2194 }
 0xa3a   :  { %v2153_v63 = vpop.permute.xlu1 %2152  ;;  %v2215_v53 = vpop.permute.xlu2 %2214 }
 0xa3b   :  { %v2158_v16 = vadd.f32 %v2153_v63, %v2138_v2 }
 0xa3d   :  { %v2178_v12 = vadd.f32 %v2173_v7, %v2158_v16  ;;  %v2507_v7 = vpack.c.b16 %v2501_v27, %v2501_v27 }
 0xa3f   :  { %v2198_v45 = vadd.f32 %v2193_v43, %v2178_v12  ;;  %v2519_v43 = vsel %vm2517_vm12, 65535, %v4986_v52  ;;  %v2789_v52 = vld [vmem:[%s4716_s9 + $0x8] sm:$0xff] }
 0xa40   :  { %v2521_v63 = vand.u32 %v2519_v43, %v2507_v7 }
 0xa41   :  { %v2233_v13 = vpop.permute.xlu0 %2232 }
 0xa42   :  { %v2175_v5 = vpop.permute.xlu1 %2174  ;;  %v2253_v29 = vpop.permute.xlu2 %2252  ;;  %2525 = vmatpush.bf16.msrb.mxu2 %v2521_v63 }
 0xa43   :  { %v2179_v17 = vadd.f32 %v2175_v5, %v2159_v11  ;;  %v2791_v5 = vld [vmem:[%s4716_s9 + $0x18] sm:$0xff] }
 0xa45   :  { %v2199_v62 = vadd.f32 %v2195_v56, %v2179_v17  ;;  %v2792_v56 = vld [vmem:[%s4716_s9 + $0x20] sm:$0xff] }
 0xa46   :  { %2526 = vmatpush.bf16.msrb.mxu2 %v2792_v56 }
 0xa47   :  { %v2219_v34 = vadd.f32 %v2215_v53, %v2199_v62  ;;  %v2790_v53 = vld [vmem:[%s4716_s9 + $0x10] sm:$0xff] }
 0xa49   :  { %v2255_v31 = vpop.permute.xlu0 %2254 }
 0xa4a   :  { %v2213_v47 = vpop.permute.xlu1 %2212  ;;  %v2275_v40 = vpop.permute.xlu2 %2274  ;;  %2527 = vmatpush.bf16.msrb.mxu2 %v2791_v5 }
 0xa4b   :  { %v2218_v19 = vadd.f32 %v2213_v47, %v2198_v45 }
 0xa4d   :  { %v2238_v50 = vadd.f32 %v2233_v13, %v2218_v19  ;;  %v2788_v13 = vld [vmem:[%s4716_s9] sm:$0xff] }
 0xa4e   :  { %2528 = vmatpush.bf16.msrb.mxu2 %v2790_v53 }
 0xa4f   :  { %v2258_v51 = vadd.f32 %v2253_v29, %v2238_v50 }
 0xa51   :  { %v2293_v39 = vpop.permute.xlu0 %2292 }
 0xa52   :  { %v2235_v14 = vpop.permute.xlu1 %2234  ;;  %v2313_v38 = vpop.permute.xlu2 %2312  ;;  %2529 = vmatpush.bf16.msrb.mxu2 %v2789_v52 }
 0xa53   :  { %v2239_v30 = vadd.f32 %v2235_v14, %v2219_v34 }
 0xa55   :  { %v2259_v21 = vadd.f32 %v2255_v31, %v2239_v30 }
 0xa56   :  { %2530 = vmatpush.bf16.msrb.mxu2 %v2788_v13 }
 0xa57   :  { %v2279_v28 = vadd.f32 %v2275_v40, %v2259_v21 }
 0xa59   :  { %v2315_v41 = vpop.permute.xlu0 %2314 }
 0xa5a   :  { %v2273_v3 = vpop.permute.xlu1 %2272  ;;  %v2335_v9 = vpop.permute.xlu2 %2334 }
 0xa5b   :  { %v2278_v25 = vadd.f32 %v2273_v3, %v2258_v51 }
 0xa5d   :  { %v2298_v46 = vadd.f32 %v2293_v39, %v2278_v25 }
 0xa5f   :  { %v2318_v33 = vadd.f32 %v2313_v38, %v2298_v46 }
 0xa61   :  { %v2353_v44 = vpop.permute.xlu0 %2352 }
 0xa62   :  { %v2295_v8 = vpop.permute.xlu1 %2294  ;;  %v2373_v60 = vpop.permute.xlu2 %2372 }
 0xa63   :  { %v2299_v0 = vadd.f32 %v2295_v8, %v2279_v28 }
 0xa65   :  { %v2319_v59 = vadd.f32 %v2315_v41, %v2299_v0 }
 0xa67   :  { %v2339_v37 = vadd.f32 %v2335_v9, %v2319_v59 }
 0xa69   :  { %v2375_v54 = vpop.permute.xlu0 %2374 }
 0xa6a   :  { %v2333_v18 = vpop.permute.xlu1 %2332  ;;  %v2395_v48 = vpop.permute.xlu2 %2394 }
 0xa6b   :  { %v2338_v26 = vadd.f32 %v2333_v18, %v2318_v33 }
 0xa6d   :  { %v2358_v61 = vadd.f32 %v2353_v44, %v2338_v26 }
 0xa6f   :  { %v2378_v35 = vadd.f32 %v2373_v60, %v2358_v61 }
 0xa71   :  { %v2413_v24 = vpop.permute.xlu0 %2412 }
 0xa72   :  { %v2355_v42 = vpop.permute.xlu1 %2354  ;;  %v2428_v47 = vpop.permute.xlu2 %2427 }
 0xa73   :  { %v2359_v57 = vadd.f32 %v2355_v42, %v2339_v37 }
 0xa75   :  { %v2379_v6 = vadd.f32 %v2375_v54, %v2359_v57 }
 0xa77   :  { %v2399_v49 = vadd.f32 %v2395_v48, %v2379_v6 }
 0xa79   :  { %v2433_v15 = vpop.permute.xlu0 %2432 }
 0xa7a   :  { %v2393_v4 = vpop.permute.xlu1 %2392 }
 0xa7b   :  { %v2398_v36 = vadd.f32 %v2393_v4, %v2378_v35 }
 0xa7d   :  { %v2418_v20 = vadd.f32 %v2413_v24, %v2398_v36 }
 0xa82   :  { %v2415_v23 = vpop.permute.xlu1 %2414 }
 0xa83   :  { %v2419_v32 = vadd.f32 %v2415_v23, %v2399_v49 }
 0xa85   :  { %v2422_v22 = vpack.c.bf16 %v2419_v32, %v2418_v20 }
 0xa87   :  { %2451 = vmatpush.bf16.msra.mxu0 %v2422_v22 }
 0xa8a   :  { %2723 = vmatmul.msk.bf16.vlgmr.msra.gmra.mxu0 %vm2440_vm11, %v2787_v58 }
 0xb07   :  { %v2453_v29 = vpop.f32.mrf.mxu0 }
 0xb08   :  { %v2454_v31 = vadd.f32 %v2453_v29, %v2428_v47 }
 0xb0a   :  { %v2460_v14 = vmul.f32 1.442695, %v2454_v31  ;;  %vm2458_vm13 = vcmp.gt.f32.partialorder %v2454_v31, 0.0 }
 0xb0c   :  { %2964 = vpow2.f32 %v2460_v14 }
 0xb0f   :  { %v2455_v1 = vpop.f32.mrf.mxu0 }
 0xb10   :  { %v2456_v2 = vadd.f32 %v2455_v1, %v2433_v15 }
 0xb12   :  { %v2462_v55 = vmul.f32 1.442695, %v2456_v2  ;;  %v2965_v16 = vpop.eup %2964  ;;  %vm2459_vm14 = vcmp.gt.f32.partialorder %v2456_v2, 0.0 }
 0xb13   :  { %v2724_v40 = vadd.f32 -1.0, %v2965_v16 }
 0xb14   :  { %2966 = vpow2.f32 %v2462_v55 }
 0xb15   :  { %v2466_v3 = vsel %vm2458_vm13, %v2454_v31, %v2724_v40 }
 0xb1a   :  { %v2967_v11 = vpop.eup %2966 }
 0xb1b   :  { %v2725_v39 = vadd.f32 -1.0, %v2967_v11 }
 0xb1d   :  { %v2467_v12 = vsel %vm2459_vm14, %v2456_v2, %v2725_v39 }
 0xb1e   :  { %v2468_v17 = vpack.c.bf16 %v2467_v12, %v2466_v3 }
 0xb20   :  { %2746 = vmatmul.msk.bf16.vlgmr.msrb.gmra.mxu2 %vm2513_vm15, %v2468_v17 }
 0xba3   :  { %v2532_v62 = vpop.f32.mrf.mxu2 }
 0xba4   :  { %2538 = vst.msk [vmem:[%s4717_s11] sm:$0xff] %vm2537_vm0, %v2532_v62 }
 0xbab   :  { %v2534_v45 = vpop.f32.mrf.mxu2 }
 0xbac   :  { %2539 = vst.msk [vmem:[%s4717_s11 + $0x8] sm:$0xff] %vm2537_vm0, %v2534_v45 }

</bundles_post_ra>
